<compile_context>
chip_gen: v5e
topology: v5e:2x2
jax: 0.10.0
libtpu: 0.0.40
codegen_flags: <defaults>
</compile_context>

<pallas_src>
import math

import jax
import jax.numpy as jnp
from jax.experimental import pallas as pl
from jax.experimental.pallas import tpu as pltpu

# ----------------------- hyper-parameters (small) ---------------------------
D_MODEL = 32
D_STATE = 16
D_CONV = 4
EXPAND = 2
HEADDIM = 64                       # Mamba2 default headdim
NUM_CYCLES = 1                     # SubModel3 builds 6 * num_cycles blocks
RMS_EPS = 1e-6                     # config.rmsnorm_eps
GN_EPS = 1e-5                      # mamba_ssm RMSNormGated default eps

D_INNER = EXPAND * D_MODEL                      # 64
NHEADS = D_INNER // HEADDIM                     # 1
CONV_DIM = D_INNER + 2 * D_STATE                # 96
D_IN_PROJ = 2 * D_INNER + 2 * D_STATE + NHEADS  # 161
NUM_BLOCKS = 6 * NUM_CYCLES

_VMEM_SPEC = pl.BlockSpec(memory_space=pltpu.MemorySpace.VMEM)
_SMEM_SPEC = pl.BlockSpec(memory_space=pltpu.MemorySpace.SMEM)

# rows of the per-block vector slab (each vector starts at lane 0)
_R_N1, _R_N2, _R_GN, _R_CWX, _R_CBX, _R_CWB, _R_CBB, _R_CWC, _R_CBC, \
    _R_B1, _R_B2, _R_WDT = range(12)
_VEC_ROWS = 12


def _silu(x):
    return x * jax.nn.sigmoid(x)


# ------------------------------ fused kernel ---------------------------------
def _fused_kernel(emb_ref, mask_ref, scal_ref, vec_ref,
                  w_z_ref, w_x_ref, w_b_ref, w_c_ref,
                  w_out_ref, w1_ref, w2_ref, out_ref):
    """Masked mean-pool + NUM_BLOCKS MambaBlocks, fully fused."""
    # ---- masked mean pooling over the sequence axis ----
    emb = emb_ref[...]                                    # (B, S, D)
    mask = mask_ref[...]                                  # (B, S)
    masked = mask[:, :, None] * emb
    mask_len = jnp.sum(mask, axis=1, keepdims=True)       # (B, 1)
    x = jnp.sum(masked, axis=1) / (mask_len + 1e-8)       # (B, D)

    # ---- statically unrolled block loop (tiny per-block compute) ----
    for blk in range(NUM_BLOCKS):
        n1_w = vec_ref[blk, _R_N1:_R_N1 + 1, :D_MODEL]    # (1, 32)
        n2_w = vec_ref[blk, _R_N2:_R_N2 + 1, :D_MODEL]
        gn_w = vec_ref[blk, _R_GN:_R_GN + 1, :D_INNER]    # (1, 64)
        cw_x = vec_ref[blk, _R_CWX:_R_CWX + 1, :D_INNER]
        cb_x = vec_ref[blk, _R_CBX:_R_CBX + 1, :D_INNER]
        cw_b = vec_ref[blk, _R_CWB:_R_CWB + 1, :D_STATE]  # (1, 16)
        cb_b = vec_ref[blk, _R_CBB:_R_CBB + 1, :D_STATE]
        cw_c = vec_ref[blk, _R_CWC:_R_CWC + 1, :D_STATE]
        cb_c = vec_ref[blk, _R_CBC:_R_CBC + 1, :D_STATE]
        b1 = vec_ref[blk, _R_B1:_R_B1 + 1, :]             # (1, 128)
        b2 = vec_ref[blk, _R_B2:_R_B2 + 1, :D_MODEL]      # (1, 32)
        w_dt = vec_ref[blk, _R_WDT:_R_WDT + 1, :D_MODEL]  # (1, 32)
        dt_bias = scal_ref[blk, 0]                        # scalar (SMEM)
        d_par = scal_ref[blk, 1]                          # scalar (SMEM)

        # ---- RMSNorm #1: weight * x / sqrt(sum(x^2) + eps)  (matches the
        # torch module: norm(2).pow(2).mean over a keepdim-1 axis == sum) ----
        h = n1_w * x * jax.lax.rsqrt(
            jnp.sum(x * x, axis=-1, keepdims=True) + RMS_EPS)

        # ---- Mamba2 forward at seqlen == 1, lane-dense split projections ----
        z = jnp.dot(h, w_z_ref[blk], preferred_element_type=jnp.float32)    # (B, 64)
        x_in = jnp.dot(h, w_x_ref[blk], preferred_element_type=jnp.float32) # (B, 64)
        b_in = jnp.dot(h, w_b_ref[blk], preferred_element_type=jnp.float32) # (B, 16)
        c_in = jnp.dot(h, w_c_ref[blk], preferred_element_type=jnp.float32) # (B, 16)
        dt_raw = jnp.sum(h * w_dt, axis=-1, keepdims=True)                  # (B, 1)

        # dt = softplus(dt_raw + dt_bias) (numerically stable)
        v = dt_raw + dt_bias
        dt = jnp.maximum(v, 0.0) + jnp.log(1.0 + jnp.exp(-jnp.abs(v)))

        # depthwise causal conv over a length-1 sequence -> last tap only,
        # then SiLU  (applied separately to the x / B / C chunks)
        x_ssm = _silu(x_in * cw_x + cb_x)                 # (B, 64)
        b_ssm = _silu(b_in * cw_b + cb_b)                 # (B, 16)
        c_ssm = _silu(c_in * cw_c + cb_c)                 # (B, 16)

        # single-step SSM with h0 = 0:  y = dt * (C . B) * x + D * x
        cb = jnp.sum(b_ssm * c_ssm, axis=-1, keepdims=True)      # (B, 1)
        y = x_ssm * (dt * cb + d_par)                            # NHEADS == 1

        # gated RMSNorm (norm_before_gate=False): rmsnorm(y * silu(z)) * w
        yg = y * _silu(z)
        yn = yg * jax.lax.rsqrt(
            jnp.mean(yg * yg, axis=-1, keepdims=True) + GN_EPS) * gn_w
        x1 = x + jnp.dot(yn, w_out_ref[blk], preferred_element_type=jnp.float32)

        # ---- RMSNorm #2 + MLP (Linear -> exact-erf GELU -> Linear) ----
        h2 = n2_w * x1 * jax.lax.rsqrt(
            jnp.sum(x1 * x1, axis=-1, keepdims=True) + RMS_EPS)
        m = jnp.dot(h2, w1_ref[blk], preferred_element_type=jnp.float32) + b1
        m = 0.5 * m * (1.0 + jax.lax.erf(m * (1.0 / math.sqrt(2.0))))
        m = jnp.dot(m, w2_ref[blk], preferred_element_type=jnp.float32) + b2

        x = x1 + m

    out_ref[...] = x


# ------------------------------ wrapper --------------------------------------
def submodel3_forward(embeddings, attention_mask, packed):
    b = embeddings.shape[0]
    return pl.pallas_call(
        _fused_kernel,
        out_shape=jax.ShapeDtypeStruct((b, D_MODEL), embeddings.dtype),
        in_specs=[
            _VMEM_SPEC,            # embeddings
            _VMEM_SPEC,            # attention_mask
            _SMEM_SPEC,            # per-block scalars (dt_bias, D)
            _VMEM_SPEC,            # vector slab
            _VMEM_SPEC,            # w_z   (NB, 32, 64)
            _VMEM_SPEC,            # w_x   (NB, 32, 64)
            _VMEM_SPEC,            # w_b   (NB, 32, 16)
            _VMEM_SPEC,            # w_c   (NB, 32, 16)
            _VMEM_SPEC,            # w_out (NB, 64, 32)
            _VMEM_SPEC,            # w1    (NB, 32, 128)
            _VMEM_SPEC,            # w2    (NB, 128, 32)
        ],
        out_specs=_VMEM_SPEC,
    )(embeddings, attention_mask, packed['scal'], packed['vec'],
      packed['w_z'], packed['w_x'], packed['w_b'], packed['w_c'],
      packed['w_out'], packed['w1'], packed['w2'])


# ------------------------- deterministic parameters --------------------------
def init_block_params(key):
    ks = jax.random.split(key, 8)
    s = 0.02
    return {
        'n1_w': jnp.ones((1, D_MODEL), jnp.float32),
        'w_in': jax.random.normal(ks[0], (D_MODEL, D_IN_PROJ), jnp.float32) * s,
        # conv_w == last tap (k = d_conv-1) of the depthwise Conv1d kernel; the
        # other taps only ever see zero padding when seqlen == 1.
        'conv_w': jax.random.normal(ks[1], (1, CONV_DIM), jnp.float32) * s,
        'conv_b': jax.random.normal(ks[2], (1, CONV_DIM), jnp.float32) * s,
        'dt_bias': jax.random.normal(ks[3], (1, NHEADS), jnp.float32) * s,
        'D': jnp.ones((1, NHEADS), jnp.float32),
        'gn_w': jnp.ones((1, D_INNER), jnp.float32),
        'w_out': jax.random.normal(ks[4], (D_INNER, D_MODEL), jnp.float32) * s,
        'n2_w': jnp.ones((1, D_MODEL), jnp.float32),
        'w1': jax.random.normal(ks[5], (D_MODEL, 4 * D_MODEL), jnp.float32) * s,
        'b1': jax.random.normal(ks[6], (1, 4 * D_MODEL), jnp.float32) * s,
        'w2': jax.random.normal(ks[7], (4 * D_MODEL, D_MODEL), jnp.float32) * s,
        'b2': jnp.zeros((1, D_MODEL), jnp.float32),
    }
    # Note: A_log is not materialized — at seqlen 1, exp(A*dt) only scales the
    # zero initial SSM state and has no effect on the output.


def init_params(key):
    return [init_block_params(k) for k in jax.random.split(key, NUM_BLOCKS)]


def _pad_row(v, width=128):
    v = jnp.reshape(v, (-1,))
    return jnp.pad(v, (0, width - v.shape[0]))


def pack_params(params):
    """Stack/pack per-block params into the slabs the fused kernel consumes."""
    vecs, scals = [], []
    w_z, w_x, w_b, w_c, w_out, w1, w2 = [], [], [], [], [], [], []
    for p in params:
        w_in = p['w_in']                              # (32, 161) = [z|x|B|C|dt]
        rows = [None] * _VEC_ROWS
        rows[_R_N1] = p['n1_w'][0]
        rows[_R_N2] = p['n2_w'][0]
        rows[_R_GN] = p['gn_w'][0]
        rows[_R_CWX] = p['conv_w'][0, :D_INNER]
        rows[_R_CBX] = p['conv_b'][0, :D_INNER]
        rows[_R_CWB] = p['conv_w'][0, D_INNER:D_INNER + D_STATE]
        rows[_R_CBB] = p['conv_b'][0, D_INNER:D_INNER + D_STATE]
        rows[_R_CWC] = p['conv_w'][0, D_INNER + D_STATE:]
        rows[_R_CBC] = p['conv_b'][0, D_INNER + D_STATE:]
        rows[_R_B1] = p['b1'][0]
        rows[_R_B2] = p['b2'][0]
        rows[_R_WDT] = w_in[:, D_IN_PROJ - 1]
        vecs.append(jnp.stack([_pad_row(r) for r in rows]))
        scals.append(jnp.array([p['dt_bias'][0, 0], p['D'][0, 0]], jnp.float32))
        w_z.append(w_in[:, :D_INNER])
        w_x.append(w_in[:, D_INNER:2 * D_INNER])
        w_b.append(w_in[:, 2 * D_INNER:2 * D_INNER + D_STATE])
        w_c.append(w_in[:, 2 * D_INNER + D_STATE:2 * D_INNER + 2 * D_STATE])
        w_out.append(p['w_out'])
        w1.append(p['w1'])
        w2.append(p['w2'])
    return {
        'vec': jnp.stack(vecs),      # (NB, 12, 128)
        'scal': jnp.stack(scals),    # (NB, 2)  -> SMEM
        'w_z': jnp.stack(w_z),       # (NB, 32, 64)
        'w_x': jnp.stack(w_x),       # (NB, 32, 64)
        'w_b': jnp.stack(w_b),       # (NB, 32, 16)
        'w_c': jnp.stack(w_c),       # (NB, 32, 16)
        'w_out': jnp.stack(w_out),   # (NB, 64, 32)
        'w1': jnp.stack(w1),         # (NB, 32, 128)
        'w2': jnp.stack(w2),         # (NB, 128, 32)
    }


# ------------------------------ pure-JAX reference ----------------------------
def _reference_forward(embeddings, attention_mask, params):
    masked = attention_mask[:, :, None] * embeddings
    mask_len = jnp.sum(attention_mask, axis=1, keepdims=True)
    x = jnp.sum(masked, axis=1) / (mask_len + 1e-8)
    for p in params:
        h = p['n1_w'] * x / jnp.sqrt(jnp.sum(x * x, -1, keepdims=True) + RMS_EPS)
        zxbcdt = h @ p['w_in']
        z = zxbcdt[:, :D_INNER]
        xbc = zxbcdt[:, D_INNER:D_INNER + CONV_DIM]
        dt = jax.nn.softplus(zxbcdt[:, D_INNER + CONV_DIM:] + p['dt_bias'])
        xbc = xbc * p['conv_w'] + p['conv_b']
        xbc = xbc * jax.nn.sigmoid(xbc)
        xs = xbc[:, :D_INNER]
        bs = xbc[:, D_INNER:D_INNER + D_STATE]
        cs = xbc[:, D_INNER + D_STATE:]
        cb = jnp.sum(bs * cs, -1, keepdims=True)
        y = xs * (dt * cb + p['D'])
        yg = y * (z * jax.nn.sigmoid(z))
        yn = yg / jnp.sqrt(jnp.mean(yg * yg, -1, keepdims=True) + GN_EPS) * p['gn_w']
        x1 = x + yn @ p['w_out']
        h2 = p['n2_w'] * x1 / jnp.sqrt(jnp.sum(x1 * x1, -1, keepdims=True) + RMS_EPS)
        m = jax.nn.gelu(h2 @ p['w1'] + p['b1'], approximate=False) @ p['w2'] + p['b2']
        x = x1 + m
    return x


# --------------------------------- main ---------------------------------------
if __name__ == "__main__":
    key = jax.random.PRNGKey(0)
    k_emb, k_par = jax.random.split(key)

    B, S = 2, 8
    embeddings = jax.random.normal(k_emb, (B, S, D_MODEL), jnp.float32)
    lengths = jnp.array([5, 8], jnp.int32)
    attention_mask = (jnp.arange(S)[None, :] < lengths[:, None]).astype(jnp.float32)

    params = init_params(k_par)
    packed = pack_params(params)

    fwd = jax.jit(submodel3_forward)
    out = fwd(embeddings, attention_mask, packed)
    out = jax.block_until_ready(out)

    ref = _reference_forward(embeddings, attention_mask, params)
    assert out.shape == (B, D_MODEL), out.shape
    assert jnp.allclose(out, ref, rtol=1e-4, atol=1e-4), float(jnp.max(jnp.abs(out - ref)))

    print("KERNEL_OK")
</pallas_src>

<mosaic_0001>
module attributes {stable_mosaic.version = 11 : i64} {
  func.func @_fused_kernel(%arg0: memref<2x8x32xf32, #tpu.memory_space<vmem>>, %arg1: memref<2x8xf32, #tpu.memory_space<vmem>>, %arg2: memref<6x2xf32, #tpu.memory_space<smem>>, %arg3: memref<6x12x128xf32, #tpu.memory_space<vmem>>, %arg4: memref<6x32x64xf32, #tpu.memory_space<vmem>>, %arg5: memref<6x32x64xf32, #tpu.memory_space<vmem>>, %arg6: memref<6x32x16xf32, #tpu.memory_space<vmem>>, %arg7: memref<6x32x16xf32, #tpu.memory_space<vmem>>, %arg8: memref<6x64x32xf32, #tpu.memory_space<vmem>>, %arg9: memref<6x32x128xf32, #tpu.memory_space<vmem>>, %arg10: memref<6x128x32xf32, #tpu.memory_space<vmem>>, %arg11: memref<2x32xf32, #tpu.memory_space<vmem>>) attributes {dimension_semantics = [], scalar_prefetch = 0 : i64, scratch_operands = 0 : i64, tpu.core_type = #tpu.core_type<tc>} {
    %c0 = arith.constant 0 : index
    %c0_0 = arith.constant 0 : index
    %c0_1 = arith.constant 0 : index
    %0 = vector.load %arg0[%c0, %c0_0, %c0_1] : memref<2x8x32xf32, #tpu.memory_space<vmem>>, vector<2x8x32xf32>
    %c0_2 = arith.constant 0 : index
    %c0_3 = arith.constant 0 : index
    %1 = vector.load %arg1[%c0_2, %c0_3] : memref<2x8xf32, #tpu.memory_space<vmem>>, vector<2x8xf32>
    %2 = vector.shape_cast %1 : vector<2x8xf32> to vector<2x8x1xf32>
    %3 = vector.broadcast %2 : vector<2x8x1xf32> to vector<2x8x32xf32>
    %4 = arith.mulf %3, %0 : vector<2x8x32xf32>
    %cst = arith.constant dense<0.000000e+00> : vector<2xf32>
    %5 = vector.multi_reduction <add>, %1, %cst [1] : vector<2x8xf32> to vector<2xf32>
    %6 = vector.shape_cast %5 : vector<2xf32> to vector<2x1xf32>
    %cst_4 = arith.constant dense<0.000000e+00> : vector<2x32xf32>
    %7 = vector.multi_reduction <add>, %4, %cst_4 [1] : vector<2x8x32xf32> to vector<2x32xf32>
    %cst_5 = arith.constant 9.99999993E-9 : f32
    %8 = vector.broadcast %cst_5 : f32 to vector<2x1xf32>
    %9 = arith.addf %6, %8 : vector<2x1xf32>
    %10 = vector.broadcast %9 : vector<2x1xf32> to vector<2x32xf32>
    %11 = arith.divf %7, %10 : vector<2x32xf32>
    %c0_6 = arith.constant 0 : index
    %c0_7 = arith.constant 0 : index
    %c0_8 = arith.constant 0 : index
    %12 = vector.load %arg3[%c0_6, %c0_7, %c0_8] : memref<6x12x128xf32, #tpu.memory_space<vmem>>, vector<1x1x32xf32>
    %13 = vector.shape_cast %12 : vector<1x1x32xf32> to vector<1x32xf32>
    %c0_9 = arith.constant 0 : index
    %c1 = arith.constant 1 : index
    %c0_10 = arith.constant 0 : index
    %14 = vector.load %arg3[%c0_9, %c1, %c0_10] : memref<6x12x128xf32, #tpu.memory_space<vmem>>, vector<1x1x32xf32>
    %15 = vector.shape_cast %14 : vector<1x1x32xf32> to vector<1x32xf32>
    %c0_11 = arith.constant 0 : index
    %c2 = arith.constant 2 : index
    %c0_12 = arith.constant 0 : index
    %16 = vector.load %arg3[%c0_11, %c2, %c0_12] : memref<6x12x128xf32, #tpu.memory_space<vmem>>, vector<1x1x64xf32>
    %17 = vector.shape_cast %16 : vector<1x1x64xf32> to vector<1x64xf32>
    %c0_13 = arith.constant 0 : index
    %c3 = arith.constant 3 : index
    %c0_14 = arith.constant 0 : index
    %18 = vector.load %arg3[%c0_13, %c3, %c0_14] : memref<6x12x128xf32, #tpu.memory_space<vmem>>, vector<1x1x64xf32>
    %19 = vector.shape_cast %18 : vector<1x1x64xf32> to vector<1x64xf32>
    %c0_15 = arith.constant 0 : index
    %c4 = arith.constant 4 : index
    %c0_16 = arith.constant 0 : index
    %20 = vector.load %arg3[%c0_15, %c4, %c0_16] : memref<6x12x128xf32, #tpu.memory_space<vmem>>, vector<1x1x64xf32>
    %21 = vector.shape_cast %20 : vector<1x1x64xf32> to vector<1x64xf32>
    %c0_17 = arith.constant 0 : index
    %c5 = arith.constant 5 : index
    %c0_18 = arith.constant 0 : index
    %22 = vector.load %arg3[%c0_17, %c5, %c0_18] : memref<6x12x128xf32, #tpu.memory_space<vmem>>, vector<1x1x16xf32>
    %23 = vector.shape_cast %22 : vector<1x1x16xf32> to vector<1x16xf32>
    %c0_19 = arith.constant 0 : index
    %c6 = arith.constant 6 : index
    %c0_20 = arith.constant 0 : index
    %24 = vector.load %arg3[%c0_19, %c6, %c0_20] : memref<6x12x128xf32, #tpu.memory_space<vmem>>, vector<1x1x16xf32>
    %25 = vector.shape_cast %24 : vector<1x1x16xf32> to vector<1x16xf32>
    %c0_21 = arith.constant 0 : index
    %c7 = arith.constant 7 : index
    %c0_22 = arith.constant 0 : index
    %26 = vector.load %arg3[%c0_21, %c7, %c0_22] : memref<6x12x128xf32, #tpu.memory_space<vmem>>, vector<1x1x16xf32>
    %27 = vector.shape_cast %26 : vector<1x1x16xf32> to vector<1x16xf32>
    %c0_23 = arith.constant 0 : index
    %c8 = arith.constant 8 : index
    %c0_24 = arith.constant 0 : index
    %28 = vector.load %arg3[%c0_23, %c8, %c0_24] : memref<6x12x128xf32, #tpu.memory_space<vmem>>, vector<1x1x16xf32>
    %29 = vector.shape_cast %28 : vector<1x1x16xf32> to vector<1x16xf32>
    %c0_25 = arith.constant 0 : index
    %c9 = arith.constant 9 : index
    %c0_26 = arith.constant 0 : index
    %30 = vector.load %arg3[%c0_25, %c9, %c0_26] : memref<6x12x128xf32, #tpu.memory_space<vmem>>, vector<1x1x128xf32>
    %31 = vector.shape_cast %30 : vector<1x1x128xf32> to vector<1x128xf32>
    %c0_27 = arith.constant 0 : index
    %c10 = arith.constant 10 : index
    %c0_28 = arith.constant 0 : index
    %32 = vector.load %arg3[%c0_27, %c10, %c0_28] : memref<6x12x128xf32, #tpu.memory_space<vmem>>, vector<1x1x32xf32>
    %33 = vector.shape_cast %32 : vector<1x1x32xf32> to vector<1x32xf32>
    %c0_29 = arith.constant 0 : index
    %c11 = arith.constant 11 : index
    %c0_30 = arith.constant 0 : index
    %34 = vector.load %arg3[%c0_29, %c11, %c0_30] : memref<6x12x128xf32, #tpu.memory_space<vmem>>, vector<1x1x32xf32>
    %35 = vector.shape_cast %34 : vector<1x1x32xf32> to vector<1x32xf32>
    %c0_31 = arith.constant 0 : index
    %c0_32 = arith.constant 0 : index
    %36 = memref.load %arg2[%c0_31, %c0_32] : memref<6x2xf32, #tpu.memory_space<smem>>
    %c0_33 = arith.constant 0 : index
    %c1_34 = arith.constant 1 : index
    %37 = memref.load %arg2[%c0_33, %c1_34] : memref<6x2xf32, #tpu.memory_space<smem>>
    %38 = vector.broadcast %13 : vector<1x32xf32> to vector<2x32xf32>
    %39 = arith.mulf %38, %11 : vector<2x32xf32>
    %40 = arith.mulf %11, %11 : vector<2x32xf32>
    %cst_35 = arith.constant dense<0.000000e+00> : vector<2xf32>
    %41 = vector.multi_reduction <add>, %40, %cst_35 [1] : vector<2x32xf32> to vector<2xf32>
    %42 = vector.shape_cast %41 : vector<2xf32> to vector<2x1xf32>
    %cst_36 = arith.constant 9.99999997E-7 : f32
    %43 = vector.broadcast %cst_36 : f32 to vector<2x1xf32>
    %44 = arith.addf %42, %43 : vector<2x1xf32>
    %45 = math.rsqrt %44 : vector<2x1xf32>
    %46 = vector.broadcast %45 : vector<2x1xf32> to vector<2x32xf32>
    %47 = arith.mulf %39, %46 : vector<2x32xf32>
    %c0_37 = arith.constant 0 : index
    %c0_38 = arith.constant 0 : index
    %c0_39 = arith.constant 0 : index
    %48 = vector.load %arg4[%c0_37, %c0_38, %c0_39] : memref<6x32x64xf32, #tpu.memory_space<vmem>>, vector<1x32x64xf32>
    %49 = vector.shape_cast %48 : vector<1x32x64xf32> to vector<32x64xf32>
    %cst_40 = arith.constant dense<0.000000e+00> : vector<2x64xf32>
    %50 = tpu.matmul %47, %49, %cst_40 {dimension_numbers = #tpu.dot_dimension_numbers<[1], [0], [0], [1], [0, 0, 1, 1], [], []>} : vector<2x32xf32>, vector<32x64xf32>, vector<2x64xf32> -> vector<2x64xf32>
    %c0_41 = arith.constant 0 : index
    %c0_42 = arith.constant 0 : index
    %c0_43 = arith.constant 0 : index
    %51 = vector.load %arg5[%c0_41, %c0_42, %c0_43] : memref<6x32x64xf32, #tpu.memory_space<vmem>>, vector<1x32x64xf32>
    %52 = vector.shape_cast %51 : vector<1x32x64xf32> to vector<32x64xf32>
    %cst_44 = arith.constant dense<0.000000e+00> : vector<2x64xf32>
    %53 = tpu.matmul %47, %52, %cst_44 {dimension_numbers = #tpu.dot_dimension_numbers<[1], [0], [0], [1], [0, 0, 1, 1], [], []>} : vector<2x32xf32>, vector<32x64xf32>, vector<2x64xf32> -> vector<2x64xf32>
    %c0_45 = arith.constant 0 : index
    %c0_46 = arith.constant 0 : index
    %c0_47 = arith.constant 0 : index
    %54 = vector.load %arg6[%c0_45, %c0_46, %c0_47] : memref<6x32x16xf32, #tpu.memory_space<vmem>>, vector<1x32x16xf32>
    %55 = vector.shape_cast %54 : vector<1x32x16xf32> to vector<32x16xf32>
    %cst_48 = arith.constant dense<0.000000e+00> : vector<2x16xf32>
    %56 = tpu.matmul %47, %55, %cst_48 {dimension_numbers = #tpu.dot_dimension_numbers<[1], [0], [0], [1], [0, 0, 1, 1], [], []>} : vector<2x32xf32>, vector<32x16xf32>, vector<2x16xf32> -> vector<2x16xf32>
    %c0_49 = arith.constant 0 : index
    %c0_50 = arith.constant 0 : index
    %c0_51 = arith.constant 0 : index
    %57 = vector.load %arg7[%c0_49, %c0_50, %c0_51] : memref<6x32x16xf32, #tpu.memory_space<vmem>>, vector<1x32x16xf32>
    %58 = vector.shape_cast %57 : vector<1x32x16xf32> to vector<32x16xf32>
    %cst_52 = arith.constant dense<0.000000e+00> : vector<2x16xf32>
    %59 = tpu.matmul %47, %58, %cst_52 {dimension_numbers = #tpu.dot_dimension_numbers<[1], [0], [0], [1], [0, 0, 1, 1], [], []>} : vector<2x32xf32>, vector<32x16xf32>, vector<2x16xf32> -> vector<2x16xf32>
    %60 = vector.broadcast %35 : vector<1x32xf32> to vector<2x32xf32>
    %61 = arith.mulf %47, %60 : vector<2x32xf32>
    %cst_53 = arith.constant dense<0.000000e+00> : vector<2xf32>
    %62 = vector.multi_reduction <add>, %61, %cst_53 [1] : vector<2x32xf32> to vector<2xf32>
    %63 = vector.shape_cast %62 : vector<2xf32> to vector<2x1xf32>
    %64 = vector.broadcast %36 : f32 to vector<2x1xf32>
    %65 = arith.addf %63, %64 : vector<2x1xf32>
    %cst_54 = arith.constant 0.000000e+00 : f32
    %66 = vector.broadcast %cst_54 : f32 to vector<2x1xf32>
    %67 = arith.maximumf %65, %66 : vector<2x1xf32>
    %68 = math.absf %65 : vector<2x1xf32>
    %cst_55 = arith.constant 0.000000e+00 : f32
    %69 = vector.broadcast %cst_55 : f32 to vector<2x1xf32>
    %70 = arith.subf %69, %68 : vector<2x1xf32>
    %71 = math.exp %70 : vector<2x1xf32>
    %cst_56 = arith.constant 1.000000e+00 : f32
    %72 = vector.broadcast %cst_56 : f32 to vector<2x1xf32>
    %73 = arith.addf %72, %71 : vector<2x1xf32>
    %74 = math.log %73 : vector<2x1xf32>
    %75 = arith.addf %67, %74 : vector<2x1xf32>
    %76 = vector.broadcast %19 : vector<1x64xf32> to vector<2x64xf32>
    %77 = arith.mulf %53, %76 : vector<2x64xf32>
    %78 = vector.broadcast %21 : vector<1x64xf32> to vector<2x64xf32>
    %79 = arith.addf %77, %78 : vector<2x64xf32>
    %80 = arith.negf %79 : vector<2x64xf32>
    %81 = math.exp %80 : vector<2x64xf32>
    %cst_57 = arith.constant 1.000000e+00 : f32
    %82 = vector.broadcast %cst_57 : f32 to vector<2x64xf32>
    %83 = arith.addf %82, %81 : vector<2x64xf32>
    %84 = arith.divf %82, %83 : vector<2x64xf32>
    %85 = arith.mulf %79, %84 : vector<2x64xf32>
    %86 = vector.broadcast %23 : vector<1x16xf32> to vector<2x16xf32>
    %87 = arith.mulf %56, %86 : vector<2x16xf32>
    %88 = vector.broadcast %25 : vector<1x16xf32> to vector<2x16xf32>
    %89 = arith.addf %87, %88 : vector<2x16xf32>
    %90 = arith.negf %89 : vector<2x16xf32>
    %91 = math.exp %90 : vector<2x16xf32>
    %cst_58 = arith.constant 1.000000e+00 : f32
    %92 = vector.broadcast %cst_58 : f32 to vector<2x16xf32>
    %93 = arith.addf %92, %91 : vector<2x16xf32>
    %94 = arith.divf %92, %93 : vector<2x16xf32>
    %95 = arith.mulf %89, %94 : vector<2x16xf32>
    %96 = vector.broadcast %27 : vector<1x16xf32> to vector<2x16xf32>
    %97 = arith.mulf %59, %96 : vector<2x16xf32>
    %98 = vector.broadcast %29 : vector<1x16xf32> to vector<2x16xf32>
    %99 = arith.addf %97, %98 : vector<2x16xf32>
    %100 = arith.negf %99 : vector<2x16xf32>
    %101 = math.exp %100 : vector<2x16xf32>
    %cst_59 = arith.constant 1.000000e+00 : f32
    %102 = vector.broadcast %cst_59 : f32 to vector<2x16xf32>
    %103 = arith.addf %102, %101 : vector<2x16xf32>
    %104 = arith.divf %102, %103 : vector<2x16xf32>
    %105 = arith.mulf %99, %104 : vector<2x16xf32>
    %106 = arith.mulf %95, %105 : vector<2x16xf32>
    %cst_60 = arith.constant dense<0.000000e+00> : vector<2xf32>
    %107 = vector.multi_reduction <add>, %106, %cst_60 [1] : vector<2x16xf32> to vector<2xf32>
    %108 = vector.shape_cast %107 : vector<2xf32> to vector<2x1xf32>
    %109 = arith.mulf %75, %108 : vector<2x1xf32>
    %110 = vector.broadcast %37 : f32 to vector<2x1xf32>
    %111 = arith.addf %109, %110 : vector<2x1xf32>
    %112 = vector.broadcast %111 : vector<2x1xf32> to vector<2x64xf32>
    %113 = arith.mulf %85, %112 : vector<2x64xf32>
    %114 = arith.negf %50 : vector<2x64xf32>
    %115 = math.exp %114 : vector<2x64xf32>
    %cst_61 = arith.constant 1.000000e+00 : f32
    %116 = vector.broadcast %cst_61 : f32 to vector<2x64xf32>
    %117 = arith.addf %116, %115 : vector<2x64xf32>
    %118 = arith.divf %116, %117 : vector<2x64xf32>
    %119 = arith.mulf %50, %118 : vector<2x64xf32>
    %120 = arith.mulf %113, %119 : vector<2x64xf32>
    %121 = arith.mulf %120, %120 : vector<2x64xf32>
    %cst_62 = arith.constant dense<0.000000e+00> : vector<2xf32>
    %122 = vector.multi_reduction <add>, %121, %cst_62 [1] : vector<2x64xf32> to vector<2xf32>
    %123 = vector.shape_cast %122 : vector<2xf32> to vector<2x1xf32>
    %cst_63 = arith.constant 6.400000e+01 : f32
    %124 = vector.broadcast %cst_63 : f32 to vector<2x1xf32>
    %125 = arith.divf %123, %124 : vector<2x1xf32>
    %cst_64 = arith.constant 9.99999974E-6 : f32
    %126 = vector.broadcast %cst_64 : f32 to vector<2x1xf32>
    %127 = arith.addf %125, %126 : vector<2x1xf32>
    %128 = math.rsqrt %127 : vector<2x1xf32>
    %129 = vector.broadcast %128 : vector<2x1xf32> to vector<2x64xf32>
    %130 = arith.mulf %120, %129 : vector<2x64xf32>
    %131 = vector.broadcast %17 : vector<1x64xf32> to vector<2x64xf32>
    %132 = arith.mulf %130, %131 : vector<2x64xf32>
    %c0_65 = arith.constant 0 : index
    %c0_66 = arith.constant 0 : index
    %c0_67 = arith.constant 0 : index
    %133 = vector.load %arg8[%c0_65, %c0_66, %c0_67] : memref<6x64x32xf32, #tpu.memory_space<vmem>>, vector<1x64x32xf32>
    %134 = vector.shape_cast %133 : vector<1x64x32xf32> to vector<64x32xf32>
    %cst_68 = arith.constant dense<0.000000e+00> : vector<2x32xf32>
    %135 = tpu.matmul %132, %134, %cst_68 {dimension_numbers = #tpu.dot_dimension_numbers<[1], [0], [0], [1], [0, 0, 1, 1], [], []>} : vector<2x64xf32>, vector<64x32xf32>, vector<2x32xf32> -> vector<2x32xf32>
    %136 = arith.addf %11, %135 : vector<2x32xf32>
    %137 = vector.broadcast %15 : vector<1x32xf32> to vector<2x32xf32>
    %138 = arith.mulf %137, %136 : vector<2x32xf32>
    %139 = arith.mulf %136, %136 : vector<2x32xf32>
    %cst_69 = arith.constant dense<0.000000e+00> : vector<2xf32>
    %140 = vector.multi_reduction <add>, %139, %cst_69 [1] : vector<2x32xf32> to vector<2xf32>
    %141 = vector.shape_cast %140 : vector<2xf32> to vector<2x1xf32>
    %cst_70 = arith.constant 9.99999997E-7 : f32
    %142 = vector.broadcast %cst_70 : f32 to vector<2x1xf32>
    %143 = arith.addf %141, %142 : vector<2x1xf32>
    %144 = math.rsqrt %143 : vector<2x1xf32>
    %145 = vector.broadcast %144 : vector<2x1xf32> to vector<2x32xf32>
    %146 = arith.mulf %138, %145 : vector<2x32xf32>
    %c0_71 = arith.constant 0 : index
    %c0_72 = arith.constant 0 : index
    %c0_73 = arith.constant 0 : index
    %147 = vector.load %arg9[%c0_71, %c0_72, %c0_73] : memref<6x32x128xf32, #tpu.memory_space<vmem>>, vector<1x32x128xf32>
    %148 = vector.shape_cast %147 : vector<1x32x128xf32> to vector<32x128xf32>
    %cst_74 = arith.constant dense<0.000000e+00> : vector<2x128xf32>
    %149 = tpu.matmul %146, %148, %cst_74 {dimension_numbers = #tpu.dot_dimension_numbers<[1], [0], [0], [1], [0, 0, 1, 1], [], []>} : vector<2x32xf32>, vector<32x128xf32>, vector<2x128xf32> -> vector<2x128xf32>
    %150 = vector.broadcast %31 : vector<1x128xf32> to vector<2x128xf32>
    %151 = arith.addf %149, %150 : vector<2x128xf32>
    %cst_75 = arith.constant 5.000000e-01 : f32
    %152 = vector.broadcast %cst_75 : f32 to vector<2x128xf32>
    %153 = arith.mulf %152, %151 : vector<2x128xf32>
    %cst_76 = arith.constant 0.707106769 : f32
    %154 = vector.broadcast %cst_76 : f32 to vector<2x128xf32>
    %155 = arith.mulf %151, %154 : vector<2x128xf32>
    %156 = math.erf %155 : vector<2x128xf32>
    %cst_77 = arith.constant 1.000000e+00 : f32
    %157 = vector.broadcast %cst_77 : f32 to vector<2x128xf32>
    %158 = arith.addf %157, %156 : vector<2x128xf32>
    %159 = arith.mulf %153, %158 : vector<2x128xf32>
    %c0_78 = arith.constant 0 : index
    %c0_79 = arith.constant 0 : index
    %c0_80 = arith.constant 0 : index
    %160 = vector.load %arg10[%c0_78, %c0_79, %c0_80] : memref<6x128x32xf32, #tpu.memory_space<vmem>>, vector<1x128x32xf32>
    %161 = vector.shape_cast %160 : vector<1x128x32xf32> to vector<128x32xf32>
    %cst_81 = arith.constant dense<0.000000e+00> : vector<2x32xf32>
    %162 = tpu.matmul %159, %161, %cst_81 {dimension_numbers = #tpu.dot_dimension_numbers<[1], [0], [0], [1], [0, 0, 1, 1], [], []>} : vector<2x128xf32>, vector<128x32xf32>, vector<2x32xf32> -> vector<2x32xf32>
    %163 = vector.broadcast %33 : vector<1x32xf32> to vector<2x32xf32>
    %164 = arith.addf %162, %163 : vector<2x32xf32>
    %165 = arith.addf %136, %164 : vector<2x32xf32>
    %c1_82 = arith.constant 1 : index
    %c0_83 = arith.constant 0 : index
    %c0_84 = arith.constant 0 : index
    %166 = vector.load %arg3[%c1_82, %c0_83, %c0_84] : memref<6x12x128xf32, #tpu.memory_space<vmem>>, vector<1x1x32xf32>
    %167 = vector.shape_cast %166 : vector<1x1x32xf32> to vector<1x32xf32>
    %c1_85 = arith.constant 1 : index
    %c1_86 = arith.constant 1 : index
    %c0_87 = arith.constant 0 : index
    %168 = vector.load %arg3[%c1_85, %c1_86, %c0_87] : memref<6x12x128xf32, #tpu.memory_space<vmem>>, vector<1x1x32xf32>
    %169 = vector.shape_cast %168 : vector<1x1x32xf32> to vector<1x32xf32>
    %c1_88 = arith.constant 1 : index
    %c2_89 = arith.constant 2 : index
    %c0_90 = arith.constant 0 : index
    %170 = vector.load %arg3[%c1_88, %c2_89, %c0_90] : memref<6x12x128xf32, #tpu.memory_space<vmem>>, vector<1x1x64xf32>
    %171 = vector.shape_cast %170 : vector<1x1x64xf32> to vector<1x64xf32>
    %c1_91 = arith.constant 1 : index
    %c3_92 = arith.constant 3 : index
    %c0_93 = arith.constant 0 : index
    %172 = vector.load %arg3[%c1_91, %c3_92, %c0_93] : memref<6x12x128xf32, #tpu.memory_space<vmem>>, vector<1x1x64xf32>
    %173 = vector.shape_cast %172 : vector<1x1x64xf32> to vector<1x64xf32>
    %c1_94 = arith.constant 1 : index
    %c4_95 = arith.constant 4 : index
    %c0_96 = arith.constant 0 : index
    %174 = vector.load %arg3[%c1_94, %c4_95, %c0_96] : memref<6x12x128xf32, #tpu.memory_space<vmem>>, vector<1x1x64xf32>
    %175 = vector.shape_cast %174 : vector<1x1x64xf32> to vector<1x64xf32>
    %c1_97 = arith.constant 1 : index
    %c5_98 = arith.constant 5 : index
    %c0_99 = arith.constant 0 : index
    %176 = vector.load %arg3[%c1_97, %c5_98, %c0_99] : memref<6x12x128xf32, #tpu.memory_space<vmem>>, vector<1x1x16xf32>
    %177 = vector.shape_cast %176 : vector<1x1x16xf32> to vector<1x16xf32>
    %c1_100 = arith.constant 1 : index
    %c6_101 = arith.constant 6 : index
    %c0_102 = arith.constant 0 : index
    %178 = vector.load %arg3[%c1_100, %c6_101, %c0_102] : memref<6x12x128xf32, #tpu.memory_space<vmem>>, vector<1x1x16xf32>
    %179 = vector.shape_cast %178 : vector<1x1x16xf32> to vector<1x16xf32>
    %c1_103 = arith.constant 1 : index
    %c7_104 = arith.constant 7 : index
    %c0_105 = arith.constant 0 : index
    %180 = vector.load %arg3[%c1_103, %c7_104, %c0_105] : memref<6x12x128xf32, #tpu.memory_space<vmem>>, vector<1x1x16xf32>
    %181 = vector.shape_cast %180 : vector<1x1x16xf32> to vector<1x16xf32>
    %c1_106 = arith.constant 1 : index
    %c8_107 = arith.constant 8 : index
    %c0_108 = arith.constant 0 : index
    %182 = vector.load %arg3[%c1_106, %c8_107, %c0_108] : memref<6x12x128xf32, #tpu.memory_space<vmem>>, vector<1x1x16xf32>
    %183 = vector.shape_cast %182 : vector<1x1x16xf32> to vector<1x16xf32>
    %c1_109 = arith.constant 1 : index
    %c9_110 = arith.constant 9 : index
    %c0_111 = arith.constant 0 : index
    %184 = vector.load %arg3[%c1_109, %c9_110, %c0_111] : memref<6x12x128xf32, #tpu.memory_space<vmem>>, vector<1x1x128xf32>
    %185 = vector.shape_cast %184 : vector<1x1x128xf32> to vector<1x128xf32>
    %c1_112 = arith.constant 1 : index
    %c10_113 = arith.constant 10 : index
    %c0_114 = arith.constant 0 : index
    %186 = vector.load %arg3[%c1_112, %c10_113, %c0_114] : memref<6x12x128xf32, #tpu.memory_space<vmem>>, vector<1x1x32xf32>
    %187 = vector.shape_cast %186 : vector<1x1x32xf32> to vector<1x32xf32>
    %c1_115 = arith.constant 1 : index
    %c11_116 = arith.constant 11 : index
    %c0_117 = arith.constant 0 : index
    %188 = vector.load %arg3[%c1_115, %c11_116, %c0_117] : memref<6x12x128xf32, #tpu.memory_space<vmem>>, vector<1x1x32xf32>
    %189 = vector.shape_cast %188 : vector<1x1x32xf32> to vector<1x32xf32>
    %c1_118 = arith.constant 1 : index
    %c0_119 = arith.constant 0 : index
    %190 = memref.load %arg2[%c1_118, %c0_119] : memref<6x2xf32, #tpu.memory_space<smem>>
    %c1_120 = arith.constant 1 : index
    %c1_121 = arith.constant 1 : index
    %191 = memref.load %arg2[%c1_120, %c1_121] : memref<6x2xf32, #tpu.memory_space<smem>>
    %192 = vector.broadcast %167 : vector<1x32xf32> to vector<2x32xf32>
    %193 = arith.mulf %192, %165 : vector<2x32xf32>
    %194 = arith.mulf %165, %165 : vector<2x32xf32>
    %cst_122 = arith.constant dense<0.000000e+00> : vector<2xf32>
    %195 = vector.multi_reduction <add>, %194, %cst_122 [1] : vector<2x32xf32> to vector<2xf32>
    %196 = vector.shape_cast %195 : vector<2xf32> to vector<2x1xf32>
    %cst_123 = arith.constant 9.99999997E-7 : f32
    %197 = vector.broadcast %cst_123 : f32 to vector<2x1xf32>
    %198 = arith.addf %196, %197 : vector<2x1xf32>
    %199 = math.rsqrt %198 : vector<2x1xf32>
    %200 = vector.broadcast %199 : vector<2x1xf32> to vector<2x32xf32>
    %201 = arith.mulf %193, %200 : vector<2x32xf32>
    %c1_124 = arith.constant 1 : index
    %c0_125 = arith.constant 0 : index
    %c0_126 = arith.constant 0 : index
    %202 = vector.load %arg4[%c1_124, %c0_125, %c0_126] : memref<6x32x64xf32, #tpu.memory_space<vmem>>, vector<1x32x64xf32>
    %203 = vector.shape_cast %202 : vector<1x32x64xf32> to vector<32x64xf32>
    %cst_127 = arith.constant dense<0.000000e+00> : vector<2x64xf32>
    %204 = tpu.matmul %201, %203, %cst_127 {dimension_numbers = #tpu.dot_dimension_numbers<[1], [0], [0], [1], [0, 0, 1, 1], [], []>} : vector<2x32xf32>, vector<32x64xf32>, vector<2x64xf32> -> vector<2x64xf32>
    %c1_128 = arith.constant 1 : index
    %c0_129 = arith.constant 0 : index
    %c0_130 = arith.constant 0 : index
    %205 = vector.load %arg5[%c1_128, %c0_129, %c0_130] : memref<6x32x64xf32, #tpu.memory_space<vmem>>, vector<1x32x64xf32>
    %206 = vector.shape_cast %205 : vector<1x32x64xf32> to vector<32x64xf32>
    %cst_131 = arith.constant dense<0.000000e+00> : vector<2x64xf32>
    %207 = tpu.matmul %201, %206, %cst_131 {dimension_numbers = #tpu.dot_dimension_numbers<[1], [0], [0], [1], [0, 0, 1, 1], [], []>} : vector<2x32xf32>, vector<32x64xf32>, vector<2x64xf32> -> vector<2x64xf32>
    %c1_132 = arith.constant 1 : index
    %c0_133 = arith.constant 0 : index
    %c0_134 = arith.constant 0 : index
    %208 = vector.load %arg6[%c1_132, %c0_133, %c0_134] : memref<6x32x16xf32, #tpu.memory_space<vmem>>, vector<1x32x16xf32>
    %209 = vector.shape_cast %208 : vector<1x32x16xf32> to vector<32x16xf32>
    %cst_135 = arith.constant dense<0.000000e+00> : vector<2x16xf32>
    %210 = tpu.matmul %201, %209, %cst_135 {dimension_numbers = #tpu.dot_dimension_numbers<[1], [0], [0], [1], [0, 0, 1, 1], [], []>} : vector<2x32xf32>, vector<32x16xf32>, vector<2x16xf32> -> vector<2x16xf32>
    %c1_136 = arith.constant 1 : index
    %c0_137 = arith.constant 0 : index
    %c0_138 = arith.constant 0 : index
    %211 = vector.load %arg7[%c1_136, %c0_137, %c0_138] : memref<6x32x16xf32, #tpu.memory_space<vmem>>, vector<1x32x16xf32>
    %212 = vector.shape_cast %211 : vector<1x32x16xf32> to vector<32x16xf32>
    %cst_139 = arith.constant dense<0.000000e+00> : vector<2x16xf32>
    %213 = tpu.matmul %201, %212, %cst_139 {dimension_numbers = #tpu.dot_dimension_numbers<[1], [0], [0], [1], [0, 0, 1, 1], [], []>} : vector<2x32xf32>, vector<32x16xf32>, vector<2x16xf32> -> vector<2x16xf32>
    %214 = vector.broadcast %189 : vector<1x32xf32> to vector<2x32xf32>
    %215 = arith.mulf %201, %214 : vector<2x32xf32>
    %cst_140 = arith.constant dense<0.000000e+00> : vector<2xf32>
    %216 = vector.multi_reduction <add>, %215, %cst_140 [1] : vector<2x32xf32> to vector<2xf32>
    %217 = vector.shape_cast %216 : vector<2xf32> to vector<2x1xf32>
    %218 = vector.broadcast %190 : f32 to vector<2x1xf32>
    %219 = arith.addf %217, %218 : vector<2x1xf32>
    %cst_141 = arith.constant 0.000000e+00 : f32
    %220 = vector.broadcast %cst_141 : f32 to vector<2x1xf32>
    %221 = arith.maximumf %219, %220 : vector<2x1xf32>
    %222 = math.absf %219 : vector<2x1xf32>
    %cst_142 = arith.constant 0.000000e+00 : f32
    %223 = vector.broadcast %cst_142 : f32 to vector<2x1xf32>
    %224 = arith.subf %223, %222 : vector<2x1xf32>
    %225 = math.exp %224 : vector<2x1xf32>
    %cst_143 = arith.constant 1.000000e+00 : f32
    %226 = vector.broadcast %cst_143 : f32 to vector<2x1xf32>
    %227 = arith.addf %226, %225 : vector<2x1xf32>
    %228 = math.log %227 : vector<2x1xf32>
    %229 = arith.addf %221, %228 : vector<2x1xf32>
    %230 = vector.broadcast %173 : vector<1x64xf32> to vector<2x64xf32>
    %231 = arith.mulf %207, %230 : vector<2x64xf32>
    %232 = vector.broadcast %175 : vector<1x64xf32> to vector<2x64xf32>
    %233 = arith.addf %231, %232 : vector<2x64xf32>
    %234 = arith.negf %233 : vector<2x64xf32>
    %235 = math.exp %234 : vector<2x64xf32>
    %cst_144 = arith.constant 1.000000e+00 : f32
    %236 = vector.broadcast %cst_144 : f32 to vector<2x64xf32>
    %237 = arith.addf %236, %235 : vector<2x64xf32>
    %238 = arith.divf %236, %237 : vector<2x64xf32>
    %239 = arith.mulf %233, %238 : vector<2x64xf32>
    %240 = vector.broadcast %177 : vector<1x16xf32> to vector<2x16xf32>
    %241 = arith.mulf %210, %240 : vector<2x16xf32>
    %242 = vector.broadcast %179 : vector<1x16xf32> to vector<2x16xf32>
    %243 = arith.addf %241, %242 : vector<2x16xf32>
    %244 = arith.negf %243 : vector<2x16xf32>
    %245 = math.exp %244 : vector<2x16xf32>
    %cst_145 = arith.constant 1.000000e+00 : f32
    %246 = vector.broadcast %cst_145 : f32 to vector<2x16xf32>
    %247 = arith.addf %246, %245 : vector<2x16xf32>
    %248 = arith.divf %246, %247 : vector<2x16xf32>
    %249 = arith.mulf %243, %248 : vector<2x16xf32>
    %250 = vector.broadcast %181 : vector<1x16xf32> to vector<2x16xf32>
    %251 = arith.mulf %213, %250 : vector<2x16xf32>
    %252 = vector.broadcast %183 : vector<1x16xf32> to vector<2x16xf32>
    %253 = arith.addf %251, %252 : vector<2x16xf32>
    %254 = arith.negf %253 : vector<2x16xf32>
    %255 = math.exp %254 : vector<2x16xf32>
    %cst_146 = arith.constant 1.000000e+00 : f32
    %256 = vector.broadcast %cst_146 : f32 to vector<2x16xf32>
    %257 = arith.addf %256, %255 : vector<2x16xf32>
    %258 = arith.divf %256, %257 : vector<2x16xf32>
    %259 = arith.mulf %253, %258 : vector<2x16xf32>
    %260 = arith.mulf %249, %259 : vector<2x16xf32>
    %cst_147 = arith.constant dense<0.000000e+00> : vector<2xf32>
    %261 = vector.multi_reduction <add>, %260, %cst_147 [1] : vector<2x16xf32> to vector<2xf32>
    %262 = vector.shape_cast %261 : vector<2xf32> to vector<2x1xf32>
    %263 = arith.mulf %229, %262 : vector<2x1xf32>
    %264 = vector.broadcast %191 : f32 to vector<2x1xf32>
    %265 = arith.addf %263, %264 : vector<2x1xf32>
    %266 = vector.broadcast %265 : vector<2x1xf32> to vector<2x64xf32>
    %267 = arith.mulf %239, %266 : vector<2x64xf32>
    %268 = arith.negf %204 : vector<2x64xf32>
    %269 = math.exp %268 : vector<2x64xf32>
    %cst_148 = arith.constant 1.000000e+00 : f32
    %270 = vector.broadcast %cst_148 : f32 to vector<2x64xf32>
    %271 = arith.addf %270, %269 : vector<2x64xf32>
    %272 = arith.divf %270, %271 : vector<2x64xf32>
    %273 = arith.mulf %204, %272 : vector<2x64xf32>
    %274 = arith.mulf %267, %273 : vector<2x64xf32>
    %275 = arith.mulf %274, %274 : vector<2x64xf32>
    %cst_149 = arith.constant dense<0.000000e+00> : vector<2xf32>
    %276 = vector.multi_reduction <add>, %275, %cst_149 [1] : vector<2x64xf32> to vector<2xf32>
    %277 = vector.shape_cast %276 : vector<2xf32> to vector<2x1xf32>
    %cst_150 = arith.constant 6.400000e+01 : f32
    %278 = vector.broadcast %cst_150 : f32 to vector<2x1xf32>
    %279 = arith.divf %277, %278 : vector<2x1xf32>
    %cst_151 = arith.constant 9.99999974E-6 : f32
    %280 = vector.broadcast %cst_151 : f32 to vector<2x1xf32>
    %281 = arith.addf %279, %280 : vector<2x1xf32>
    %282 = math.rsqrt %281 : vector<2x1xf32>
    %283 = vector.broadcast %282 : vector<2x1xf32> to vector<2x64xf32>
    %284 = arith.mulf %274, %283 : vector<2x64xf32>
    %285 = vector.broadcast %171 : vector<1x64xf32> to vector<2x64xf32>
    %286 = arith.mulf %284, %285 : vector<2x64xf32>
    %c1_152 = arith.constant 1 : index
    %c0_153 = arith.constant 0 : index
    %c0_154 = arith.constant 0 : index
    %287 = vector.load %arg8[%c1_152, %c0_153, %c0_154] : memref<6x64x32xf32, #tpu.memory_space<vmem>>, vector<1x64x32xf32>
    %288 = vector.shape_cast %287 : vector<1x64x32xf32> to vector<64x32xf32>
    %cst_155 = arith.constant dense<0.000000e+00> : vector<2x32xf32>
    %289 = tpu.matmul %286, %288, %cst_155 {dimension_numbers = #tpu.dot_dimension_numbers<[1], [0], [0], [1], [0, 0, 1, 1], [], []>} : vector<2x64xf32>, vector<64x32xf32>, vector<2x32xf32> -> vector<2x32xf32>
    %290 = arith.addf %165, %289 : vector<2x32xf32>
    %291 = vector.broadcast %169 : vector<1x32xf32> to vector<2x32xf32>
    %292 = arith.mulf %291, %290 : vector<2x32xf32>
    %293 = arith.mulf %290, %290 : vector<2x32xf32>
    %cst_156 = arith.constant dense<0.000000e+00> : vector<2xf32>
    %294 = vector.multi_reduction <add>, %293, %cst_156 [1] : vector<2x32xf32> to vector<2xf32>
    %295 = vector.shape_cast %294 : vector<2xf32> to vector<2x1xf32>
    %cst_157 = arith.constant 9.99999997E-7 : f32
    %296 = vector.broadcast %cst_157 : f32 to vector<2x1xf32>
    %297 = arith.addf %295, %296 : vector<2x1xf32>
    %298 = math.rsqrt %297 : vector<2x1xf32>
    %299 = vector.broadcast %298 : vector<2x1xf32> to vector<2x32xf32>
    %300 = arith.mulf %292, %299 : vector<2x32xf32>
    %c1_158 = arith.constant 1 : index
    %c0_159 = arith.constant 0 : index
    %c0_160 = arith.constant 0 : index
    %301 = vector.load %arg9[%c1_158, %c0_159, %c0_160] : memref<6x32x128xf32, #tpu.memory_space<vmem>>, vector<1x32x128xf32>
    %302 = vector.shape_cast %301 : vector<1x32x128xf32> to vector<32x128xf32>
    %cst_161 = arith.constant dense<0.000000e+00> : vector<2x128xf32>
    %303 = tpu.matmul %300, %302, %cst_161 {dimension_numbers = #tpu.dot_dimension_numbers<[1], [0], [0], [1], [0, 0, 1, 1], [], []>} : vector<2x32xf32>, vector<32x128xf32>, vector<2x128xf32> -> vector<2x128xf32>
    %304 = vector.broadcast %185 : vector<1x128xf32> to vector<2x128xf32>
    %305 = arith.addf %303, %304 : vector<2x128xf32>
    %cst_162 = arith.constant 5.000000e-01 : f32
    %306 = vector.broadcast %cst_162 : f32 to vector<2x128xf32>
    %307 = arith.mulf %306, %305 : vector<2x128xf32>
    %cst_163 = arith.constant 0.707106769 : f32
    %308 = vector.broadcast %cst_163 : f32 to vector<2x128xf32>
    %309 = arith.mulf %305, %308 : vector<2x128xf32>
    %310 = math.erf %309 : vector<2x128xf32>
    %cst_164 = arith.constant 1.000000e+00 : f32
    %311 = vector.broadcast %cst_164 : f32 to vector<2x128xf32>
    %312 = arith.addf %311, %310 : vector<2x128xf32>
    %313 = arith.mulf %307, %312 : vector<2x128xf32>
    %c1_165 = arith.constant 1 : index
    %c0_166 = arith.constant 0 : index
    %c0_167 = arith.constant 0 : index
    %314 = vector.load %arg10[%c1_165, %c0_166, %c0_167] : memref<6x128x32xf32, #tpu.memory_space<vmem>>, vector<1x128x32xf32>
    %315 = vector.shape_cast %314 : vector<1x128x32xf32> to vector<128x32xf32>
    %cst_168 = arith.constant dense<0.000000e+00> : vector<2x32xf32>
    %316 = tpu.matmul %313, %315, %cst_168 {dimension_numbers = #tpu.dot_dimension_numbers<[1], [0], [0], [1], [0, 0, 1, 1], [], []>} : vector<2x128xf32>, vector<128x32xf32>, vector<2x32xf32> -> vector<2x32xf32>
    %317 = vector.broadcast %187 : vector<1x32xf32> to vector<2x32xf32>
    %318 = arith.addf %316, %317 : vector<2x32xf32>
    %319 = arith.addf %290, %318 : vector<2x32xf32>
    %c2_169 = arith.constant 2 : index
    %c0_170 = arith.constant 0 : index
    %c0_171 = arith.constant 0 : index
    %320 = vector.load %arg3[%c2_169, %c0_170, %c0_171] : memref<6x12x128xf32, #tpu.memory_space<vmem>>, vector<1x1x32xf32>
    %321 = vector.shape_cast %320 : vector<1x1x32xf32> to vector<1x32xf32>
    %c2_172 = arith.constant 2 : index
    %c1_173 = arith.constant 1 : index
    %c0_174 = arith.constant 0 : index
    %322 = vector.load %arg3[%c2_172, %c1_173, %c0_174] : memref<6x12x128xf32, #tpu.memory_space<vmem>>, vector<1x1x32xf32>
    %323 = vector.shape_cast %322 : vector<1x1x32xf32> to vector<1x32xf32>
    %c2_175 = arith.constant 2 : index
    %c2_176 = arith.constant 2 : index
    %c0_177 = arith.constant 0 : index
    %324 = vector.load %arg3[%c2_175, %c2_176, %c0_177] : memref<6x12x128xf32, #tpu.memory_space<vmem>>, vector<1x1x64xf32>
    %325 = vector.shape_cast %324 : vector<1x1x64xf32> to vector<1x64xf32>
    %c2_178 = arith.constant 2 : index
    %c3_179 = arith.constant 3 : index
    %c0_180 = arith.constant 0 : index
    %326 = vector.load %arg3[%c2_178, %c3_179, %c0_180] : memref<6x12x128xf32, #tpu.memory_space<vmem>>, vector<1x1x64xf32>
    %327 = vector.shape_cast %326 : vector<1x1x64xf32> to vector<1x64xf32>
    %c2_181 = arith.constant 2 : index
    %c4_182 = arith.constant 4 : index
    %c0_183 = arith.constant 0 : index
    %328 = vector.load %arg3[%c2_181, %c4_182, %c0_183] : memref<6x12x128xf32, #tpu.memory_space<vmem>>, vector<1x1x64xf32>
    %329 = vector.shape_cast %328 : vector<1x1x64xf32> to vector<1x64xf32>
    %c2_184 = arith.constant 2 : index
    %c5_185 = arith.constant 5 : index
    %c0_186 = arith.constant 0 : index
    %330 = vector.load %arg3[%c2_184, %c5_185, %c0_186] : memref<6x12x128xf32, #tpu.memory_space<vmem>>, vector<1x1x16xf32>
    %331 = vector.shape_cast %330 : vector<1x1x16xf32> to vector<1x16xf32>
    %c2_187 = arith.constant 2 : index
    %c6_188 = arith.constant 6 : index
    %c0_189 = arith.constant 0 : index
    %332 = vector.load %arg3[%c2_187, %c6_188, %c0_189] : memref<6x12x128xf32, #tpu.memory_space<vmem>>, vector<1x1x16xf32>
    %333 = vector.shape_cast %332 : vector<1x1x16xf32> to vector<1x16xf32>
    %c2_190 = arith.constant 2 : index
    %c7_191 = arith.constant 7 : index
    %c0_192 = arith.constant 0 : index
    %334 = vector.load %arg3[%c2_190, %c7_191, %c0_192] : memref<6x12x128xf32, #tpu.memory_space<vmem>>, vector<1x1x16xf32>
    %335 = vector.shape_cast %334 : vector<1x1x16xf32> to vector<1x16xf32>
    %c2_193 = arith.constant 2 : index
    %c8_194 = arith.constant 8 : index
    %c0_195 = arith.constant 0 : index
    %336 = vector.load %arg3[%c2_193, %c8_194, %c0_195] : memref<6x12x128xf32, #tpu.memory_space<vmem>>, vector<1x1x16xf32>
    %337 = vector.shape_cast %336 : vector<1x1x16xf32> to vector<1x16xf32>
    %c2_196 = arith.constant 2 : index
    %c9_197 = arith.constant 9 : index
    %c0_198 = arith.constant 0 : index
    %338 = vector.load %arg3[%c2_196, %c9_197, %c0_198] : memref<6x12x128xf32, #tpu.memory_space<vmem>>, vector<1x1x128xf32>
    %339 = vector.shape_cast %338 : vector<1x1x128xf32> to vector<1x128xf32>
    %c2_199 = arith.constant 2 : index
    %c10_200 = arith.constant 10 : index
    %c0_201 = arith.constant 0 : index
    %340 = vector.load %arg3[%c2_199, %c10_200, %c0_201] : memref<6x12x128xf32, #tpu.memory_space<vmem>>, vector<1x1x32xf32>
    %341 = vector.shape_cast %340 : vector<1x1x32xf32> to vector<1x32xf32>
    %c2_202 = arith.constant 2 : index
    %c11_203 = arith.constant 11 : index
    %c0_204 = arith.constant 0 : index
    %342 = vector.load %arg3[%c2_202, %c11_203, %c0_204] : memref<6x12x128xf32, #tpu.memory_space<vmem>>, vector<1x1x32xf32>
    %343 = vector.shape_cast %342 : vector<1x1x32xf32> to vector<1x32xf32>
    %c2_205 = arith.constant 2 : index
    %c0_206 = arith.constant 0 : index
    %344 = memref.load %arg2[%c2_205, %c0_206] : memref<6x2xf32, #tpu.memory_space<smem>>
    %c2_207 = arith.constant 2 : index
    %c1_208 = arith.constant 1 : index
    %345 = memref.load %arg2[%c2_207, %c1_208] : memref<6x2xf32, #tpu.memory_space<smem>>
    %346 = vector.broadcast %321 : vector<1x32xf32> to vector<2x32xf32>
    %347 = arith.mulf %346, %319 : vector<2x32xf32>
    %348 = arith.mulf %319, %319 : vector<2x32xf32>
    %cst_209 = arith.constant dense<0.000000e+00> : vector<2xf32>
    %349 = vector.multi_reduction <add>, %348, %cst_209 [1] : vector<2x32xf32> to vector<2xf32>
    %350 = vector.shape_cast %349 : vector<2xf32> to vector<2x1xf32>
    %cst_210 = arith.constant 9.99999997E-7 : f32
    %351 = vector.broadcast %cst_210 : f32 to vector<2x1xf32>
    %352 = arith.addf %350, %351 : vector<2x1xf32>
    %353 = math.rsqrt %352 : vector<2x1xf32>
    %354 = vector.broadcast %353 : vector<2x1xf32> to vector<2x32xf32>
    %355 = arith.mulf %347, %354 : vector<2x32xf32>
    %c2_211 = arith.constant 2 : index
    %c0_212 = arith.constant 0 : index
    %c0_213 = arith.constant 0 : index
    %356 = vector.load %arg4[%c2_211, %c0_212, %c0_213] : memref<6x32x64xf32, #tpu.memory_space<vmem>>, vector<1x32x64xf32>
    %357 = vector.shape_cast %356 : vector<1x32x64xf32> to vector<32x64xf32>
    %cst_214 = arith.constant dense<0.000000e+00> : vector<2x64xf32>
    %358 = tpu.matmul %355, %357, %cst_214 {dimension_numbers = #tpu.dot_dimension_numbers<[1], [0], [0], [1], [0, 0, 1, 1], [], []>} : vector<2x32xf32>, vector<32x64xf32>, vector<2x64xf32> -> vector<2x64xf32>
    %c2_215 = arith.constant 2 : index
    %c0_216 = arith.constant 0 : index
    %c0_217 = arith.constant 0 : index
    %359 = vector.load %arg5[%c2_215, %c0_216, %c0_217] : memref<6x32x64xf32, #tpu.memory_space<vmem>>, vector<1x32x64xf32>
    %360 = vector.shape_cast %359 : vector<1x32x64xf32> to vector<32x64xf32>
    %cst_218 = arith.constant dense<0.000000e+00> : vector<2x64xf32>
    %361 = tpu.matmul %355, %360, %cst_218 {dimension_numbers = #tpu.dot_dimension_numbers<[1], [0], [0], [1], [0, 0, 1, 1], [], []>} : vector<2x32xf32>, vector<32x64xf32>, vector<2x64xf32> -> vector<2x64xf32>
    %c2_219 = arith.constant 2 : index
    %c0_220 = arith.constant 0 : index
    %c0_221 = arith.constant 0 : index
    %362 = vector.load %arg6[%c2_219, %c0_220, %c0_221] : memref<6x32x16xf32, #tpu.memory_space<vmem>>, vector<1x32x16xf32>
    %363 = vector.shape_cast %362 : vector<1x32x16xf32> to vector<32x16xf32>
    %cst_222 = arith.constant dense<0.000000e+00> : vector<2x16xf32>
    %364 = tpu.matmul %355, %363, %cst_222 {dimension_numbers = #tpu.dot_dimension_numbers<[1], [0], [0], [1], [0, 0, 1, 1], [], []>} : vector<2x32xf32>, vector<32x16xf32>, vector<2x16xf32> -> vector<2x16xf32>
    %c2_223 = arith.constant 2 : index
    %c0_224 = arith.constant 0 : index
    %c0_225 = arith.constant 0 : index
    %365 = vector.load %arg7[%c2_223, %c0_224, %c0_225] : memref<6x32x16xf32, #tpu.memory_space<vmem>>, vector<1x32x16xf32>
    %366 = vector.shape_cast %365 : vector<1x32x16xf32> to vector<32x16xf32>
    %cst_226 = arith.constant dense<0.000000e+00> : vector<2x16xf32>
    %367 = tpu.matmul %355, %366, %cst_226 {dimension_numbers = #tpu.dot_dimension_numbers<[1], [0], [0], [1], [0, 0, 1, 1], [], []>} : vector<2x32xf32>, vector<32x16xf32>, vector<2x16xf32> -> vector<2x16xf32>
    %368 = vector.broadcast %343 : vector<1x32xf32> to vector<2x32xf32>
    %369 = arith.mulf %355, %368 : vector<2x32xf32>
    %cst_227 = arith.constant dense<0.000000e+00> : vector<2xf32>
    %370 = vector.multi_reduction <add>, %369, %cst_227 [1] : vector<2x32xf32> to vector<2xf32>
    %371 = vector.shape_cast %370 : vector<2xf32> to vector<2x1xf32>
    %372 = vector.broadcast %344 : f32 to vector<2x1xf32>
    %373 = arith.addf %371, %372 : vector<2x1xf32>
    %cst_228 = arith.constant 0.000000e+00 : f32
    %374 = vector.broadcast %cst_228 : f32 to vector<2x1xf32>
    %375 = arith.maximumf %373, %374 : vector<2x1xf32>
    %376 = math.absf %373 : vector<2x1xf32>
    %cst_229 = arith.constant 0.000000e+00 : f32
    %377 = vector.broadcast %cst_229 : f32 to vector<2x1xf32>
    %378 = arith.subf %377, %376 : vector<2x1xf32>
    %379 = math.exp %378 : vector<2x1xf32>
    %cst_230 = arith.constant 1.000000e+00 : f32
    %380 = vector.broadcast %cst_230 : f32 to vector<2x1xf32>
    %381 = arith.addf %380, %379 : vector<2x1xf32>
    %382 = math.log %381 : vector<2x1xf32>
    %383 = arith.addf %375, %382 : vector<2x1xf32>
    %384 = vector.broadcast %327 : vector<1x64xf32> to vector<2x64xf32>
    %385 = arith.mulf %361, %384 : vector<2x64xf32>
    %386 = vector.broadcast %329 : vector<1x64xf32> to vector<2x64xf32>
    %387 = arith.addf %385, %386 : vector<2x64xf32>
    %388 = arith.negf %387 : vector<2x64xf32>
    %389 = math.exp %388 : vector<2x64xf32>
    %cst_231 = arith.constant 1.000000e+00 : f32
    %390 = vector.broadcast %cst_231 : f32 to vector<2x64xf32>
    %391 = arith.addf %390, %389 : vector<2x64xf32>
    %392 = arith.divf %390, %391 : vector<2x64xf32>
    %393 = arith.mulf %387, %392 : vector<2x64xf32>
    %394 = vector.broadcast %331 : vector<1x16xf32> to vector<2x16xf32>
    %395 = arith.mulf %364, %394 : vector<2x16xf32>
    %396 = vector.broadcast %333 : vector<1x16xf32> to vector<2x16xf32>
    %397 = arith.addf %395, %396 : vector<2x16xf32>
    %398 = arith.negf %397 : vector<2x16xf32>
    %399 = math.exp %398 : vector<2x16xf32>
    %cst_232 = arith.constant 1.000000e+00 : f32
    %400 = vector.broadcast %cst_232 : f32 to vector<2x16xf32>
    %401 = arith.addf %400, %399 : vector<2x16xf32>
    %402 = arith.divf %400, %401 : vector<2x16xf32>
    %403 = arith.mulf %397, %402 : vector<2x16xf32>
    %404 = vector.broadcast %335 : vector<1x16xf32> to vector<2x16xf32>
    %405 = arith.mulf %367, %404 : vector<2x16xf32>
    %406 = vector.broadcast %337 : vector<1x16xf32> to vector<2x16xf32>
    %407 = arith.addf %405, %406 : vector<2x16xf32>
    %408 = arith.negf %407 : vector<2x16xf32>
    %409 = math.exp %408 : vector<2x16xf32>
    %cst_233 = arith.constant 1.000000e+00 : f32
    %410 = vector.broadcast %cst_233 : f32 to vector<2x16xf32>
    %411 = arith.addf %410, %409 : vector<2x16xf32>
    %412 = arith.divf %410, %411 : vector<2x16xf32>
    %413 = arith.mulf %407, %412 : vector<2x16xf32>
    %414 = arith.mulf %403, %413 : vector<2x16xf32>
    %cst_234 = arith.constant dense<0.000000e+00> : vector<2xf32>
    %415 = vector.multi_reduction <add>, %414, %cst_234 [1] : vector<2x16xf32> to vector<2xf32>
    %416 = vector.shape_cast %415 : vector<2xf32> to vector<2x1xf32>
    %417 = arith.mulf %383, %416 : vector<2x1xf32>
    %418 = vector.broadcast %345 : f32 to vector<2x1xf32>
    %419 = arith.addf %417, %418 : vector<2x1xf32>
    %420 = vector.broadcast %419 : vector<2x1xf32> to vector<2x64xf32>
    %421 = arith.mulf %393, %420 : vector<2x64xf32>
    %422 = arith.negf %358 : vector<2x64xf32>
    %423 = math.exp %422 : vector<2x64xf32>
    %cst_235 = arith.constant 1.000000e+00 : f32
    %424 = vector.broadcast %cst_235 : f32 to vector<2x64xf32>
    %425 = arith.addf %424, %423 : vector<2x64xf32>
    %426 = arith.divf %424, %425 : vector<2x64xf32>
    %427 = arith.mulf %358, %426 : vector<2x64xf32>
    %428 = arith.mulf %421, %427 : vector<2x64xf32>
    %429 = arith.mulf %428, %428 : vector<2x64xf32>
    %cst_236 = arith.constant dense<0.000000e+00> : vector<2xf32>
    %430 = vector.multi_reduction <add>, %429, %cst_236 [1] : vector<2x64xf32> to vector<2xf32>
    %431 = vector.shape_cast %430 : vector<2xf32> to vector<2x1xf32>
    %cst_237 = arith.constant 6.400000e+01 : f32
    %432 = vector.broadcast %cst_237 : f32 to vector<2x1xf32>
    %433 = arith.divf %431, %432 : vector<2x1xf32>
    %cst_238 = arith.constant 9.99999974E-6 : f32
    %434 = vector.broadcast %cst_238 : f32 to vector<2x1xf32>
    %435 = arith.addf %433, %434 : vector<2x1xf32>
    %436 = math.rsqrt %435 : vector<2x1xf32>
    %437 = vector.broadcast %436 : vector<2x1xf32> to vector<2x64xf32>
    %438 = arith.mulf %428, %437 : vector<2x64xf32>
    %439 = vector.broadcast %325 : vector<1x64xf32> to vector<2x64xf32>
    %440 = arith.mulf %438, %439 : vector<2x64xf32>
    %c2_239 = arith.constant 2 : index
    %c0_240 = arith.constant 0 : index
    %c0_241 = arith.constant 0 : index
    %441 = vector.load %arg8[%c2_239, %c0_240, %c0_241] : memref<6x64x32xf32, #tpu.memory_space<vmem>>, vector<1x64x32xf32>
    %442 = vector.shape_cast %441 : vector<1x64x32xf32> to vector<64x32xf32>
    %cst_242 = arith.constant dense<0.000000e+00> : vector<2x32xf32>
    %443 = tpu.matmul %440, %442, %cst_242 {dimension_numbers = #tpu.dot_dimension_numbers<[1], [0], [0], [1], [0, 0, 1, 1], [], []>} : vector<2x64xf32>, vector<64x32xf32>, vector<2x32xf32> -> vector<2x32xf32>
    %444 = arith.addf %319, %443 : vector<2x32xf32>
    %445 = vector.broadcast %323 : vector<1x32xf32> to vector<2x32xf32>
    %446 = arith.mulf %445, %444 : vector<2x32xf32>
    %447 = arith.mulf %444, %444 : vector<2x32xf32>
    %cst_243 = arith.constant dense<0.000000e+00> : vector<2xf32>
    %448 = vector.multi_reduction <add>, %447, %cst_243 [1] : vector<2x32xf32> to vector<2xf32>
    %449 = vector.shape_cast %448 : vector<2xf32> to vector<2x1xf32>
    %cst_244 = arith.constant 9.99999997E-7 : f32
    %450 = vector.broadcast %cst_244 : f32 to vector<2x1xf32>
    %451 = arith.addf %449, %450 : vector<2x1xf32>
    %452 = math.rsqrt %451 : vector<2x1xf32>
    %453 = vector.broadcast %452 : vector<2x1xf32> to vector<2x32xf32>
    %454 = arith.mulf %446, %453 : vector<2x32xf32>
    %c2_245 = arith.constant 2 : index
    %c0_246 = arith.constant 0 : index
    %c0_247 = arith.constant 0 : index
    %455 = vector.load %arg9[%c2_245, %c0_246, %c0_247] : memref<6x32x128xf32, #tpu.memory_space<vmem>>, vector<1x32x128xf32>
    %456 = vector.shape_cast %455 : vector<1x32x128xf32> to vector<32x128xf32>
    %cst_248 = arith.constant dense<0.000000e+00> : vector<2x128xf32>
    %457 = tpu.matmul %454, %456, %cst_248 {dimension_numbers = #tpu.dot_dimension_numbers<[1], [0], [0], [1], [0, 0, 1, 1], [], []>} : vector<2x32xf32>, vector<32x128xf32>, vector<2x128xf32> -> vector<2x128xf32>
    %458 = vector.broadcast %339 : vector<1x128xf32> to vector<2x128xf32>
    %459 = arith.addf %457, %458 : vector<2x128xf32>
    %cst_249 = arith.constant 5.000000e-01 : f32
    %460 = vector.broadcast %cst_249 : f32 to vector<2x128xf32>
    %461 = arith.mulf %460, %459 : vector<2x128xf32>
    %cst_250 = arith.constant 0.707106769 : f32
    %462 = vector.broadcast %cst_250 : f32 to vector<2x128xf32>
    %463 = arith.mulf %459, %462 : vector<2x128xf32>
    %464 = math.erf %463 : vector<2x128xf32>
    %cst_251 = arith.constant 1.000000e+00 : f32
    %465 = vector.broadcast %cst_251 : f32 to vector<2x128xf32>
    %466 = arith.addf %465, %464 : vector<2x128xf32>
    %467 = arith.mulf %461, %466 : vector<2x128xf32>
    %c2_252 = arith.constant 2 : index
    %c0_253 = arith.constant 0 : index
    %c0_254 = arith.constant 0 : index
    %468 = vector.load %arg10[%c2_252, %c0_253, %c0_254] : memref<6x128x32xf32, #tpu.memory_space<vmem>>, vector<1x128x32xf32>
    %469 = vector.shape_cast %468 : vector<1x128x32xf32> to vector<128x32xf32>
    %cst_255 = arith.constant dense<0.000000e+00> : vector<2x32xf32>
    %470 = tpu.matmul %467, %469, %cst_255 {dimension_numbers = #tpu.dot_dimension_numbers<[1], [0], [0], [1], [0, 0, 1, 1], [], []>} : vector<2x128xf32>, vector<128x32xf32>, vector<2x32xf32> -> vector<2x32xf32>
    %471 = vector.broadcast %341 : vector<1x32xf32> to vector<2x32xf32>
    %472 = arith.addf %470, %471 : vector<2x32xf32>
    %473 = arith.addf %444, %472 : vector<2x32xf32>
    %c3_256 = arith.constant 3 : index
    %c0_257 = arith.constant 0 : index
    %c0_258 = arith.constant 0 : index
    %474 = vector.load %arg3[%c3_256, %c0_257, %c0_258] : memref<6x12x128xf32, #tpu.memory_space<vmem>>, vector<1x1x32xf32>
    %475 = vector.shape_cast %474 : vector<1x1x32xf32> to vector<1x32xf32>
    %c3_259 = arith.constant 3 : index
    %c1_260 = arith.constant 1 : index
    %c0_261 = arith.constant 0 : index
    %476 = vector.load %arg3[%c3_259, %c1_260, %c0_261] : memref<6x12x128xf32, #tpu.memory_space<vmem>>, vector<1x1x32xf32>
    %477 = vector.shape_cast %476 : vector<1x1x32xf32> to vector<1x32xf32>
    %c3_262 = arith.constant 3 : index
    %c2_263 = arith.constant 2 : index
    %c0_264 = arith.constant 0 : index
    %478 = vector.load %arg3[%c3_262, %c2_263, %c0_264] : memref<6x12x128xf32, #tpu.memory_space<vmem>>, vector<1x1x64xf32>
    %479 = vector.shape_cast %478 : vector<1x1x64xf32> to vector<1x64xf32>
    %c3_265 = arith.constant 3 : index
    %c3_266 = arith.constant 3 : index
    %c0_267 = arith.constant 0 : index
    %480 = vector.load %arg3[%c3_265, %c3_266, %c0_267] : memref<6x12x128xf32, #tpu.memory_space<vmem>>, vector<1x1x64xf32>
    %481 = vector.shape_cast %480 : vector<1x1x64xf32> to vector<1x64xf32>
    %c3_268 = arith.constant 3 : index
    %c4_269 = arith.constant 4 : index
    %c0_270 = arith.constant 0 : index
    %482 = vector.load %arg3[%c3_268, %c4_269, %c0_270] : memref<6x12x128xf32, #tpu.memory_space<vmem>>, vector<1x1x64xf32>
    %483 = vector.shape_cast %482 : vector<1x1x64xf32> to vector<1x64xf32>
    %c3_271 = arith.constant 3 : index
    %c5_272 = arith.constant 5 : index
    %c0_273 = arith.constant 0 : index
    %484 = vector.load %arg3[%c3_271, %c5_272, %c0_273] : memref<6x12x128xf32, #tpu.memory_space<vmem>>, vector<1x1x16xf32>
    %485 = vector.shape_cast %484 : vector<1x1x16xf32> to vector<1x16xf32>
    %c3_274 = arith.constant 3 : index
    %c6_275 = arith.constant 6 : index
    %c0_276 = arith.constant 0 : index
    %486 = vector.load %arg3[%c3_274, %c6_275, %c0_276] : memref<6x12x128xf32, #tpu.memory_space<vmem>>, vector<1x1x16xf32>
    %487 = vector.shape_cast %486 : vector<1x1x16xf32> to vector<1x16xf32>
    %c3_277 = arith.constant 3 : index
    %c7_278 = arith.constant 7 : index
    %c0_279 = arith.constant 0 : index
    %488 = vector.load %arg3[%c3_277, %c7_278, %c0_279] : memref<6x12x128xf32, #tpu.memory_space<vmem>>, vector<1x1x16xf32>
    %489 = vector.shape_cast %488 : vector<1x1x16xf32> to vector<1x16xf32>
    %c3_280 = arith.constant 3 : index
    %c8_281 = arith.constant 8 : index
    %c0_282 = arith.constant 0 : index
    %490 = vector.load %arg3[%c3_280, %c8_281, %c0_282] : memref<6x12x128xf32, #tpu.memory_space<vmem>>, vector<1x1x16xf32>
    %491 = vector.shape_cast %490 : vector<1x1x16xf32> to vector<1x16xf32>
    %c3_283 = arith.constant 3 : index
    %c9_284 = arith.constant 9 : index
    %c0_285 = arith.constant 0 : index
    %492 = vector.load %arg3[%c3_283, %c9_284, %c0_285] : memref<6x12x128xf32, #tpu.memory_space<vmem>>, vector<1x1x128xf32>
    %493 = vector.shape_cast %492 : vector<1x1x128xf32> to vector<1x128xf32>
    %c3_286 = arith.constant 3 : index
    %c10_287 = arith.constant 10 : index
    %c0_288 = arith.constant 0 : index
    %494 = vector.load %arg3[%c3_286, %c10_287, %c0_288] : memref<6x12x128xf32, #tpu.memory_space<vmem>>, vector<1x1x32xf32>
    %495 = vector.shape_cast %494 : vector<1x1x32xf32> to vector<1x32xf32>
    %c3_289 = arith.constant 3 : index
    %c11_290 = arith.constant 11 : index
    %c0_291 = arith.constant 0 : index
    %496 = vector.load %arg3[%c3_289, %c11_290, %c0_291] : memref<6x12x128xf32, #tpu.memory_space<vmem>>, vector<1x1x32xf32>
    %497 = vector.shape_cast %496 : vector<1x1x32xf32> to vector<1x32xf32>
    %c3_292 = arith.constant 3 : index
    %c0_293 = arith.constant 0 : index
    %498 = memref.load %arg2[%c3_292, %c0_293] : memref<6x2xf32, #tpu.memory_space<smem>>
    %c3_294 = arith.constant 3 : index
    %c1_295 = arith.constant 1 : index
    %499 = memref.load %arg2[%c3_294, %c1_295] : memref<6x2xf32, #tpu.memory_space<smem>>
    %500 = vector.broadcast %475 : vector<1x32xf32> to vector<2x32xf32>
    %501 = arith.mulf %500, %473 : vector<2x32xf32>
    %502 = arith.mulf %473, %473 : vector<2x32xf32>
    %cst_296 = arith.constant dense<0.000000e+00> : vector<2xf32>
    %503 = vector.multi_reduction <add>, %502, %cst_296 [1] : vector<2x32xf32> to vector<2xf32>
    %504 = vector.shape_cast %503 : vector<2xf32> to vector<2x1xf32>
    %cst_297 = arith.constant 9.99999997E-7 : f32
    %505 = vector.broadcast %cst_297 : f32 to vector<2x1xf32>
    %506 = arith.addf %504, %505 : vector<2x1xf32>
    %507 = math.rsqrt %506 : vector<2x1xf32>
    %508 = vector.broadcast %507 : vector<2x1xf32> to vector<2x32xf32>
    %509 = arith.mulf %501, %508 : vector<2x32xf32>
    %c3_298 = arith.constant 3 : index
    %c0_299 = arith.constant 0 : index
    %c0_300 = arith.constant 0 : index
    %510 = vector.load %arg4[%c3_298, %c0_299, %c0_300] : memref<6x32x64xf32, #tpu.memory_space<vmem>>, vector<1x32x64xf32>
    %511 = vector.shape_cast %510 : vector<1x32x64xf32> to vector<32x64xf32>
    %cst_301 = arith.constant dense<0.000000e+00> : vector<2x64xf32>
    %512 = tpu.matmul %509, %511, %cst_301 {dimension_numbers = #tpu.dot_dimension_numbers<[1], [0], [0], [1], [0, 0, 1, 1], [], []>} : vector<2x32xf32>, vector<32x64xf32>, vector<2x64xf32> -> vector<2x64xf32>
    %c3_302 = arith.constant 3 : index
    %c0_303 = arith.constant 0 : index
    %c0_304 = arith.constant 0 : index
    %513 = vector.load %arg5[%c3_302, %c0_303, %c0_304] : memref<6x32x64xf32, #tpu.memory_space<vmem>>, vector<1x32x64xf32>
    %514 = vector.shape_cast %513 : vector<1x32x64xf32> to vector<32x64xf32>
    %cst_305 = arith.constant dense<0.000000e+00> : vector<2x64xf32>
    %515 = tpu.matmul %509, %514, %cst_305 {dimension_numbers = #tpu.dot_dimension_numbers<[1], [0], [0], [1], [0, 0, 1, 1], [], []>} : vector<2x32xf32>, vector<32x64xf32>, vector<2x64xf32> -> vector<2x64xf32>
    %c3_306 = arith.constant 3 : index
    %c0_307 = arith.constant 0 : index
    %c0_308 = arith.constant 0 : index
    %516 = vector.load %arg6[%c3_306, %c0_307, %c0_308] : memref<6x32x16xf32, #tpu.memory_space<vmem>>, vector<1x32x16xf32>
    %517 = vector.shape_cast %516 : vector<1x32x16xf32> to vector<32x16xf32>
    %cst_309 = arith.constant dense<0.000000e+00> : vector<2x16xf32>
    %518 = tpu.matmul %509, %517, %cst_309 {dimension_numbers = #tpu.dot_dimension_numbers<[1], [0], [0], [1], [0, 0, 1, 1], [], []>} : vector<2x32xf32>, vector<32x16xf32>, vector<2x16xf32> -> vector<2x16xf32>
    %c3_310 = arith.constant 3 : index
    %c0_311 = arith.constant 0 : index
    %c0_312 = arith.constant 0 : index
    %519 = vector.load %arg7[%c3_310, %c0_311, %c0_312] : memref<6x32x16xf32, #tpu.memory_space<vmem>>, vector<1x32x16xf32>
    %520 = vector.shape_cast %519 : vector<1x32x16xf32> to vector<32x16xf32>
    %cst_313 = arith.constant dense<0.000000e+00> : vector<2x16xf32>
    %521 = tpu.matmul %509, %520, %cst_313 {dimension_numbers = #tpu.dot_dimension_numbers<[1], [0], [0], [1], [0, 0, 1, 1], [], []>} : vector<2x32xf32>, vector<32x16xf32>, vector<2x16xf32> -> vector<2x16xf32>
    %522 = vector.broadcast %497 : vector<1x32xf32> to vector<2x32xf32>
    %523 = arith.mulf %509, %522 : vector<2x32xf32>
    %cst_314 = arith.constant dense<0.000000e+00> : vector<2xf32>
    %524 = vector.multi_reduction <add>, %523, %cst_314 [1] : vector<2x32xf32> to vector<2xf32>
    %525 = vector.shape_cast %524 : vector<2xf32> to vector<2x1xf32>
    %526 = vector.broadcast %498 : f32 to vector<2x1xf32>
    %527 = arith.addf %525, %526 : vector<2x1xf32>
    %cst_315 = arith.constant 0.000000e+00 : f32
    %528 = vector.broadcast %cst_315 : f32 to vector<2x1xf32>
    %529 = arith.maximumf %527, %528 : vector<2x1xf32>
    %530 = math.absf %527 : vector<2x1xf32>
    %cst_316 = arith.constant 0.000000e+00 : f32
    %531 = vector.broadcast %cst_316 : f32 to vector<2x1xf32>
    %532 = arith.subf %531, %530 : vector<2x1xf32>
    %533 = math.exp %532 : vector<2x1xf32>
    %cst_317 = arith.constant 1.000000e+00 : f32
    %534 = vector.broadcast %cst_317 : f32 to vector<2x1xf32>
    %535 = arith.addf %534, %533 : vector<2x1xf32>
    %536 = math.log %535 : vector<2x1xf32>
    %537 = arith.addf %529, %536 : vector<2x1xf32>
    %538 = vector.broadcast %481 : vector<1x64xf32> to vector<2x64xf32>
    %539 = arith.mulf %515, %538 : vector<2x64xf32>
    %540 = vector.broadcast %483 : vector<1x64xf32> to vector<2x64xf32>
    %541 = arith.addf %539, %540 : vector<2x64xf32>
    %542 = arith.negf %541 : vector<2x64xf32>
    %543 = math.exp %542 : vector<2x64xf32>
    %cst_318 = arith.constant 1.000000e+00 : f32
    %544 = vector.broadcast %cst_318 : f32 to vector<2x64xf32>
    %545 = arith.addf %544, %543 : vector<2x64xf32>
    %546 = arith.divf %544, %545 : vector<2x64xf32>
    %547 = arith.mulf %541, %546 : vector<2x64xf32>
    %548 = vector.broadcast %485 : vector<1x16xf32> to vector<2x16xf32>
    %549 = arith.mulf %518, %548 : vector<2x16xf32>
    %550 = vector.broadcast %487 : vector<1x16xf32> to vector<2x16xf32>
    %551 = arith.addf %549, %550 : vector<2x16xf32>
    %552 = arith.negf %551 : vector<2x16xf32>
    %553 = math.exp %552 : vector<2x16xf32>
    %cst_319 = arith.constant 1.000000e+00 : f32
    %554 = vector.broadcast %cst_319 : f32 to vector<2x16xf32>
    %555 = arith.addf %554, %553 : vector<2x16xf32>
    %556 = arith.divf %554, %555 : vector<2x16xf32>
    %557 = arith.mulf %551, %556 : vector<2x16xf32>
    %558 = vector.broadcast %489 : vector<1x16xf32> to vector<2x16xf32>
    %559 = arith.mulf %521, %558 : vector<2x16xf32>
    %560 = vector.broadcast %491 : vector<1x16xf32> to vector<2x16xf32>
    %561 = arith.addf %559, %560 : vector<2x16xf32>
    %562 = arith.negf %561 : vector<2x16xf32>
    %563 = math.exp %562 : vector<2x16xf32>
    %cst_320 = arith.constant 1.000000e+00 : f32
    %564 = vector.broadcast %cst_320 : f32 to vector<2x16xf32>
    %565 = arith.addf %564, %563 : vector<2x16xf32>
    %566 = arith.divf %564, %565 : vector<2x16xf32>
    %567 = arith.mulf %561, %566 : vector<2x16xf32>
    %568 = arith.mulf %557, %567 : vector<2x16xf32>
    %cst_321 = arith.constant dense<0.000000e+00> : vector<2xf32>
    %569 = vector.multi_reduction <add>, %568, %cst_321 [1] : vector<2x16xf32> to vector<2xf32>
    %570 = vector.shape_cast %569 : vector<2xf32> to vector<2x1xf32>
    %571 = arith.mulf %537, %570 : vector<2x1xf32>
    %572 = vector.broadcast %499 : f32 to vector<2x1xf32>
    %573 = arith.addf %571, %572 : vector<2x1xf32>
    %574 = vector.broadcast %573 : vector<2x1xf32> to vector<2x64xf32>
    %575 = arith.mulf %547, %574 : vector<2x64xf32>
    %576 = arith.negf %512 : vector<2x64xf32>
    %577 = math.exp %576 : vector<2x64xf32>
    %cst_322 = arith.constant 1.000000e+00 : f32
    %578 = vector.broadcast %cst_322 : f32 to vector<2x64xf32>
    %579 = arith.addf %578, %577 : vector<2x64xf32>
    %580 = arith.divf %578, %579 : vector<2x64xf32>
    %581 = arith.mulf %512, %580 : vector<2x64xf32>
    %582 = arith.mulf %575, %581 : vector<2x64xf32>
    %583 = arith.mulf %582, %582 : vector<2x64xf32>
    %cst_323 = arith.constant dense<0.000000e+00> : vector<2xf32>
    %584 = vector.multi_reduction <add>, %583, %cst_323 [1] : vector<2x64xf32> to vector<2xf32>
    %585 = vector.shape_cast %584 : vector<2xf32> to vector<2x1xf32>
    %cst_324 = arith.constant 6.400000e+01 : f32
    %586 = vector.broadcast %cst_324 : f32 to vector<2x1xf32>
    %587 = arith.divf %585, %586 : vector<2x1xf32>
    %cst_325 = arith.constant 9.99999974E-6 : f32
    %588 = vector.broadcast %cst_325 : f32 to vector<2x1xf32>
    %589 = arith.addf %587, %588 : vector<2x1xf32>
    %590 = math.rsqrt %589 : vector<2x1xf32>
    %591 = vector.broadcast %590 : vector<2x1xf32> to vector<2x64xf32>
    %592 = arith.mulf %582, %591 : vector<2x64xf32>
    %593 = vector.broadcast %479 : vector<1x64xf32> to vector<2x64xf32>
    %594 = arith.mulf %592, %593 : vector<2x64xf32>
    %c3_326 = arith.constant 3 : index
    %c0_327 = arith.constant 0 : index
    %c0_328 = arith.constant 0 : index
    %595 = vector.load %arg8[%c3_326, %c0_327, %c0_328] : memref<6x64x32xf32, #tpu.memory_space<vmem>>, vector<1x64x32xf32>
    %596 = vector.shape_cast %595 : vector<1x64x32xf32> to vector<64x32xf32>
    %cst_329 = arith.constant dense<0.000000e+00> : vector<2x32xf32>
    %597 = tpu.matmul %594, %596, %cst_329 {dimension_numbers = #tpu.dot_dimension_numbers<[1], [0], [0], [1], [0, 0, 1, 1], [], []>} : vector<2x64xf32>, vector<64x32xf32>, vector<2x32xf32> -> vector<2x32xf32>
    %598 = arith.addf %473, %597 : vector<2x32xf32>
    %599 = vector.broadcast %477 : vector<1x32xf32> to vector<2x32xf32>
    %600 = arith.mulf %599, %598 : vector<2x32xf32>
    %601 = arith.mulf %598, %598 : vector<2x32xf32>
    %cst_330 = arith.constant dense<0.000000e+00> : vector<2xf32>
    %602 = vector.multi_reduction <add>, %601, %cst_330 [1] : vector<2x32xf32> to vector<2xf32>
    %603 = vector.shape_cast %602 : vector<2xf32> to vector<2x1xf32>
    %cst_331 = arith.constant 9.99999997E-7 : f32
    %604 = vector.broadcast %cst_331 : f32 to vector<2x1xf32>
    %605 = arith.addf %603, %604 : vector<2x1xf32>
    %606 = math.rsqrt %605 : vector<2x1xf32>
    %607 = vector.broadcast %606 : vector<2x1xf32> to vector<2x32xf32>
    %608 = arith.mulf %600, %607 : vector<2x32xf32>
    %c3_332 = arith.constant 3 : index
    %c0_333 = arith.constant 0 : index
    %c0_334 = arith.constant 0 : index
    %609 = vector.load %arg9[%c3_332, %c0_333, %c0_334] : memref<6x32x128xf32, #tpu.memory_space<vmem>>, vector<1x32x128xf32>
    %610 = vector.shape_cast %609 : vector<1x32x128xf32> to vector<32x128xf32>
    %cst_335 = arith.constant dense<0.000000e+00> : vector<2x128xf32>
    %611 = tpu.matmul %608, %610, %cst_335 {dimension_numbers = #tpu.dot_dimension_numbers<[1], [0], [0], [1], [0, 0, 1, 1], [], []>} : vector<2x32xf32>, vector<32x128xf32>, vector<2x128xf32> -> vector<2x128xf32>
    %612 = vector.broadcast %493 : vector<1x128xf32> to vector<2x128xf32>
    %613 = arith.addf %611, %612 : vector<2x128xf32>
    %cst_336 = arith.constant 5.000000e-01 : f32
    %614 = vector.broadcast %cst_336 : f32 to vector<2x128xf32>
    %615 = arith.mulf %614, %613 : vector<2x128xf32>
    %cst_337 = arith.constant 0.707106769 : f32
    %616 = vector.broadcast %cst_337 : f32 to vector<2x128xf32>
    %617 = arith.mulf %613, %616 : vector<2x128xf32>
    %618 = math.erf %617 : vector<2x128xf32>
    %cst_338 = arith.constant 1.000000e+00 : f32
    %619 = vector.broadcast %cst_338 : f32 to vector<2x128xf32>
    %620 = arith.addf %619, %618 : vector<2x128xf32>
    %621 = arith.mulf %615, %620 : vector<2x128xf32>
    %c3_339 = arith.constant 3 : index
    %c0_340 = arith.constant 0 : index
    %c0_341 = arith.constant 0 : index
    %622 = vector.load %arg10[%c3_339, %c0_340, %c0_341] : memref<6x128x32xf32, #tpu.memory_space<vmem>>, vector<1x128x32xf32>
    %623 = vector.shape_cast %622 : vector<1x128x32xf32> to vector<128x32xf32>
    %cst_342 = arith.constant dense<0.000000e+00> : vector<2x32xf32>
    %624 = tpu.matmul %621, %623, %cst_342 {dimension_numbers = #tpu.dot_dimension_numbers<[1], [0], [0], [1], [0, 0, 1, 1], [], []>} : vector<2x128xf32>, vector<128x32xf32>, vector<2x32xf32> -> vector<2x32xf32>
    %625 = vector.broadcast %495 : vector<1x32xf32> to vector<2x32xf32>
    %626 = arith.addf %624, %625 : vector<2x32xf32>
    %627 = arith.addf %598, %626 : vector<2x32xf32>
    %c4_343 = arith.constant 4 : index
    %c0_344 = arith.constant 0 : index
    %c0_345 = arith.constant 0 : index
    %628 = vector.load %arg3[%c4_343, %c0_344, %c0_345] : memref<6x12x128xf32, #tpu.memory_space<vmem>>, vector<1x1x32xf32>
    %629 = vector.shape_cast %628 : vector<1x1x32xf32> to vector<1x32xf32>
    %c4_346 = arith.constant 4 : index
    %c1_347 = arith.constant 1 : index
    %c0_348 = arith.constant 0 : index
    %630 = vector.load %arg3[%c4_346, %c1_347, %c0_348] : memref<6x12x128xf32, #tpu.memory_space<vmem>>, vector<1x1x32xf32>
    %631 = vector.shape_cast %630 : vector<1x1x32xf32> to vector<1x32xf32>
    %c4_349 = arith.constant 4 : index
    %c2_350 = arith.constant 2 : index
    %c0_351 = arith.constant 0 : index
    %632 = vector.load %arg3[%c4_349, %c2_350, %c0_351] : memref<6x12x128xf32, #tpu.memory_space<vmem>>, vector<1x1x64xf32>
    %633 = vector.shape_cast %632 : vector<1x1x64xf32> to vector<1x64xf32>
    %c4_352 = arith.constant 4 : index
    %c3_353 = arith.constant 3 : index
    %c0_354 = arith.constant 0 : index
    %634 = vector.load %arg3[%c4_352, %c3_353, %c0_354] : memref<6x12x128xf32, #tpu.memory_space<vmem>>, vector<1x1x64xf32>
    %635 = vector.shape_cast %634 : vector<1x1x64xf32> to vector<1x64xf32>
    %c4_355 = arith.constant 4 : index
    %c4_356 = arith.constant 4 : index
    %c0_357 = arith.constant 0 : index
    %636 = vector.load %arg3[%c4_355, %c4_356, %c0_357] : memref<6x12x128xf32, #tpu.memory_space<vmem>>, vector<1x1x64xf32>
    %637 = vector.shape_cast %636 : vector<1x1x64xf32> to vector<1x64xf32>
    %c4_358 = arith.constant 4 : index
    %c5_359 = arith.constant 5 : index
    %c0_360 = arith.constant 0 : index
    %638 = vector.load %arg3[%c4_358, %c5_359, %c0_360] : memref<6x12x128xf32, #tpu.memory_space<vmem>>, vector<1x1x16xf32>
    %639 = vector.shape_cast %638 : vector<1x1x16xf32> to vector<1x16xf32>
    %c4_361 = arith.constant 4 : index
    %c6_362 = arith.constant 6 : index
    %c0_363 = arith.constant 0 : index
    %640 = vector.load %arg3[%c4_361, %c6_362, %c0_363] : memref<6x12x128xf32, #tpu.memory_space<vmem>>, vector<1x1x16xf32>
    %641 = vector.shape_cast %640 : vector<1x1x16xf32> to vector<1x16xf32>
    %c4_364 = arith.constant 4 : index
    %c7_365 = arith.constant 7 : index
    %c0_366 = arith.constant 0 : index
    %642 = vector.load %arg3[%c4_364, %c7_365, %c0_366] : memref<6x12x128xf32, #tpu.memory_space<vmem>>, vector<1x1x16xf32>
    %643 = vector.shape_cast %642 : vector<1x1x16xf32> to vector<1x16xf32>
    %c4_367 = arith.constant 4 : index
    %c8_368 = arith.constant 8 : index
    %c0_369 = arith.constant 0 : index
    %644 = vector.load %arg3[%c4_367, %c8_368, %c0_369] : memref<6x12x128xf32, #tpu.memory_space<vmem>>, vector<1x1x16xf32>
    %645 = vector.shape_cast %644 : vector<1x1x16xf32> to vector<1x16xf32>
    %c4_370 = arith.constant 4 : index
    %c9_371 = arith.constant 9 : index
    %c0_372 = arith.constant 0 : index
    %646 = vector.load %arg3[%c4_370, %c9_371, %c0_372] : memref<6x12x128xf32, #tpu.memory_space<vmem>>, vector<1x1x128xf32>
    %647 = vector.shape_cast %646 : vector<1x1x128xf32> to vector<1x128xf32>
    %c4_373 = arith.constant 4 : index
    %c10_374 = arith.constant 10 : index
    %c0_375 = arith.constant 0 : index
    %648 = vector.load %arg3[%c4_373, %c10_374, %c0_375] : memref<6x12x128xf32, #tpu.memory_space<vmem>>, vector<1x1x32xf32>
    %649 = vector.shape_cast %648 : vector<1x1x32xf32> to vector<1x32xf32>
    %c4_376 = arith.constant 4 : index
    %c11_377 = arith.constant 11 : index
    %c0_378 = arith.constant 0 : index
    %650 = vector.load %arg3[%c4_376, %c11_377, %c0_378] : memref<6x12x128xf32, #tpu.memory_space<vmem>>, vector<1x1x32xf32>
    %651 = vector.shape_cast %650 : vector<1x1x32xf32> to vector<1x32xf32>
    %c4_379 = arith.constant 4 : index
    %c0_380 = arith.constant 0 : index
    %652 = memref.load %arg2[%c4_379, %c0_380] : memref<6x2xf32, #tpu.memory_space<smem>>
    %c4_381 = arith.constant 4 : index
    %c1_382 = arith.constant 1 : index
    %653 = memref.load %arg2[%c4_381, %c1_382] : memref<6x2xf32, #tpu.memory_space<smem>>
    %654 = vector.broadcast %629 : vector<1x32xf32> to vector<2x32xf32>
    %655 = arith.mulf %654, %627 : vector<2x32xf32>
    %656 = arith.mulf %627, %627 : vector<2x32xf32>
    %cst_383 = arith.constant dense<0.000000e+00> : vector<2xf32>
    %657 = vector.multi_reduction <add>, %656, %cst_383 [1] : vector<2x32xf32> to vector<2xf32>
    %658 = vector.shape_cast %657 : vector<2xf32> to vector<2x1xf32>
    %cst_384 = arith.constant 9.99999997E-7 : f32
    %659 = vector.broadcast %cst_384 : f32 to vector<2x1xf32>
    %660 = arith.addf %658, %659 : vector<2x1xf32>
    %661 = math.rsqrt %660 : vector<2x1xf32>
    %662 = vector.broadcast %661 : vector<2x1xf32> to vector<2x32xf32>
    %663 = arith.mulf %655, %662 : vector<2x32xf32>
    %c4_385 = arith.constant 4 : index
    %c0_386 = arith.constant 0 : index
    %c0_387 = arith.constant 0 : index
    %664 = vector.load %arg4[%c4_385, %c0_386, %c0_387] : memref<6x32x64xf32, #tpu.memory_space<vmem>>, vector<1x32x64xf32>
    %665 = vector.shape_cast %664 : vector<1x32x64xf32> to vector<32x64xf32>
    %cst_388 = arith.constant dense<0.000000e+00> : vector<2x64xf32>
    %666 = tpu.matmul %663, %665, %cst_388 {dimension_numbers = #tpu.dot_dimension_numbers<[1], [0], [0], [1], [0, 0, 1, 1], [], []>} : vector<2x32xf32>, vector<32x64xf32>, vector<2x64xf32> -> vector<2x64xf32>
    %c4_389 = arith.constant 4 : index
    %c0_390 = arith.constant 0 : index
    %c0_391 = arith.constant 0 : index
    %667 = vector.load %arg5[%c4_389, %c0_390, %c0_391] : memref<6x32x64xf32, #tpu.memory_space<vmem>>, vector<1x32x64xf32>
    %668 = vector.shape_cast %667 : vector<1x32x64xf32> to vector<32x64xf32>
    %cst_392 = arith.constant dense<0.000000e+00> : vector<2x64xf32>
    %669 = tpu.matmul %663, %668, %cst_392 {dimension_numbers = #tpu.dot_dimension_numbers<[1], [0], [0], [1], [0, 0, 1, 1], [], []>} : vector<2x32xf32>, vector<32x64xf32>, vector<2x64xf32> -> vector<2x64xf32>
    %c4_393 = arith.constant 4 : index
    %c0_394 = arith.constant 0 : index
    %c0_395 = arith.constant 0 : index
    %670 = vector.load %arg6[%c4_393, %c0_394, %c0_395] : memref<6x32x16xf32, #tpu.memory_space<vmem>>, vector<1x32x16xf32>
    %671 = vector.shape_cast %670 : vector<1x32x16xf32> to vector<32x16xf32>
    %cst_396 = arith.constant dense<0.000000e+00> : vector<2x16xf32>
    %672 = tpu.matmul %663, %671, %cst_396 {dimension_numbers = #tpu.dot_dimension_numbers<[1], [0], [0], [1], [0, 0, 1, 1], [], []>} : vector<2x32xf32>, vector<32x16xf32>, vector<2x16xf32> -> vector<2x16xf32>
    %c4_397 = arith.constant 4 : index
    %c0_398 = arith.constant 0 : index
    %c0_399 = arith.constant 0 : index
    %673 = vector.load %arg7[%c4_397, %c0_398, %c0_399] : memref<6x32x16xf32, #tpu.memory_space<vmem>>, vector<1x32x16xf32>
    %674 = vector.shape_cast %673 : vector<1x32x16xf32> to vector<32x16xf32>
    %cst_400 = arith.constant dense<0.000000e+00> : vector<2x16xf32>
    %675 = tpu.matmul %663, %674, %cst_400 {dimension_numbers = #tpu.dot_dimension_numbers<[1], [0], [0], [1], [0, 0, 1, 1], [], []>} : vector<2x32xf32>, vector<32x16xf32>, vector<2x16xf32> -> vector<2x16xf32>
    %676 = vector.broadcast %651 : vector<1x32xf32> to vector<2x32xf32>
    %677 = arith.mulf %663, %676 : vector<2x32xf32>
    %cst_401 = arith.constant dense<0.000000e+00> : vector<2xf32>
    %678 = vector.multi_reduction <add>, %677, %cst_401 [1] : vector<2x32xf32> to vector<2xf32>
    %679 = vector.shape_cast %678 : vector<2xf32> to vector<2x1xf32>
    %680 = vector.broadcast %652 : f32 to vector<2x1xf32>
    %681 = arith.addf %679, %680 : vector<2x1xf32>
    %cst_402 = arith.constant 0.000000e+00 : f32
    %682 = vector.broadcast %cst_402 : f32 to vector<2x1xf32>
    %683 = arith.maximumf %681, %682 : vector<2x1xf32>
    %684 = math.absf %681 : vector<2x1xf32>
    %cst_403 = arith.constant 0.000000e+00 : f32
    %685 = vector.broadcast %cst_403 : f32 to vector<2x1xf32>
    %686 = arith.subf %685, %684 : vector<2x1xf32>
    %687 = math.exp %686 : vector<2x1xf32>
    %cst_404 = arith.constant 1.000000e+00 : f32
    %688 = vector.broadcast %cst_404 : f32 to vector<2x1xf32>
    %689 = arith.addf %688, %687 : vector<2x1xf32>
    %690 = math.log %689 : vector<2x1xf32>
    %691 = arith.addf %683, %690 : vector<2x1xf32>
    %692 = vector.broadcast %635 : vector<1x64xf32> to vector<2x64xf32>
    %693 = arith.mulf %669, %692 : vector<2x64xf32>
    %694 = vector.broadcast %637 : vector<1x64xf32> to vector<2x64xf32>
    %695 = arith.addf %693, %694 : vector<2x64xf32>
    %696 = arith.negf %695 : vector<2x64xf32>
    %697 = math.exp %696 : vector<2x64xf32>
    %cst_405 = arith.constant 1.000000e+00 : f32
    %698 = vector.broadcast %cst_405 : f32 to vector<2x64xf32>
    %699 = arith.addf %698, %697 : vector<2x64xf32>
    %700 = arith.divf %698, %699 : vector<2x64xf32>
    %701 = arith.mulf %695, %700 : vector<2x64xf32>
    %702 = vector.broadcast %639 : vector<1x16xf32> to vector<2x16xf32>
    %703 = arith.mulf %672, %702 : vector<2x16xf32>
    %704 = vector.broadcast %641 : vector<1x16xf32> to vector<2x16xf32>
    %705 = arith.addf %703, %704 : vector<2x16xf32>
    %706 = arith.negf %705 : vector<2x16xf32>
    %707 = math.exp %706 : vector<2x16xf32>
    %cst_406 = arith.constant 1.000000e+00 : f32
    %708 = vector.broadcast %cst_406 : f32 to vector<2x16xf32>
    %709 = arith.addf %708, %707 : vector<2x16xf32>
    %710 = arith.divf %708, %709 : vector<2x16xf32>
    %711 = arith.mulf %705, %710 : vector<2x16xf32>
    %712 = vector.broadcast %643 : vector<1x16xf32> to vector<2x16xf32>
    %713 = arith.mulf %675, %712 : vector<2x16xf32>
    %714 = vector.broadcast %645 : vector<1x16xf32> to vector<2x16xf32>
    %715 = arith.addf %713, %714 : vector<2x16xf32>
    %716 = arith.negf %715 : vector<2x16xf32>
    %717 = math.exp %716 : vector<2x16xf32>
    %cst_407 = arith.constant 1.000000e+00 : f32
    %718 = vector.broadcast %cst_407 : f32 to vector<2x16xf32>
    %719 = arith.addf %718, %717 : vector<2x16xf32>
    %720 = arith.divf %718, %719 : vector<2x16xf32>
    %721 = arith.mulf %715, %720 : vector<2x16xf32>
    %722 = arith.mulf %711, %721 : vector<2x16xf32>
    %cst_408 = arith.constant dense<0.000000e+00> : vector<2xf32>
    %723 = vector.multi_reduction <add>, %722, %cst_408 [1] : vector<2x16xf32> to vector<2xf32>
    %724 = vector.shape_cast %723 : vector<2xf32> to vector<2x1xf32>
    %725 = arith.mulf %691, %724 : vector<2x1xf32>
    %726 = vector.broadcast %653 : f32 to vector<2x1xf32>
    %727 = arith.addf %725, %726 : vector<2x1xf32>
    %728 = vector.broadcast %727 : vector<2x1xf32> to vector<2x64xf32>
    %729 = arith.mulf %701, %728 : vector<2x64xf32>
    %730 = arith.negf %666 : vector<2x64xf32>
    %731 = math.exp %730 : vector<2x64xf32>
    %cst_409 = arith.constant 1.000000e+00 : f32
    %732 = vector.broadcast %cst_409 : f32 to vector<2x64xf32>
    %733 = arith.addf %732, %731 : vector<2x64xf32>
    %734 = arith.divf %732, %733 : vector<2x64xf32>
    %735 = arith.mulf %666, %734 : vector<2x64xf32>
    %736 = arith.mulf %729, %735 : vector<2x64xf32>
    %737 = arith.mulf %736, %736 : vector<2x64xf32>
    %cst_410 = arith.constant dense<0.000000e+00> : vector<2xf32>
    %738 = vector.multi_reduction <add>, %737, %cst_410 [1] : vector<2x64xf32> to vector<2xf32>
    %739 = vector.shape_cast %738 : vector<2xf32> to vector<2x1xf32>
    %cst_411 = arith.constant 6.400000e+01 : f32
    %740 = vector.broadcast %cst_411 : f32 to vector<2x1xf32>
    %741 = arith.divf %739, %740 : vector<2x1xf32>
    %cst_412 = arith.constant 9.99999974E-6 : f32
    %742 = vector.broadcast %cst_412 : f32 to vector<2x1xf32>
    %743 = arith.addf %741, %742 : vector<2x1xf32>
    %744 = math.rsqrt %743 : vector<2x1xf32>
    %745 = vector.broadcast %744 : vector<2x1xf32> to vector<2x64xf32>
    %746 = arith.mulf %736, %745 : vector<2x64xf32>
    %747 = vector.broadcast %633 : vector<1x64xf32> to vector<2x64xf32>
    %748 = arith.mulf %746, %747 : vector<2x64xf32>
    %c4_413 = arith.constant 4 : index
    %c0_414 = arith.constant 0 : index
    %c0_415 = arith.constant 0 : index
    %749 = vector.load %arg8[%c4_413, %c0_414, %c0_415] : memref<6x64x32xf32, #tpu.memory_space<vmem>>, vector<1x64x32xf32>
    %750 = vector.shape_cast %749 : vector<1x64x32xf32> to vector<64x32xf32>
    %cst_416 = arith.constant dense<0.000000e+00> : vector<2x32xf32>
    %751 = tpu.matmul %748, %750, %cst_416 {dimension_numbers = #tpu.dot_dimension_numbers<[1], [0], [0], [1], [0, 0, 1, 1], [], []>} : vector<2x64xf32>, vector<64x32xf32>, vector<2x32xf32> -> vector<2x32xf32>
    %752 = arith.addf %627, %751 : vector<2x32xf32>
    %753 = vector.broadcast %631 : vector<1x32xf32> to vector<2x32xf32>
    %754 = arith.mulf %753, %752 : vector<2x32xf32>
    %755 = arith.mulf %752, %752 : vector<2x32xf32>
    %cst_417 = arith.constant dense<0.000000e+00> : vector<2xf32>
    %756 = vector.multi_reduction <add>, %755, %cst_417 [1] : vector<2x32xf32> to vector<2xf32>
    %757 = vector.shape_cast %756 : vector<2xf32> to vector<2x1xf32>
    %cst_418 = arith.constant 9.99999997E-7 : f32
    %758 = vector.broadcast %cst_418 : f32 to vector<2x1xf32>
    %759 = arith.addf %757, %758 : vector<2x1xf32>
    %760 = math.rsqrt %759 : vector<2x1xf32>
    %761 = vector.broadcast %760 : vector<2x1xf32> to vector<2x32xf32>
    %762 = arith.mulf %754, %761 : vector<2x32xf32>
    %c4_419 = arith.constant 4 : index
    %c0_420 = arith.constant 0 : index
    %c0_421 = arith.constant 0 : index
    %763 = vector.load %arg9[%c4_419, %c0_420, %c0_421] : memref<6x32x128xf32, #tpu.memory_space<vmem>>, vector<1x32x128xf32>
    %764 = vector.shape_cast %763 : vector<1x32x128xf32> to vector<32x128xf32>
    %cst_422 = arith.constant dense<0.000000e+00> : vector<2x128xf32>
    %765 = tpu.matmul %762, %764, %cst_422 {dimension_numbers = #tpu.dot_dimension_numbers<[1], [0], [0], [1], [0, 0, 1, 1], [], []>} : vector<2x32xf32>, vector<32x128xf32>, vector<2x128xf32> -> vector<2x128xf32>
    %766 = vector.broadcast %647 : vector<1x128xf32> to vector<2x128xf32>
    %767 = arith.addf %765, %766 : vector<2x128xf32>
    %cst_423 = arith.constant 5.000000e-01 : f32
    %768 = vector.broadcast %cst_423 : f32 to vector<2x128xf32>
    %769 = arith.mulf %768, %767 : vector<2x128xf32>
    %cst_424 = arith.constant 0.707106769 : f32
    %770 = vector.broadcast %cst_424 : f32 to vector<2x128xf32>
    %771 = arith.mulf %767, %770 : vector<2x128xf32>
    %772 = math.erf %771 : vector<2x128xf32>
    %cst_425 = arith.constant 1.000000e+00 : f32
    %773 = vector.broadcast %cst_425 : f32 to vector<2x128xf32>
    %774 = arith.addf %773, %772 : vector<2x128xf32>
    %775 = arith.mulf %769, %774 : vector<2x128xf32>
    %c4_426 = arith.constant 4 : index
    %c0_427 = arith.constant 0 : index
    %c0_428 = arith.constant 0 : index
    %776 = vector.load %arg10[%c4_426, %c0_427, %c0_428] : memref<6x128x32xf32, #tpu.memory_space<vmem>>, vector<1x128x32xf32>
    %777 = vector.shape_cast %776 : vector<1x128x32xf32> to vector<128x32xf32>
    %cst_429 = arith.constant dense<0.000000e+00> : vector<2x32xf32>
    %778 = tpu.matmul %775, %777, %cst_429 {dimension_numbers = #tpu.dot_dimension_numbers<[1], [0], [0], [1], [0, 0, 1, 1], [], []>} : vector<2x128xf32>, vector<128x32xf32>, vector<2x32xf32> -> vector<2x32xf32>
    %779 = vector.broadcast %649 : vector<1x32xf32> to vector<2x32xf32>
    %780 = arith.addf %778, %779 : vector<2x32xf32>
    %781 = arith.addf %752, %780 : vector<2x32xf32>
    %c5_430 = arith.constant 5 : index
    %c0_431 = arith.constant 0 : index
    %c0_432 = arith.constant 0 : index
    %782 = vector.load %arg3[%c5_430, %c0_431, %c0_432] : memref<6x12x128xf32, #tpu.memory_space<vmem>>, vector<1x1x32xf32>
    %783 = vector.shape_cast %782 : vector<1x1x32xf32> to vector<1x32xf32>
    %c5_433 = arith.constant 5 : index
    %c1_434 = arith.constant 1 : index
    %c0_435 = arith.constant 0 : index
    %784 = vector.load %arg3[%c5_433, %c1_434, %c0_435] : memref<6x12x128xf32, #tpu.memory_space<vmem>>, vector<1x1x32xf32>
    %785 = vector.shape_cast %784 : vector<1x1x32xf32> to vector<1x32xf32>
    %c5_436 = arith.constant 5 : index
    %c2_437 = arith.constant 2 : index
    %c0_438 = arith.constant 0 : index
    %786 = vector.load %arg3[%c5_436, %c2_437, %c0_438] : memref<6x12x128xf32, #tpu.memory_space<vmem>>, vector<1x1x64xf32>
    %787 = vector.shape_cast %786 : vector<1x1x64xf32> to vector<1x64xf32>
    %c5_439 = arith.constant 5 : index
    %c3_440 = arith.constant 3 : index
    %c0_441 = arith.constant 0 : index
    %788 = vector.load %arg3[%c5_439, %c3_440, %c0_441] : memref<6x12x128xf32, #tpu.memory_space<vmem>>, vector<1x1x64xf32>
    %789 = vector.shape_cast %788 : vector<1x1x64xf32> to vector<1x64xf32>
    %c5_442 = arith.constant 5 : index
    %c4_443 = arith.constant 4 : index
    %c0_444 = arith.constant 0 : index
    %790 = vector.load %arg3[%c5_442, %c4_443, %c0_444] : memref<6x12x128xf32, #tpu.memory_space<vmem>>, vector<1x1x64xf32>
    %791 = vector.shape_cast %790 : vector<1x1x64xf32> to vector<1x64xf32>
    %c5_445 = arith.constant 5 : index
    %c5_446 = arith.constant 5 : index
    %c0_447 = arith.constant 0 : index
    %792 = vector.load %arg3[%c5_445, %c5_446, %c0_447] : memref<6x12x128xf32, #tpu.memory_space<vmem>>, vector<1x1x16xf32>
    %793 = vector.shape_cast %792 : vector<1x1x16xf32> to vector<1x16xf32>
    %c5_448 = arith.constant 5 : index
    %c6_449 = arith.constant 6 : index
    %c0_450 = arith.constant 0 : index
    %794 = vector.load %arg3[%c5_448, %c6_449, %c0_450] : memref<6x12x128xf32, #tpu.memory_space<vmem>>, vector<1x1x16xf32>
    %795 = vector.shape_cast %794 : vector<1x1x16xf32> to vector<1x16xf32>
    %c5_451 = arith.constant 5 : index
    %c7_452 = arith.constant 7 : index
    %c0_453 = arith.constant 0 : index
    %796 = vector.load %arg3[%c5_451, %c7_452, %c0_453] : memref<6x12x128xf32, #tpu.memory_space<vmem>>, vector<1x1x16xf32>
    %797 = vector.shape_cast %796 : vector<1x1x16xf32> to vector<1x16xf32>
    %c5_454 = arith.constant 5 : index
    %c8_455 = arith.constant 8 : index
    %c0_456 = arith.constant 0 : index
    %798 = vector.load %arg3[%c5_454, %c8_455, %c0_456] : memref<6x12x128xf32, #tpu.memory_space<vmem>>, vector<1x1x16xf32>
    %799 = vector.shape_cast %798 : vector<1x1x16xf32> to vector<1x16xf32>
    %c5_457 = arith.constant 5 : index
    %c9_458 = arith.constant 9 : index
    %c0_459 = arith.constant 0 : index
    %800 = vector.load %arg3[%c5_457, %c9_458, %c0_459] : memref<6x12x128xf32, #tpu.memory_space<vmem>>, vector<1x1x128xf32>
    %801 = vector.shape_cast %800 : vector<1x1x128xf32> to vector<1x128xf32>
    %c5_460 = arith.constant 5 : index
    %c10_461 = arith.constant 10 : index
    %c0_462 = arith.constant 0 : index
    %802 = vector.load %arg3[%c5_460, %c10_461, %c0_462] : memref<6x12x128xf32, #tpu.memory_space<vmem>>, vector<1x1x32xf32>
    %803 = vector.shape_cast %802 : vector<1x1x32xf32> to vector<1x32xf32>
    %c5_463 = arith.constant 5 : index
    %c11_464 = arith.constant 11 : index
    %c0_465 = arith.constant 0 : index
    %804 = vector.load %arg3[%c5_463, %c11_464, %c0_465] : memref<6x12x128xf32, #tpu.memory_space<vmem>>, vector<1x1x32xf32>
    %805 = vector.shape_cast %804 : vector<1x1x32xf32> to vector<1x32xf32>
    %c5_466 = arith.constant 5 : index
    %c0_467 = arith.constant 0 : index
    %806 = memref.load %arg2[%c5_466, %c0_467] : memref<6x2xf32, #tpu.memory_space<smem>>
    %c5_468 = arith.constant 5 : index
    %c1_469 = arith.constant 1 : index
    %807 = memref.load %arg2[%c5_468, %c1_469] : memref<6x2xf32, #tpu.memory_space<smem>>
    %808 = vector.broadcast %783 : vector<1x32xf32> to vector<2x32xf32>
    %809 = arith.mulf %808, %781 : vector<2x32xf32>
    %810 = arith.mulf %781, %781 : vector<2x32xf32>
    %cst_470 = arith.constant dense<0.000000e+00> : vector<2xf32>
    %811 = vector.multi_reduction <add>, %810, %cst_470 [1] : vector<2x32xf32> to vector<2xf32>
    %812 = vector.shape_cast %811 : vector<2xf32> to vector<2x1xf32>
    %cst_471 = arith.constant 9.99999997E-7 : f32
    %813 = vector.broadcast %cst_471 : f32 to vector<2x1xf32>
    %814 = arith.addf %812, %813 : vector<2x1xf32>
    %815 = math.rsqrt %814 : vector<2x1xf32>
    %816 = vector.broadcast %815 : vector<2x1xf32> to vector<2x32xf32>
    %817 = arith.mulf %809, %816 : vector<2x32xf32>
    %c5_472 = arith.constant 5 : index
    %c0_473 = arith.constant 0 : index
    %c0_474 = arith.constant 0 : index
    %818 = vector.load %arg4[%c5_472, %c0_473, %c0_474] : memref<6x32x64xf32, #tpu.memory_space<vmem>>, vector<1x32x64xf32>
    %819 = vector.shape_cast %818 : vector<1x32x64xf32> to vector<32x64xf32>
    %cst_475 = arith.constant dense<0.000000e+00> : vector<2x64xf32>
    %820 = tpu.matmul %817, %819, %cst_475 {dimension_numbers = #tpu.dot_dimension_numbers<[1], [0], [0], [1], [0, 0, 1, 1], [], []>} : vector<2x32xf32>, vector<32x64xf32>, vector<2x64xf32> -> vector<2x64xf32>
    %c5_476 = arith.constant 5 : index
    %c0_477 = arith.constant 0 : index
    %c0_478 = arith.constant 0 : index
    %821 = vector.load %arg5[%c5_476, %c0_477, %c0_478] : memref<6x32x64xf32, #tpu.memory_space<vmem>>, vector<1x32x64xf32>
    %822 = vector.shape_cast %821 : vector<1x32x64xf32> to vector<32x64xf32>
    %cst_479 = arith.constant dense<0.000000e+00> : vector<2x64xf32>
    %823 = tpu.matmul %817, %822, %cst_479 {dimension_numbers = #tpu.dot_dimension_numbers<[1], [0], [0], [1], [0, 0, 1, 1], [], []>} : vector<2x32xf32>, vector<32x64xf32>, vector<2x64xf32> -> vector<2x64xf32>
    %c5_480 = arith.constant 5 : index
    %c0_481 = arith.constant 0 : index
    %c0_482 = arith.constant 0 : index
    %824 = vector.load %arg6[%c5_480, %c0_481, %c0_482] : memref<6x32x16xf32, #tpu.memory_space<vmem>>, vector<1x32x16xf32>
    %825 = vector.shape_cast %824 : vector<1x32x16xf32> to vector<32x16xf32>
    %cst_483 = arith.constant dense<0.000000e+00> : vector<2x16xf32>
    %826 = tpu.matmul %817, %825, %cst_483 {dimension_numbers = #tpu.dot_dimension_numbers<[1], [0], [0], [1], [0, 0, 1, 1], [], []>} : vector<2x32xf32>, vector<32x16xf32>, vector<2x16xf32> -> vector<2x16xf32>
    %c5_484 = arith.constant 5 : index
    %c0_485 = arith.constant 0 : index
    %c0_486 = arith.constant 0 : index
    %827 = vector.load %arg7[%c5_484, %c0_485, %c0_486] : memref<6x32x16xf32, #tpu.memory_space<vmem>>, vector<1x32x16xf32>
    %828 = vector.shape_cast %827 : vector<1x32x16xf32> to vector<32x16xf32>
    %cst_487 = arith.constant dense<0.000000e+00> : vector<2x16xf32>
    %829 = tpu.matmul %817, %828, %cst_487 {dimension_numbers = #tpu.dot_dimension_numbers<[1], [0], [0], [1], [0, 0, 1, 1], [], []>} : vector<2x32xf32>, vector<32x16xf32>, vector<2x16xf32> -> vector<2x16xf32>
    %830 = vector.broadcast %805 : vector<1x32xf32> to vector<2x32xf32>
    %831 = arith.mulf %817, %830 : vector<2x32xf32>
    %cst_488 = arith.constant dense<0.000000e+00> : vector<2xf32>
    %832 = vector.multi_reduction <add>, %831, %cst_488 [1] : vector<2x32xf32> to vector<2xf32>
    %833 = vector.shape_cast %832 : vector<2xf32> to vector<2x1xf32>
    %834 = vector.broadcast %806 : f32 to vector<2x1xf32>
    %835 = arith.addf %833, %834 : vector<2x1xf32>
    %cst_489 = arith.constant 0.000000e+00 : f32
    %836 = vector.broadcast %cst_489 : f32 to vector<2x1xf32>
    %837 = arith.maximumf %835, %836 : vector<2x1xf32>
    %838 = math.absf %835 : vector<2x1xf32>
    %cst_490 = arith.constant 0.000000e+00 : f32
    %839 = vector.broadcast %cst_490 : f32 to vector<2x1xf32>
    %840 = arith.subf %839, %838 : vector<2x1xf32>
    %841 = math.exp %840 : vector<2x1xf32>
    %cst_491 = arith.constant 1.000000e+00 : f32
    %842 = vector.broadcast %cst_491 : f32 to vector<2x1xf32>
    %843 = arith.addf %842, %841 : vector<2x1xf32>
    %844 = math.log %843 : vector<2x1xf32>
    %845 = arith.addf %837, %844 : vector<2x1xf32>
    %846 = vector.broadcast %789 : vector<1x64xf32> to vector<2x64xf32>
    %847 = arith.mulf %823, %846 : vector<2x64xf32>
    %848 = vector.broadcast %791 : vector<1x64xf32> to vector<2x64xf32>
    %849 = arith.addf %847, %848 : vector<2x64xf32>
    %850 = arith.negf %849 : vector<2x64xf32>
    %851 = math.exp %850 : vector<2x64xf32>
    %cst_492 = arith.constant 1.000000e+00 : f32
    %852 = vector.broadcast %cst_492 : f32 to vector<2x64xf32>
    %853 = arith.addf %852, %851 : vector<2x64xf32>
    %854 = arith.divf %852, %853 : vector<2x64xf32>
    %855 = arith.mulf %849, %854 : vector<2x64xf32>
    %856 = vector.broadcast %793 : vector<1x16xf32> to vector<2x16xf32>
    %857 = arith.mulf %826, %856 : vector<2x16xf32>
    %858 = vector.broadcast %795 : vector<1x16xf32> to vector<2x16xf32>
    %859 = arith.addf %857, %858 : vector<2x16xf32>
    %860 = arith.negf %859 : vector<2x16xf32>
    %861 = math.exp %860 : vector<2x16xf32>
    %cst_493 = arith.constant 1.000000e+00 : f32
    %862 = vector.broadcast %cst_493 : f32 to vector<2x16xf32>
    %863 = arith.addf %862, %861 : vector<2x16xf32>
    %864 = arith.divf %862, %863 : vector<2x16xf32>
    %865 = arith.mulf %859, %864 : vector<2x16xf32>
    %866 = vector.broadcast %797 : vector<1x16xf32> to vector<2x16xf32>
    %867 = arith.mulf %829, %866 : vector<2x16xf32>
    %868 = vector.broadcast %799 : vector<1x16xf32> to vector<2x16xf32>
    %869 = arith.addf %867, %868 : vector<2x16xf32>
    %870 = arith.negf %869 : vector<2x16xf32>
    %871 = math.exp %870 : vector<2x16xf32>
    %cst_494 = arith.constant 1.000000e+00 : f32
    %872 = vector.broadcast %cst_494 : f32 to vector<2x16xf32>
    %873 = arith.addf %872, %871 : vector<2x16xf32>
    %874 = arith.divf %872, %873 : vector<2x16xf32>
    %875 = arith.mulf %869, %874 : vector<2x16xf32>
    %876 = arith.mulf %865, %875 : vector<2x16xf32>
    %cst_495 = arith.constant dense<0.000000e+00> : vector<2xf32>
    %877 = vector.multi_reduction <add>, %876, %cst_495 [1] : vector<2x16xf32> to vector<2xf32>
    %878 = vector.shape_cast %877 : vector<2xf32> to vector<2x1xf32>
    %879 = arith.mulf %845, %878 : vector<2x1xf32>
    %880 = vector.broadcast %807 : f32 to vector<2x1xf32>
    %881 = arith.addf %879, %880 : vector<2x1xf32>
    %882 = vector.broadcast %881 : vector<2x1xf32> to vector<2x64xf32>
    %883 = arith.mulf %855, %882 : vector<2x64xf32>
    %884 = arith.negf %820 : vector<2x64xf32>
    %885 = math.exp %884 : vector<2x64xf32>
    %cst_496 = arith.constant 1.000000e+00 : f32
    %886 = vector.broadcast %cst_496 : f32 to vector<2x64xf32>
    %887 = arith.addf %886, %885 : vector<2x64xf32>
    %888 = arith.divf %886, %887 : vector<2x64xf32>
    %889 = arith.mulf %820, %888 : vector<2x64xf32>
    %890 = arith.mulf %883, %889 : vector<2x64xf32>
    %891 = arith.mulf %890, %890 : vector<2x64xf32>
    %cst_497 = arith.constant dense<0.000000e+00> : vector<2xf32>
    %892 = vector.multi_reduction <add>, %891, %cst_497 [1] : vector<2x64xf32> to vector<2xf32>
    %893 = vector.shape_cast %892 : vector<2xf32> to vector<2x1xf32>
    %cst_498 = arith.constant 6.400000e+01 : f32
    %894 = vector.broadcast %cst_498 : f32 to vector<2x1xf32>
    %895 = arith.divf %893, %894 : vector<2x1xf32>
    %cst_499 = arith.constant 9.99999974E-6 : f32
    %896 = vector.broadcast %cst_499 : f32 to vector<2x1xf32>
    %897 = arith.addf %895, %896 : vector<2x1xf32>
    %898 = math.rsqrt %897 : vector<2x1xf32>
    %899 = vector.broadcast %898 : vector<2x1xf32> to vector<2x64xf32>
    %900 = arith.mulf %890, %899 : vector<2x64xf32>
    %901 = vector.broadcast %787 : vector<1x64xf32> to vector<2x64xf32>
    %902 = arith.mulf %900, %901 : vector<2x64xf32>
    %c5_500 = arith.constant 5 : index
    %c0_501 = arith.constant 0 : index
    %c0_502 = arith.constant 0 : index
    %903 = vector.load %arg8[%c5_500, %c0_501, %c0_502] : memref<6x64x32xf32, #tpu.memory_space<vmem>>, vector<1x64x32xf32>
    %904 = vector.shape_cast %903 : vector<1x64x32xf32> to vector<64x32xf32>
    %cst_503 = arith.constant dense<0.000000e+00> : vector<2x32xf32>
    %905 = tpu.matmul %902, %904, %cst_503 {dimension_numbers = #tpu.dot_dimension_numbers<[1], [0], [0], [1], [0, 0, 1, 1], [], []>} : vector<2x64xf32>, vector<64x32xf32>, vector<2x32xf32> -> vector<2x32xf32>
    %906 = arith.addf %781, %905 : vector<2x32xf32>
    %907 = vector.broadcast %785 : vector<1x32xf32> to vector<2x32xf32>
    %908 = arith.mulf %907, %906 : vector<2x32xf32>
    %909 = arith.mulf %906, %906 : vector<2x32xf32>
    %cst_504 = arith.constant dense<0.000000e+00> : vector<2xf32>
    %910 = vector.multi_reduction <add>, %909, %cst_504 [1] : vector<2x32xf32> to vector<2xf32>
    %911 = vector.shape_cast %910 : vector<2xf32> to vector<2x1xf32>
    %cst_505 = arith.constant 9.99999997E-7 : f32
    %912 = vector.broadcast %cst_505 : f32 to vector<2x1xf32>
    %913 = arith.addf %911, %912 : vector<2x1xf32>
    %914 = math.rsqrt %913 : vector<2x1xf32>
    %915 = vector.broadcast %914 : vector<2x1xf32> to vector<2x32xf32>
    %916 = arith.mulf %908, %915 : vector<2x32xf32>
    %c5_506 = arith.constant 5 : index
    %c0_507 = arith.constant 0 : index
    %c0_508 = arith.constant 0 : index
    %917 = vector.load %arg9[%c5_506, %c0_507, %c0_508] : memref<6x32x128xf32, #tpu.memory_space<vmem>>, vector<1x32x128xf32>
    %918 = vector.shape_cast %917 : vector<1x32x128xf32> to vector<32x128xf32>
    %cst_509 = arith.constant dense<0.000000e+00> : vector<2x128xf32>
    %919 = tpu.matmul %916, %918, %cst_509 {dimension_numbers = #tpu.dot_dimension_numbers<[1], [0], [0], [1], [0, 0, 1, 1], [], []>} : vector<2x32xf32>, vector<32x128xf32>, vector<2x128xf32> -> vector<2x128xf32>
    %920 = vector.broadcast %801 : vector<1x128xf32> to vector<2x128xf32>
    %921 = arith.addf %919, %920 : vector<2x128xf32>
    %cst_510 = arith.constant 5.000000e-01 : f32
    %922 = vector.broadcast %cst_510 : f32 to vector<2x128xf32>
    %923 = arith.mulf %922, %921 : vector<2x128xf32>
    %cst_511 = arith.constant 0.707106769 : f32
    %924 = vector.broadcast %cst_511 : f32 to vector<2x128xf32>
    %925 = arith.mulf %921, %924 : vector<2x128xf32>
    %926 = math.erf %925 : vector<2x128xf32>
    %cst_512 = arith.constant 1.000000e+00 : f32
    %927 = vector.broadcast %cst_512 : f32 to vector<2x128xf32>
    %928 = arith.addf %927, %926 : vector<2x128xf32>
    %929 = arith.mulf %923, %928 : vector<2x128xf32>
    %c5_513 = arith.constant 5 : index
    %c0_514 = arith.constant 0 : index
    %c0_515 = arith.constant 0 : index
    %930 = vector.load %arg10[%c5_513, %c0_514, %c0_515] : memref<6x128x32xf32, #tpu.memory_space<vmem>>, vector<1x128x32xf32>
    %931 = vector.shape_cast %930 : vector<1x128x32xf32> to vector<128x32xf32>
    %cst_516 = arith.constant dense<0.000000e+00> : vector<2x32xf32>
    %932 = tpu.matmul %929, %931, %cst_516 {dimension_numbers = #tpu.dot_dimension_numbers<[1], [0], [0], [1], [0, 0, 1, 1], [], []>} : vector<2x128xf32>, vector<128x32xf32>, vector<2x32xf32> -> vector<2x32xf32>
    %933 = vector.broadcast %803 : vector<1x32xf32> to vector<2x32xf32>
    %934 = arith.addf %932, %933 : vector<2x32xf32>
    %935 = arith.addf %906, %934 : vector<2x32xf32>
    %c0_517 = arith.constant 0 : index
    %c0_518 = arith.constant 0 : index
    %936 = vector.load %arg11[%c0_517, %c0_518] : memref<2x32xf32, #tpu.memory_space<vmem>>, vector<2x32xf32>
    tpu.vector_store %arg11[%c0_517, %c0_518], %935 {strides = array<i32>} : memref<2x32xf32, #tpu.memory_space<vmem>>, vector<2x32xf32>,
    return
  }
}

</mosaic_0001>

<bundles_post_ra>
// kernel: submodel3_forward.1
= control target key start
LH: loop header
LB: loop body
LE: loop exit
PB: predicated region body
PF: predicated region fallthrough
CT: control target
= control target key end

     0   :  { %16 = vsyncpa [#allocation4], 0  ;;  %s4984_s0 = inlined_call_operand.vmem [shape: f32[2,8,32], index: 0, kind: input, shape index: {}]   ;;  %s4985_s1 = inlined_call_operand.vmem [shape: f32[2,8], index: 1, kind: input, shape index: {}]   ;;  %s4986_s2 = inlined_call_operand.vmem [shape: f32[6,2], index: 2, kind: input, shape index: {}]   ;;  %s4987_s3 = inlined_call_operand.vmem [shape: f32[6,12,128], index: 3, kind: input, shape index: {}]   ;;  %s4988_s4 = inlined_call_operand.vmem [shape: f32[6,32,64], index: 4, kind: input, shape index: {}]   ;;  %s4989_s5 = inlined_call_operand.vmem [shape: f32[6,32,64], index: 5, kind: input, shape index: {}]   ;;  %s4990_s6 = inlined_call_operand.vmem [shape: f32[6,32,16], index: 6, kind: input, shape index: {}]   ;;  %s4991_s7 = inlined_call_operand.vmem [shape: f32[6,32,16], index: 7, kind: input, shape index: {}]   ;;  %s4992_s8 = inlined_call_operand.vmem [shape: f32[6,64,32], index: 8, kind: input, shape index: {}]   ;;  %s4993_s9 = inlined_call_operand.vmem [shape: f32[6,32,128], index: 9, kind: input, shape index: {}]   ;;  %s4994_s10 = inlined_call_operand.vmem [shape: f32[6,128,32], index: 10, kind: input, shape index: {}]   ;;  %s4995_s11 = inlined_call_operand.hbm [shape: f32[2,32], index: 11, kind: output, shape index: {}]  }
   0x1   :  { %17 = vsyncpa [#allocation3], 0  ;;  %s27_s19 = sshll.u32 %s4986_s2, 4  ;;  %s3602_s20 = smov [#allocation2]   ;;  %s28_s19 = int_to_ptr.vmem [resolvable:$true] %s27_s19 }
   0x2   :  { %30 = dma.vmem_to_smem %s28_s19, 128, %s3602_s20, [#allocation4]  }
   0x3   :  { %3598 = dma.done.wait [#allocation4], 128  }
   0x4   :  { %3599 = vsyncadd [#allocation4], 4294967168 }
   0x5   :  { %51 = sfence }
   0x6   :  { %v54_v0 = vld [vmem:[%s4985_s1] sm:$0x3]  ;;  %vm71_vm0 = vcmask 58368   ;;  %v56_v1 = vlaneseq  ;;  %vm75_vm1 = vcmask 261120   ;;  %v53_v19 = vld [vmem:[%s4984_s0 + $0x8] sm:$0xff]  ;;  %vm154_vm10 = vcmask 254976  }
   0x7   :  { %v72_v2 = vsel %vm71_vm0, %v54_v0, 0.0  ;;  %v55_v3 = vperm.slane %v54_v0, 0  ;;  %v62_v5 = vperm.slane %v54_v0, 1  ;;  %v52_v9 = vld [vmem:[%s4984_s0] sm:$0xff]  ;;  %vm143_vm11 = vcmask 1041409   ;;  %v173_v57 = vld [vmem:[%s4988_s4 + $0x18] sm:$0xff] }
   0x8   :  { %73 = vadd.xlane.f32.xlu0 %v72_v2  ;;  %v57_v4 = vshrl.u32 %v56_v1, 7  ;;  %v200_v58 = vld [vmem:[%s4989_s5 + $0x18] sm:$0xff]  ;;  %189 = vmatpush.msra.mxu0 %v173_v57  ;;  %v172_v61 = vld [vmem:[%s4988_s4 + $0x10] sm:$0xff]  ;;  %v171_v1 = vld [vmem:[%s4988_s4 + $0x8] sm:$0xff]  ;;  %s137_s26 = sld [smem:[#allocation2]]  ;;  %s2944_s12 = sshll.u32 %s4995_s11, 4  ;;  %s2945_s12 = int_to_ptr.hbm [resolvable:$true] %s2944_s12 }
   0x9   :  { %v224_v59 = vld [vmem:[%s4990_s6 + $0x18] sm:$0xff]  ;;  %213 = vmatpush.msra.mxu1 %v200_v58  ;;  %v199_v62 = vld [vmem:[%s4989_s5 + $0x10] sm:$0xff]  ;;  %v198_v2 = vld [vmem:[%s4989_s5 + $0x8] sm:$0xff]  ;;  %s2954_s29 = sld [smem:[#allocation2 + $0x1]] }
   0xa   :  { %3315 = vset.pattern.permute.xlu1 %v57_v4  ;;  %3314 = vset.pattern.permute.xlu0 %v57_v4  ;;  %v248_v60 = vld [vmem:[%s4991_s7 + $0x18] sm:$0xff]  ;;  %v223_v63 = vld [vmem:[%s4990_s6 + $0x10] sm:$0xff]  ;;  %v246_v4 = vld [vmem:[%s4991_s7 + $0x8] sm:$0xff]  ;;  %s2978_s30 = sld [smem:[#allocation2 + $0x80]] }
   0xb   :  { %237 = vmatpush.msra.mxu2 %v224_v59  ;;  %261 = vmatpush.msra.mxu3 %v248_v60  ;;  %v247_v0 = vld [vmem:[%s4991_s7 + $0x10] sm:$0xff]  ;;  %s2979_s14 = sld [smem:[#allocation2 + $0x81]] }
   0xc   :  { %190 = vmatpush.msra.mxu0 %v172_v61  ;;  %214 = vmatpush.msra.mxu1 %v199_v62  ;;  %s3047_s15 = sld [smem:[#allocation2 + $0x100]] }
   0xd   :  { %238 = vmatpush.msra.mxu2 %v223_v63  ;;  %262 = vmatpush.msra.mxu3 %v247_v0  ;;  %s3048_s18 = sld [smem:[#allocation2 + $0x101]] }
   0xe   :  { %191 = vmatpush.msra.mxu0 %v171_v1  ;;  %215 = vmatpush.msra.mxu1 %v198_v2  ;;  %s3116_s19 = sld [smem:[#allocation2 + $0x180]] }
   0xf   :  { %263 = vmatpush.msra.mxu3 %v246_v4  ;;  %v3318_v4 = vld [vmem:[%s4987_s3 + $0x3] ss:$0 sm:$0xff]  ;;  %s3117_s22 = sld [smem:[#allocation2 + $0x181]] }
  0x10   :  { %s3185_s2 = sld [smem:[#allocation2 + $0x200]] }
  0x11   :  { %s3186_s24 = sld [smem:[#allocation2 + $0x201]] }
  0x12   :  { %60 = vperm.xlu1 %3315, %v55_v3   ;;  %v222_v3 = vld [vmem:[%s4990_s6 + $0x8] sm:$0xff] }
  0x13   :  { %239 = vmatpush.msra.mxu2 %v222_v3 }
  0x1c   :  { %67 = vperm.xlu0 %3314, %v62_v5   ;;  %v170_v5 = vld [vmem:[%s4988_s4] sm:$0xff] }
  0x1d   :  { %192 = vmatpush.msra.mxu0 %v170_v5 }
  0x7b   :  { %v74_v6 = vpop.xlane.xlu0 %73 }
  0x7c   :  { %v90_v7 = vadd.f32 1e-08, %v74_v6  ;;  %v197_v6 = vld [vmem:[%s4989_s5] sm:$0xff] }
  0x7d   :  { %216 = vmatpush.msra.mxu1 %v197_v6 }
  0x7e   :  { %v92_v8 = vrot.slane %v90_v7, 1  ;;  %3388 = vrcp.f32 %v90_v7  ;;  %vm100_vm4 = vweird.f32 %v90_v7  ;;  %v106_v35 = vand.u32 2147483648, %v90_v7 }
  0x7f   :  { %v104_v38 = vand.u32 2147483647, %v90_v7 }
  0x80   :  { %3390 = vrcp.f32 %v92_v8  ;;  %v121_v36 = vand.u32 2147483648, %v92_v8  ;;  %vm115_vm6 = vweird.f32 %v92_v8  ;;  %v119_v39 = vand.u32 2147483647, %v92_v8 }
  0x81   :  { %v107_v45 = vor.u32 1.1754944e-38, %v106_v35  ;;  %vm105_vm8 = vcmp.eq.f32.partialorder %v104_v38, 8.507059e+37 }
  0x82   :  { %v122_v46 = vor.u32 1.1754944e-38, %v121_v36  ;;  %vm120_vm9 = vcmp.eq.f32.partialorder %v119_v39, 8.507059e+37 }
  0x84   :  { %v61_v10 = vpop.permute.xlu1 %60  ;;  %v3389_v12 = vpop.eup %3388 }
  0x85   :  { %v69_v11 = vmul.f32 %v61_v10, %v52_v9  ;;  %v96_v16 = vmul.f32 %v3389_v12, %v90_v7  ;;  %vm101_vm2 = vweird.f32 %v3389_v12  ;;  %v221_v7 = vld [vmem:[%s4990_s6] sm:$0xff] }
  0x86   :  { %v3391_v13 = vpop.eup %3390  ;;  %vm3679_vm5 = vmor %vm100_vm4, %vm101_vm2  ;;  %240 = vmatpush.msra.mxu2 %v221_v7  ;;  %v3319_v7 = vld [vmem:[%s4987_s3 + $0x4] ss:$0 sm:$0xff] }
  0x87   :  { %v76_v14 = vsel %vm75_vm1, %v69_v11, 0.0  ;;  %v111_v18 = vmul.f32 %v3391_v13, %v92_v8  ;;  %v97_v20 = vsub.f32 1.0, %v96_v16  ;;  %vm116_vm3 = vweird.f32 %v3391_v13  ;;  %v245_v8 = vld [vmem:[%s4991_s7] sm:$0xff] }
  0x88   :  { %v77_v15 = vrot.slane %v76_v14, 4  ;;  %vm117_vm7 = vmor %vm115_vm6, %vm116_vm3  ;;  %264 = vmatpush.msra.mxu3 %v245_v8  ;;  %v3316_v16 = vld [vmem:[%s4987_s3] ss:$0 sm:$0xff] }
  0x89   :  { %v112_v22 = vsub.f32 1.0, %v111_v18  ;;  %v98_v26 = vmul.f32 %v3389_v12, %v97_v20 }
  0x8a   :  { %v78_v17 = vadd.f32 %v77_v15, %v76_v14 }
  0x8b   :  { %v113_v28 = vmul.f32 %v3391_v13, %v112_v22  ;;  %v99_v31 = vadd.f32 %v3389_v12, %v98_v26  ;;  %v3320_v26 = vld [vmem:[%s4987_s3 + $0x5] ss:$0 sm:$0xff] }
  0x8c   :  { %v79_v21 = vrot.slane %v78_v17, 2 }
  0x8d   :  { %v114_v33 = vadd.f32 %v3391_v13, %v113_v28  ;;  %v103_v41 = vsel %vm3679_vm5, %v3389_v12, %v99_v31  ;;  %v3321_v28 = vld [vmem:[%s4987_s3 + $0x6] ss:$0 sm:$0xff] }
  0x8e   :  { %v68_v23 = vpop.permute.xlu0 %67  ;;  %v80_v27 = vadd.f32 %v79_v21, %v78_v17  ;;  %v108_v48 = vsel %vm105_vm8, %v107_v45, %v103_v41  ;;  %v3317_v21 = vld [vmem:[%s4987_s3 + $0xb] ss:$0 sm:$0xff]  ;;  %vm358_vm8 = vcmask 123904  }
  0x8f   :  { %v70_v24 = vmul.f32 %v68_v23, %v53_v19  ;;  %v118_v43 = vsel %vm117_vm7, %v3391_v13, %v114_v33 }
  0x90   :  { %v81_v32 = vrot.slane %v80_v27, 1  ;;  %v123_v49 = vsel %vm120_vm9, %v122_v46, %v118_v43 }
  0x91   :  { %v83_v25 = vsel %vm75_vm1, %v70_v24, 0.0 }
  0x92   :  { %v84_v29 = vrot.slane %v83_v25, 4  ;;  %v82_v42 = vadd.f32 %v81_v32, %v80_v27  ;;  %v3322_v27 = vld [vmem:[%s4987_s3 + $0x7] ss:$0 sm:$0xff] }
  0x94   :  { %v85_v30 = vadd.f32 %v84_v29, %v83_v25  ;;  %v3685_v50 = vmul.f32 %v108_v48, %v82_v42  ;;  %v3323_v29 = vld [vmem:[%s4987_s3 + $0x8] ss:$0 sm:$0xff] }
  0x96   :  { %v86_v34 = vrot.slane %v85_v30, 2  ;;  %v147_v53 = vmul.f32 %v3685_v50, %v3685_v50 }
  0x98   :  { %v87_v40 = vadd.f32 %v86_v34, %v85_v30 }
  0x9a   :  { %v88_v44 = vrot.slane %v87_v40, 1 }
  0x9c   :  { %v89_v47 = vadd.f32 %v88_v44, %v87_v40 }
  0x9e   :  { %v3687_v51 = vmul.f32 %v123_v49, %v89_v47 }
  0xa0   :  { %v148_v52 = vmul.f32 %v3687_v51, %v3687_v51  ;;  %v142_v13 = vrot.slane %v3687_v51, 7 }
  0xa2   :  { %v151_v54 = vrot.slane %v148_v52, 7  ;;  %v144_v17 = vsel %vm143_vm11, %v142_v13, %v3685_v50 }
  0xa3   :  { %v146_v20 = vmul.f32 %v3316_v16, %v144_v17 }
  0xa4   :  { %v152_v55 = vsel %vm143_vm11, %v151_v54, %v147_v53 }
  0xa5   :  { %v155_v56 = vsel %vm154_vm10, %v152_v55, 0.0 }
  0xa6   :  { %156 = vadd.xlane.f32.xlu1 %v155_v56 }
 0x119   :  { %v157_v9 = vpop.xlane.xlu1 %156 }
 0x11a   :  { %v158_v10 = vadd.f32 1e-06, %v157_v9  ;;  %v274_v9 = vstv %s137_s26 }
 0x11c   :  { %3392 = vrsqrt.f32 %v158_v10  ;;  %vm165_vm13 = vweird.f32 %v158_v10 }
 0x122   :  { %v3393_v11 = vpop.eup %3392 }
 0x123   :  { %v160_v12 = vmul.f32 %v3393_v11, %v158_v10  ;;  %vm166_vm12 = vweird.f32 %v3393_v11 }
 0x124   :  { %vm167_vm14 = vmor %vm165_vm13, %vm166_vm12 }
 0x125   :  { %v161_v14 = vmul.f32 %v3393_v11, %v160_v12 }
 0x127   :  { %v162_v15 = vmul.f32 0.5, %v161_v14 }
 0x129   :  { %v163_v18 = vsub.f32 1.5, %v162_v15 }
 0x12b   :  { %v164_v19 = vmul.f32 %v3393_v11, %v163_v18 }
 0x12d   :  { %v168_v22 = vsel %vm167_vm14, %v3393_v11, %v164_v19 }
 0x12e   :  { %v169_v23 = vmul.f32 %v168_v22, %v146_v20 }
 0x130   :  { %2955 = vmatmul.msk.f32.vlgmr.msra.gmra.mxu0 %vm75_vm1, %v169_v23  ;;  %2956 = vmatmul.msk.f32.vlgmr.msra.gmra.mxu1 %vm75_vm1, %v169_v23  ;;  %v270_v24 = vmul.f32 %v3317_v21, %v169_v23 }
 0x131   :  { %2957 = vmatmul.msk.f32.vlgmr.msra.gmra.mxu2 %vm75_vm1, %v169_v23  ;;  %2958 = vmatmul.msk.f32.vlgmr.msra.gmra.mxu3 %vm75_vm1, %v169_v23 }
 0x132   :  { %v271_v25 = vsel %vm154_vm10, %v270_v24, 0.0 }
 0x133   :  { %272 = vadd.xlane.f32.xlu2 %v271_v25 }
 0x1a6   :  { %v273_v10 = vpop.xlane.xlu2 %272 }
 0x1a7   :  { %v275_v13 = vadd.f32 %v274_v9, %v273_v10 }
 0x1a9   :  { %v277_v15 = vand.u32 2147483647, %v275_v13 }
 0x1ab   :  { %v278_v17 = vsub.f32 0.0, %v277_v15 }
 0x1ad   :  { %v218_v5 = vpop.f32.mrf.mxu1  ;;  %v194_v11 = vpop.f32.mrf.mxu0  ;;  %v279_v20 = vmul.f32 1.442695, %v278_v17 }
 0x1ae   :  { %v286_v6 = vmul.f32 %v3318_v4, %v218_v5  ;;  %v2962_v14 = vmul.f32 -1.442695, %v194_v11  ;;  %v417_v4 = vld [vmem:[%s4992_s8 + $0x18] sm:$0xff] }
 0x1b0   :  { %v288_v8 = vadd.f32 %v3319_v7, %v286_v6  ;;  %v416_v6 = vld [vmem:[%s4992_s8 + $0x10] sm:$0xff]  ;;  %v415_v7 = vld [vmem:[%s4992_s8 + $0x8] sm:$0xff] }
 0x1b2   :  { %v2959_v12 = vmul.f32 -1.442695, %v288_v8 }
 0x1b4   :  { %v242_v30 = vpop.f32.mrf.mxu2  ;;  %v266_v31 = vpop.f32.mrf.mxu3 }
 0x1b5   :  { %v310_v32 = vmul.f32 %v3320_v26, %v242_v30  ;;  %v334_v33 = vmul.f32 %v3322_v27, %v266_v31 }
 0x1b7   :  { %v312_v34 = vadd.f32 %v3321_v28, %v310_v32  ;;  %v336_v35 = vadd.f32 %v3323_v29, %v334_v33 }
 0x1b9   :  { %v2960_v36 = vmul.f32 -1.442695, %v312_v34  ;;  %v2961_v37 = vmul.f32 -1.442695, %v336_v35 }
 0x1bb   :  { %3394 = vpow2.f32 %v2960_v36 }
 0x1bc   :  { %3396 = vpow2.f32 %v2961_v37 }
 0x1c1   :  { %v3395_v38 = vpop.eup %3394 }
 0x1c2   :  { %v316_v39 = vadd.f32 1.0, %v3395_v38  ;;  %v3397_v40 = vpop.eup %3396 }
 0x1c3   :  { %v340_v41 = vadd.f32 1.0, %v3397_v40 }
 0x1c4   :  { %3398 = vrcp.f32 %v316_v39  ;;  %v328_v47 = vand.u32 2147483648, %v316_v39  ;;  %v326_v49 = vand.u32 2147483647, %v316_v39  ;;  %vm322_vm0 = vweird.f32 %v316_v39 }
 0x1c5   :  { %3400 = vrcp.f32 %v340_v41  ;;  %v352_v53 = vand.u32 2147483648, %v340_v41  ;;  %v350_v56 = vand.u32 2147483647, %v340_v41  ;;  %vm346_vm5 = vweird.f32 %v340_v41 }
 0x1c6   :  { %v329_v57 = vor.u32 1.1754944e-38, %v328_v47  ;;  %vm327_vm4 = vcmp.eq.f32.partialorder %v326_v49, 8.507059e+37  ;;  %3402 = vpow2.f32 %v2959_v12  ;;  %v363_v47 = vstv %s2954_s29 }
 0x1c7   :  { %v353_v61 = vor.u32 1.1754944e-38, %v352_v53  ;;  %vm351_vm7 = vcmp.eq.f32.partialorder %v350_v56, 8.507059e+37  ;;  %3404 = vpow2.f32 %v2962_v14 }
 0x1ca   :  { %v3399_v42 = vpop.eup %3398 }
 0x1cb   :  { %v318_v43 = vmul.f32 %v3399_v42, %v316_v39  ;;  %v3401_v44 = vpop.eup %3400  ;;  %vm323_vm15 = vweird.f32 %v3399_v42  ;;  %v276_v39 = vmax.f32 %v275_v13, 0.0 }
 0x1cc   :  { %v342_v46 = vmul.f32 %v3401_v44, %v340_v41  ;;  %vm347_vm2 = vweird.f32 %v3401_v44  ;;  %vm324_vm3 = vmor %vm322_vm0, %vm323_vm15  ;;  %v3403_v16 = vpop.eup %3402 }
 0x1cd   :  { %v319_v45 = vsub.f32 1.0, %v318_v43  ;;  %vm348_vm6 = vmor %vm346_vm5, %vm347_vm2  ;;  %v3405_v18 = vpop.eup %3404  ;;  %v292_v19 = vadd.f32 1.0, %v3403_v16 }
 0x1ce   :  { %v343_v52 = vsub.f32 1.0, %v342_v46  ;;  %v369_v21 = vadd.f32 1.0, %v3405_v18 }
 0x1cf   :  { %v320_v48 = vmul.f32 %v3399_v42, %v319_v45  ;;  %3406 = vrcp.f32 %v292_v19  ;;  %vm298_vm12 = vweird.f32 %v292_v19  ;;  %v302_v36 = vand.u32 2147483647, %v292_v19 }
 0x1d0   :  { %v344_v55 = vmul.f32 %v3401_v44, %v343_v52  ;;  %3408 = vpow2.f32 %v279_v20  ;;  %v381_v38 = vand.u32 2147483648, %v369_v21  ;;  %vm375_vm15 = vweird.f32 %v369_v21  ;;  %v3324_v20 = vld [vmem:[%s4987_s3 + $0x2] ss:$0 sm:$0xff] }
 0x1d1   :  { %v321_v54 = vadd.f32 %v3399_v42, %v320_v48  ;;  %3410 = vrcp.f32 %v369_v21  ;;  %v379_v40 = vand.u32 2147483647, %v369_v21  ;;  %vm303_vm2 = vcmp.eq.f32.partialorder %v302_v36, 8.507059e+37 }
 0x1d2   :  { %v345_v59 = vadd.f32 %v3401_v44, %v344_v55  ;;  %v382_v45 = vor.u32 1.1754944e-38, %v381_v38 }
 0x1d3   :  { %v325_v58 = vsel %vm324_vm3, %v3399_v42, %v321_v54  ;;  %vm380_vm3 = vcmp.eq.f32.partialorder %v379_v40, 8.507059e+37 }
 0x1d4   :  { %v330_v60 = vsel %vm327_vm4, %v329_v57, %v325_v58  ;;  %v349_v63 = vsel %vm348_vm6, %v3401_v44, %v345_v59  ;;  %vm388_vm4 = vcmask 517120  }
 0x1d5   :  { %v332_v62 = vmul.f32 %v330_v60, %v312_v34  ;;  %v354_v0 = vsel %vm351_vm7, %v353_v61, %v349_v63  ;;  %v3407_v22 = vpop.eup %3406  ;;  %v304_v34 = vand.u32 2147483648, %v292_v19  ;;  %v3603_v60 = vmov 64.0  }
 0x1d6   :  { %v356_v1 = vmul.f32 %v354_v0, %v336_v35  ;;  %v3409_v23 = vpop.eup %3408  ;;  %v294_v25 = vmul.f32 %v3407_v22, %v292_v19  ;;  %vm299_vm9 = vweird.f32 %v3407_v22  ;;  %v420_v0 = vld [vmem:[%s4992_s8 + $0x30] sm:$0xff] }
 0x1d7   :  { %v3411_v24 = vpop.eup %3410  ;;  %v281_v26 = vadd.f32 1.0, %v3409_v23  ;;  %vm300_vm14 = vmor %vm298_vm12, %vm299_vm9  ;;  %v305_v42 = vor.u32 1.1754944e-38, %v304_v34  ;;  %vm422_vm12 = vcmask 523264   ;;  %v481_v34 = vld [vmem:[%s4993_s9] sm:$0xff] }
 0x1d8   :  { %v357_v2 = vmul.f32 %v356_v1, %v332_v62  ;;  %v371_v27 = vmul.f32 %v3411_v24, %v369_v21  ;;  %v295_v28 = vsub.f32 1.0, %v294_v25  ;;  %vm376_vm13 = vweird.f32 %v3411_v24  ;;  %v421_v62 = vld [vmem:[%s4992_s8 + $0x38] sm:$0xff]  ;;  %v419_v1 = vld [vmem:[%s4992_s8 + $0x28] sm:$0xff] }
 0x1d9   :  { %3412 = vlog2.f32 %v281_v26  ;;  %vm377_vm0 = vmor %vm375_vm15, %vm376_vm13  ;;  %434 = vmatpush.msrb.mxu3 %v421_v62 }
 0x1da   :  { %v359_v3 = vsel %vm358_vm8, %v357_v2, 0.0  ;;  %v372_v29 = vsub.f32 1.0, %v371_v27  ;;  %v296_v30 = vmul.f32 %v3407_v22, %v295_v28  ;;  %3414 = vrcp.f32 %v3603_v60 }
 0x1db   :  { %360 = vadd.xlane.f32.xlu2 %v359_v3  ;;  %435 = vmatpush.msrb.mxu3 %v420_v0  ;;  %v418_v3 = vld [vmem:[%s4992_s8 + $0x20] sm:$0xff] }
 0x1dc   :  { %v373_v31 = vmul.f32 %v3411_v24, %v372_v29  ;;  %v297_v33 = vadd.f32 %v3407_v22, %v296_v30 }
 0x1dd   :  { %436 = vmatpush.msrb.mxu3 %v419_v1  ;;  %v560_v1 = vld [vmem:[%s4994_s10 + $0x38] sm:$0xff] }
 0x1de   :  { %v374_v35 = vadd.f32 %v3411_v24, %v373_v31  ;;  %v301_v41 = vsel %vm300_vm14, %v3407_v22, %v297_v33  ;;  %v482_v33 = vld [vmem:[%s4993_s9 + $0x8] sm:$0xff] }
 0x1df   :  { %v3413_v32 = vpop.eup %3412  ;;  %v306_v46 = vsel %vm303_vm2, %v305_v42, %v301_v41  ;;  %437 = vmatpush.msrb.mxu3 %v418_v3  ;;  %v3325_v42 = vld [vmem:[%s4987_s3 + $0x1] ss:$0 sm:$0xff] }
 0x1e0   :  { %v283_v37 = vmul.f32 0.6931472, %v3413_v32  ;;  %v378_v43 = vsel %vm377_vm0, %v3411_v24, %v374_v35  ;;  %v308_v53 = vmul.f32 %v306_v46, %v288_v8  ;;  %v3415_v61 = vpop.eup %3414  ;;  %v414_v8 = vld [vmem:[%s4992_s8] sm:$0xff] }
 0x1e1   :  { %v383_v52 = vsel %vm380_vm3, %v382_v45, %v378_v43  ;;  %v393_v63 = vmul.f32 64.0, %v3415_v61  ;;  %438 = vmatpush.msrb.mxu3 %v417_v4  ;;  %vm397_vm5 = vweird.f32 %v3415_v61  ;;  %v559_v4 = vld [vmem:[%s4994_s10 + $0x30] sm:$0xff] }
 0x1e2   :  { %v284_v44 = vadd.f32 %v283_v37, %v276_v39  ;;  %v385_v55 = vmul.f32 %v383_v52, %v194_v11  ;;  %v567_v52 = vld [vmem:[%s4994_s10 + $0x70] sm:$0xff] }
 0x1e3   :  { %v394_v2 = vsub.f32 1.0, %v393_v63  ;;  %439 = vmatpush.msrb.mxu3 %v416_v6  ;;  %v561_v63 = vld [vmem:[%s4994_s10 + $0x40] sm:$0xff] }
 0x1e5   :  { %v395_v5 = vmul.f32 %v3415_v61, %v394_v2  ;;  %440 = vmatpush.msrb.mxu3 %v415_v7  ;;  %v558_v7 = vld [vmem:[%s4994_s10 + $0x28] sm:$0xff] }
 0x1e7   :  { %v396_v9 = vadd.f32 %v3415_v61, %v395_v5  ;;  %441 = vmatpush.msrb.mxu3 %v414_v8 }
 0x1e9   :  { %v3801_v10 = vsel %vm397_vm5, %v3415_v61, %v396_v9  ;;  %v562_v61 = vld [vmem:[%s4994_s10 + $0x48] sm:$0xff] }
 0x24e   :  { %v361_v48 = vpop.xlane.xlu2 %360 }
 0x24f   :  { %v362_v49 = vmul.f32 %v361_v48, %v284_v44 }
 0x251   :  { %v364_v54 = vadd.f32 %v363_v47, %v362_v49  ;;  %v568_v49 = vld [vmem:[%s4994_s10 + $0x78] sm:$0xff] }
 0x252   :  { %570 = vmatpush.msrb.mxu2 %v568_v49 }
 0x253   :  { %v365_v56 = vmul.f32 %v364_v54, %v308_v53  ;;  %v566_v53 = vld [vmem:[%s4994_s10 + $0x68] sm:$0xff] }
 0x254   :  { %571 = vmatpush.msrb.mxu2 %v567_v52  ;;  %v3326_v54 = vld [vmem:[%s4987_s3 + $0x9] ss:$0 sm:$0xff] }
 0x255   :  { %v386_v57 = vmul.f32 %v385_v55, %v365_v56  ;;  %v565_v55 = vld [vmem:[%s4994_s10 + $0x60] sm:$0xff]  ;;  %v564_v56 = vld [vmem:[%s4994_s10 + $0x58] sm:$0xff] }
 0x256   :  { %572 = vmatpush.msrb.mxu2 %v566_v53 }
 0x257   :  { %v387_v58 = vmul.f32 %v386_v57, %v386_v57 }
 0x258   :  { %573 = vmatpush.msrb.mxu2 %v565_v55 }
 0x259   :  { %v389_v59 = vsel %vm388_vm4, %v387_v58, 0.0 }
 0x25a   :  { %390 = vadd.xlane.f32.xlu2 %v389_v59  ;;  %574 = vmatpush.msrb.mxu2 %v564_v56  ;;  %v563_v59 = vld [vmem:[%s4994_s10 + $0x50] sm:$0xff] }
 0x25c   :  { %575 = vmatpush.msrb.mxu2 %v563_v59  ;;  %v2998_v59 = vld [vmem:[%s4991_s7 + $0x38] sm:$0xff] }
 0x25d   :  { %735 = vmatpush.msrb.mxu0 %v2998_v59 }
 0x25e   :  { %576 = vmatpush.msrb.mxu2 %v562_v61  ;;  %v2987_v61 = vld [vmem:[%s4989_s5 + $0x30] sm:$0xff] }
 0x260   :  { %577 = vmatpush.msrb.mxu2 %v561_v63  ;;  %v2981_v63 = vld [vmem:[%s4988_s4 + $0x28] sm:$0xff] }
 0x262   :  { %578 = vmatpush.msrb.mxu2 %v560_v1  ;;  %v2996_v1 = vld [vmem:[%s4991_s7 + $0x28] sm:$0xff] }
 0x264   :  { %579 = vmatpush.msrb.mxu2 %v559_v4  ;;  %v2995_v4 = vld [vmem:[%s4991_s7 + $0x20] sm:$0xff] }
 0x266   :  { %580 = vmatpush.msrb.mxu2 %v558_v7  ;;  %v2991_v7 = vld [vmem:[%s4990_s6 + $0x28] sm:$0xff] }
 0x2cd   :  { %v391_v11 = vpop.xlane.xlu2 %390 }
 0x2ce   :  { %v399_v12 = vmul.f32 %v3801_v10, %v391_v11  ;;  %v557_v11 = vld [vmem:[%s4994_s10 + $0x20] sm:$0xff] }
 0x2cf   :  { %581 = vmatpush.msrb.mxu2 %v557_v11 }
 0x2d0   :  { %v400_v13 = vadd.f32 1e-05, %v399_v12  ;;  %v556_v12 = vld [vmem:[%s4994_s10 + $0x18] sm:$0xff] }
 0x2d1   :  { %582 = vmatpush.msrb.mxu2 %v556_v12 }
 0x2d2   :  { %3416 = vrsqrt.f32 %v400_v13  ;;  %vm407_vm7 = vweird.f32 %v400_v13 }
 0x2d8   :  { %v3417_v14 = vpop.eup %3416 }
 0x2d9   :  { %v402_v15 = vmul.f32 %v3417_v14, %v400_v13  ;;  %vm408_vm6 = vweird.f32 %v3417_v14 }
 0x2da   :  { %vm409_vm9 = vmor %vm407_vm7, %vm408_vm6 }
 0x2db   :  { %v403_v16 = vmul.f32 %v3417_v14, %v402_v15 }
 0x2dd   :  { %v404_v17 = vmul.f32 0.5, %v403_v16 }
 0x2df   :  { %v405_v18 = vsub.f32 1.5, %v404_v17  ;;  %v554_v17 = vld [vmem:[%s4994_s10 + $0x8] sm:$0xff] }
 0x2e1   :  { %v406_v19 = vmul.f32 %v3417_v14, %v405_v18 }
 0x2e3   :  { %v410_v21 = vsel %vm409_vm9, %v3417_v14, %v406_v19  ;;  %v555_v14 = vld [vmem:[%s4994_s10 + $0x10] sm:$0xff]  ;;  %v553_v19 = vld [vmem:[%s4994_s10] sm:$0xff] }
 0x2e4   :  { %v411_v22 = vmul.f32 %v410_v21, %v386_v57  ;;  %583 = vmatpush.msrb.mxu2 %v555_v14 }
 0x2e6   :  { %v413_v23 = vmul.f32 %v3324_v20, %v411_v22  ;;  %584 = vmatpush.msrb.mxu2 %v554_v17  ;;  %v3328_v17 = vld [vmem:[%s4987_s3 + $0x10] ss:$0 sm:$0xff] }
 0x2e8   :  { %2963 = vmatmul.msk.f32.vlgmr.msrb.gmra.mxu3 %vm422_vm12, %v413_v23  ;;  %585 = vmatpush.msrb.mxu2 %v553_v19 }
 0x36b   :  { %v443_v24 = vpop.f32.mrf.mxu3 }
 0x36c   :  { %v447_v25 = vrot.slane %v443_v24, 1  ;;  %v3809_v26 = vadd.f32 %v443_v24, %v3685_v50  ;;  %v484_v50 = vld [vmem:[%s4993_s9 + $0x18] sm:$0xff] }
 0x36d   :  { %501 = vmatpush.msrb.mxu1 %v484_v50 }
 0x36e   :  { %v3812_v27 = vadd.f32 %v447_v25, %v3687_v51  ;;  %v459_v29 = vmul.f32 %v3809_v26, %v3809_v26  ;;  %v483_v51 = vld [vmem:[%s4993_s9 + $0x10] sm:$0xff] }
 0x36f   :  { %502 = vmatpush.msrb.mxu1 %v483_v51 }
 0x370   :  { %v460_v28 = vmul.f32 %v3812_v27, %v3812_v27  ;;  %v455_v39 = vrot.slane %v3812_v27, 7 }
 0x371   :  { %503 = vmatpush.msrb.mxu1 %v482_v33 }
 0x372   :  { %v463_v30 = vrot.slane %v460_v28, 7  ;;  %v456_v43 = vsel %vm143_vm11, %v455_v39, %v3809_v26 }
 0x373   :  { %504 = vmatpush.msrb.mxu1 %v481_v34  ;;  %v458_v46 = vmul.f32 %v3325_v42, %v456_v43 }
 0x374   :  { %v464_v31 = vsel %vm143_vm11, %v463_v30, %v459_v29 }
 0x375   :  { %v466_v32 = vsel %vm154_vm10, %v464_v31, 0.0 }
 0x376   :  { %467 = vadd.xlane.f32.xlu2 %v466_v32 }
 0x3e9   :  { %v468_v35 = vpop.xlane.xlu2 %467 }
 0x3ea   :  { %v469_v36 = vadd.f32 1e-06, %v468_v35 }
 0x3ec   :  { %3418 = vrsqrt.f32 %v469_v36  ;;  %vm476_vm14 = vweird.f32 %v469_v36 }
 0x3f2   :  { %v3419_v37 = vpop.eup %3418 }
 0x3f3   :  { %v471_v38 = vmul.f32 %v3419_v37, %v469_v36  ;;  %vm477_vm13 = vweird.f32 %v3419_v37 }
 0x3f4   :  { %vm478_vm15 = vmor %vm476_vm14, %vm477_vm13 }
 0x3f5   :  { %v472_v40 = vmul.f32 %v3419_v37, %v471_v38 }
 0x3f7   :  { %v473_v41 = vmul.f32 0.5, %v472_v40 }
 0x3f9   :  { %v474_v44 = vsub.f32 1.5, %v473_v41 }
 0x3fb   :  { %v475_v45 = vmul.f32 %v3419_v37, %v474_v44 }
 0x3fd   :  { %v479_v47 = vsel %vm478_vm15, %v3419_v37, %v475_v45 }
 0x3fe   :  { %v480_v48 = vmul.f32 %v479_v47, %v458_v46  ;;  %v3327_v46 = vld [vmem:[%s4987_s3 + $0xa] ss:$0 sm:$0xff] }
 0x400   :  { %2964 = vmatmul.msk.f32.vlgmr.msrb.gmra.mxu1 %vm75_vm1, %v480_v48 }
 0x47d   :  { %v506_v57 = vpop.f32.mrf.mxu1 }
 0x47e   :  { %v3857_v58 = vadd.f32 %v3326_v54, %v506_v57 }
 0x480   :  { %v510_v60 = vmul.f32 0.70710677, %v3857_v58  ;;  %v509_v43 = vmul.f32 0.5, %v3857_v58 }
 0x482   :  { %v511_v62 = vmul.f32 %v510_v60, %v510_v60 }
 0x484   :  { %v512_v0 = vmin.f32 %v511_v62, 16.0  ;;  %v2997_v62 = vld [vmem:[%s4991_s7 + $0x30] sm:$0xff] }
 0x485   :  { %736 = vmatpush.msrb.mxu0 %v2997_v62 }
 0x486   :  { %v513_v2 = vmul.f32 2.1237322e-06, %v512_v0  ;;  %v524_v3 = vmul.f32 3.8918573e-05, %v512_v0 }
 0x487   :  { %737 = vmatpush.msrb.mxu0 %v2996_v1 }
 0x488   :  { %v514_v5 = vadd.f32 0.00028619796, %v513_v2  ;;  %v525_v6 = vadd.f32 0.001143296, %v524_v3  ;;  %v2980_v2 = vld [vmem:[%s4988_s4 + $0x20] sm:$0xff] }
 0x489   :  { %v2985_v3 = vld [vmem:[%s4989_s5 + $0x20] sm:$0xff]  ;;  %738 = vmatpush.msrb.mxu0 %v2995_v4 }
 0x48a   :  { %v515_v8 = vmul.f32 %v514_v5, %v512_v0  ;;  %v526_v9 = vmul.f32 %v525_v6, %v512_v0  ;;  %v2993_v5 = vld [vmem:[%s4990_s6 + $0x38] sm:$0xff]  ;;  %v2992_v6 = vld [vmem:[%s4990_s6 + $0x30] sm:$0xff] }
 0x48c   :  { %v527_v13 = vadd.f32 0.014752088, %v526_v9  ;;  %v516_v15 = vadd.f32 0.0036580483, %v515_v8  ;;  %v2990_v8 = vld [vmem:[%s4990_s6 + $0x20] sm:$0xff] }
 0x48e   :  { %v528_v16 = vmul.f32 %v527_v13, %v512_v0  ;;  %v517_v20 = vmul.f32 %v516_v15, %v512_v0 }
 0x490   :  { %v529_v18 = vadd.f32 0.112945676, %v528_v16  ;;  %v518_v23 = vadd.f32 0.05243302, %v517_v20 }
 0x492   :  { %v530_v21 = vmul.f32 %v529_v18, %v512_v0  ;;  %v519_v28 = vmul.f32 %v518_v23, %v512_v0 }
 0x494   :  { %v531_v22 = vadd.f32 0.4994258, %v530_v21  ;;  %v520_v29 = vadd.f32 0.18741608, %v519_v28 }
 0x496   :  { %v532_v24 = vmul.f32 %v531_v22, %v512_v0  ;;  %v521_v31 = vmul.f32 %v520_v29, %v512_v0  ;;  %v2986_v0 = vld [vmem:[%s4989_s5 + $0x28] sm:$0xff]  ;;  %v3329_v22 = vld [vmem:[%s4987_s3 + $0x1b] ss:$0 sm:$0xff]  ;;  %v3332_v29 = vld [vmem:[%s4987_s3 + $0x17] ss:$0 sm:$0xff] }
 0x498   :  { %v533_v25 = vadd.f32 1.0, %v532_v24  ;;  %v522_v33 = vadd.f32 1.1283791, %v521_v31 }
 0x49a   :  { %3420 = vrcp.f32 %v533_v25  ;;  %v545_v51 = vand.u32 2147483648, %v533_v25  ;;  %v543_v35 = vand.u32 2147483647, %v533_v25  ;;  %vm539_vm2 = vweird.f32 %v533_v25 }
 0x49b   :  { %v523_v38 = vmul.f32 %v522_v33, %v510_v60  ;;  %v2982_v60 = vld [vmem:[%s4988_s4 + $0x30] sm:$0xff] }
 0x49c   :  { %v546_v37 = vor.u32 1.1754944e-38, %v545_v51  ;;  %vm544_vm5 = vcmp.eq.f32.partialorder %v543_v35, 8.507059e+37  ;;  %v3335_v35 = vld [vmem:[%s4987_s3 + $0x16] ss:$0 sm:$0xff] }
 0x4a0   :  { %v3421_v30 = vpop.eup %3420 }
 0x4a1   :  { %v535_v32 = vmul.f32 %v3421_v30, %v533_v25  ;;  %vm540_vm0 = vweird.f32 %v3421_v30 }
 0x4a2   :  { %vm541_vm3 = vmor %vm539_vm2, %vm540_vm0 }
 0x4a3   :  { %v536_v50 = vsub.f32 1.0, %v535_v32 }
 0x4a5   :  { %v537_v34 = vmul.f32 %v3421_v30, %v536_v50 }
 0x4a7   :  { %v538_v36 = vadd.f32 %v3421_v30, %v537_v34  ;;  %v3334_v34 = vld [vmem:[%s4987_s3 + $0x15] ss:$0 sm:$0xff] }
 0x4a9   :  { %v542_v39 = vsel %vm541_vm3, %v3421_v30, %v538_v36  ;;  %v3333_v30 = vld [vmem:[%s4987_s3 + $0x18] ss:$0 sm:$0xff] }
 0x4aa   :  { %v547_v40 = vsel %vm544_vm5, %v546_v37, %v542_v39 }
 0x4ab   :  { %v548_v41 = vmul.f32 %v547_v40, %v523_v38 }
 0x4ad   :  { %v2965_v42 = vclamps-f32 %v548_v41, 1.0 }
 0x4af   :  { %v551_v44 = vadd.f32 1.0, %v2965_v42 }
 0x4b1   :  { %v552_v45 = vmul.f32 %v551_v44, %v509_v43 }
 0x4b3   :  { %586 = vmatmul.f32.vlgmr.msrb.gmra.mxu2 %v552_v45 }
 0x536   :  { %v587_v47 = vpop.f32.mrf.mxu2 }
 0x537   :  { %v588_v48 = vadd.f32 %v3327_v46, %v587_v47 }
 0x539   :  { %v591_v49 = vrot.slane %v588_v48, 1  ;;  %v3898_v52 = vadd.f32 %v588_v48, %v3809_v26  ;;  %v2983_v26 = vld [vmem:[%s4988_s4 + $0x38] sm:$0xff] }
 0x53a   :  { %660 = vmatpush.msra.mxu3 %v2983_v26 }
 0x53b   :  { %v3901_v53 = vadd.f32 %v591_v49, %v3812_v27  ;;  %v618_v55 = vmul.f32 %v3898_v52, %v3898_v52  ;;  %v2988_v27 = vld [vmem:[%s4989_s5 + $0x38] sm:$0xff] }
 0x53c   :  { %685 = vmatpush.msra.mxu1 %v2988_v27  ;;  %661 = vmatpush.msra.mxu3 %v2982_v60 }
 0x53d   :  { %v619_v54 = vmul.f32 %v3901_v53, %v3901_v53  ;;  %v614_v14 = vrot.slane %v3901_v53, 7 }
 0x53e   :  { %686 = vmatpush.msra.mxu1 %v2987_v61  ;;  %662 = vmatpush.msra.mxu3 %v2981_v63 }
 0x53f   :  { %v622_v56 = vrot.slane %v619_v54, 7  ;;  %v615_v18 = vsel %vm143_vm11, %v614_v14, %v3898_v52 }
 0x540   :  { %687 = vmatpush.msra.mxu1 %v2986_v0  ;;  %663 = vmatpush.msra.mxu3 %v2980_v2  ;;  %v617_v21 = vmul.f32 %v3328_v17, %v615_v18 }
 0x541   :  { %v623_v57 = vsel %vm143_vm11, %v622_v56, %v618_v55 }
 0x542   :  { %v625_v58 = vsel %vm154_vm10, %v623_v57, 0.0  ;;  %688 = vmatpush.msra.mxu1 %v2985_v3  ;;  %710 = vmatpush.msrb.mxu3 %v2993_v5 }
 0x543   :  { %626 = vadd.xlane.f32.xlu2 %v625_v58 }
 0x544   :  { %711 = vmatpush.msrb.mxu3 %v2992_v6  ;;  %v3330_v6 = vld [vmem:[%s4987_s3 + $0x13] ss:$0 sm:$0xff] }
 0x546   :  { %712 = vmatpush.msrb.mxu3 %v2991_v7 }
 0x548   :  { %713 = vmatpush.msrb.mxu3 %v2990_v8 }
 0x5b6   :  { %v627_v9 = vpop.xlane.xlu2 %626 }
 0x5b7   :  { %v628_v11 = vadd.f32 1e-06, %v627_v9  ;;  %v3331_v9 = vld [vmem:[%s4987_s3 + $0x14] ss:$0 sm:$0xff] }
 0x5b9   :  { %3422 = vrsqrt.f32 %v628_v11  ;;  %vm635_vm7 = vweird.f32 %v628_v11 }
 0x5bf   :  { %v3423_v12 = vpop.eup %3422 }
 0x5c0   :  { %v630_v13 = vmul.f32 %v3423_v12, %v628_v11  ;;  %vm636_vm6 = vweird.f32 %v3423_v12 }
 0x5c1   :  { %vm637_vm9 = vmor %vm635_vm7, %vm636_vm6 }
 0x5c2   :  { %v631_v15 = vmul.f32 %v3423_v12, %v630_v13 }
 0x5c4   :  { %v632_v16 = vmul.f32 0.5, %v631_v15 }
 0x5c6   :  { %v633_v19 = vsub.f32 1.5, %v632_v16 }
 0x5c8   :  { %v634_v20 = vmul.f32 %v3423_v12, %v633_v19 }
 0x5ca   :  { %v638_v23 = vsel %vm637_vm9, %v3423_v12, %v634_v20  ;;  %v748_v12 = vstv %s2978_s30 }
 0x5cb   :  { %v639_v24 = vmul.f32 %v638_v23, %v617_v21 }
 0x5cd   :  { %2984 = vmatmul.msk.f32.vlgmr.msra.gmra.mxu3 %vm75_vm1, %v639_v24  ;;  %2989 = vmatmul.msk.f32.vlgmr.msra.gmra.mxu1 %vm75_vm1, %v639_v24  ;;  %v744_v25 = vmul.f32 %v3329_v22, %v639_v24 }
 0x5ce   :  { %2999 = vmatmul.msk.f32.vlgmr.msrb.gmra.mxu0 %vm75_vm1, %v639_v24 }
 0x5cf   :  { %v745_v28 = vsel %vm154_vm10, %v744_v25, 0.0 }
 0x5d0   :  { %746 = vadd.xlane.f32.xlu2 %v745_v28 }
 0x5d5   :  { %2994 = vmatmul.msk.f32.vlgmr.msrb.gmra.mxu3 %vm75_vm1, %v639_v24 }
 0x643   :  { %v747_v13 = vpop.xlane.xlu2 %746 }
 0x644   :  { %v749_v15 = vadd.f32 %v748_v12, %v747_v13 }
 0x646   :  { %v751_v17 = vand.u32 2147483647, %v749_v15 }
 0x648   :  { %v752_v19 = vsub.f32 0.0, %v751_v17 }
 0x64a   :  { %v690_v7 = vpop.f32.mrf.mxu1  ;;  %v753_v22 = vmul.f32 1.442695, %v752_v19 }
 0x64b   :  { %v740_v31 = vpop.f32.mrf.mxu0  ;;  %v760_v8 = vmul.f32 %v3330_v6, %v690_v7 }
 0x64c   :  { %v808_v32 = vmul.f32 %v3332_v29, %v740_v31 }
 0x64d   :  { %v762_v11 = vadd.f32 %v3331_v9, %v760_v8 }
 0x64e   :  { %v810_v50 = vadd.f32 %v3333_v30, %v808_v32 }
 0x64f   :  { %v3000_v14 = vmul.f32 -1.442695, %v762_v11 }
 0x650   :  { %v3002_v51 = vmul.f32 -1.442695, %v810_v50  ;;  %v3977_v33 = vpop.f32.mrf.mxu3 }
 0x651   :  { %v3003_v16 = vmul.f32 -1.442695, %v3977_v33 }
 0x652   :  { %3424 = vpow2.f32 %v3002_v51 }
 0x658   :  { %v3425_v36 = vpop.eup %3424  ;;  %v715_v37 = vpop.f32.mrf.mxu3 }
 0x659   :  { %v814_v38 = vadd.f32 1.0, %v3425_v36  ;;  %v784_v39 = vmul.f32 %v3334_v34, %v715_v37 }
 0x65b   :  { %3426 = vrcp.f32 %v814_v38  ;;  %v786_v40 = vadd.f32 %v3335_v35, %v784_v39  ;;  %v826_v55 = vand.u32 2147483648, %v814_v38  ;;  %vm820_vm14 = vweird.f32 %v814_v38 }
 0x65c   :  { %v824_v57 = vand.u32 2147483647, %v814_v38 }
 0x65d   :  { %v3001_v41 = vmul.f32 -1.442695, %v786_v40  ;;  %v827_v60 = vor.u32 1.1754944e-38, %v826_v55 }
 0x65e   :  { %vm825_vm3 = vcmp.eq.f32.partialorder %v824_v57, 8.507059e+37 }
 0x65f   :  { %3428 = vpow2.f32 %v3001_v41 }
 0x661   :  { %v3427_v42 = vpop.eup %3426 }
 0x662   :  { %v816_v43 = vmul.f32 %v3427_v42, %v814_v38  ;;  %vm821_vm13 = vweird.f32 %v3427_v42 }
 0x663   :  { %vm822_vm15 = vmor %vm820_vm14, %vm821_vm13 }
 0x664   :  { %v817_v46 = vsub.f32 1.0, %v816_v43 }
 0x665   :  { %v3429_v44 = vpop.eup %3428 }
 0x666   :  { %v790_v45 = vadd.f32 1.0, %v3429_v44  ;;  %v818_v47 = vmul.f32 %v3427_v42, %v817_v46 }
 0x668   :  { %3430 = vrcp.f32 %v790_v45  ;;  %v819_v54 = vadd.f32 %v3427_v42, %v818_v47  ;;  %v802_v58 = vand.u32 2147483648, %v790_v45  ;;  %v800_v27 = vand.u32 2147483647, %v790_v45 }
 0x669   :  { %vm796_vm2 = vweird.f32 %v790_v45  ;;  %3432 = vpow2.f32 %v3000_v14 }
 0x66a   :  { %v823_v59 = vsel %vm822_vm15, %v3427_v42, %v819_v54  ;;  %v803_v62 = vor.u32 1.1754944e-38, %v802_v58  ;;  %vm801_vm6 = vcmp.eq.f32.partialorder %v800_v27, 8.507059e+37  ;;  %3434 = vpow2.f32 %v3003_v16  ;;  %v3336_v16 = vld [vmem:[%s4987_s3 + $0x12] ss:$0 sm:$0xff] }
 0x66b   :  { %v828_v63 = vsel %vm825_vm3, %v827_v60, %v823_v59  ;;  %v750_v42 = vmax.f32 %v749_v15, 0.0  ;;  %v836_v54 = vstv %s2979_s14 }
 0x66c   :  { %v830_v3 = vmul.f32 %v828_v63, %v810_v50  ;;  %v3011_v63 = vld [vmem:[%s4992_s8 + $0x78] sm:$0xff] }
 0x66d   :  { %899 = vmatpush.msrb.mxu1 %v3011_v63 }
 0x66e   :  { %v3431_v48 = vpop.eup %3430 }
 0x66f   :  { %v792_v49 = vmul.f32 %v3431_v48, %v790_v45  ;;  %vm797_vm0 = vweird.f32 %v3431_v48  ;;  %v3433_v18 = vpop.eup %3432 }
 0x670   :  { %vm798_vm5 = vmor %vm796_vm2, %vm797_vm0  ;;  %v3435_v20 = vpop.eup %3434  ;;  %v766_v21 = vadd.f32 1.0, %v3433_v18 }
 0x671   :  { %v793_v56 = vsub.f32 1.0, %v792_v49  ;;  %v842_v23 = vadd.f32 1.0, %v3435_v20 }
 0x672   :  { %3436 = vrcp.f32 %v766_v21  ;;  %vm772_vm9 = vweird.f32 %v766_v21  ;;  %v778_v37 = vand.u32 2147483648, %v766_v21  ;;  %v776_v38 = vand.u32 2147483647, %v766_v21 }
 0x673   :  { %v794_v26 = vmul.f32 %v3431_v48, %v793_v56  ;;  %3438 = vpow2.f32 %v753_v22  ;;  %v854_v41 = vand.u32 2147483648, %v842_v23  ;;  %vm848_vm15 = vweird.f32 %v842_v23 }
 0x674   :  { %3440 = vrcp.f32 %v842_v23  ;;  %v852_v44 = vand.u32 2147483647, %v842_v23  ;;  %v779_v45 = vor.u32 1.1754944e-38, %v778_v37  ;;  %vm777_vm2 = vcmp.eq.f32.partialorder %v776_v38, 8.507059e+37 }
 0x675   :  { %v795_v61 = vadd.f32 %v3431_v48, %v794_v26  ;;  %v855_v49 = vor.u32 1.1754944e-38, %v854_v41 }
 0x676   :  { %vm853_vm3 = vcmp.eq.f32.partialorder %v852_v44, 8.507059e+37 }
 0x677   :  { %v799_v0 = vsel %vm798_vm5, %v3431_v48, %v795_v61 }
 0x678   :  { %v804_v1 = vsel %vm801_vm6, %v803_v62, %v799_v0  ;;  %v3437_v24 = vpop.eup %3436  ;;  %v3010_v0 = vld [vmem:[%s4992_s8 + $0x70] sm:$0xff] }
 0x679   :  { %v806_v2 = vmul.f32 %v804_v1, %v786_v40  ;;  %v3439_v25 = vpop.eup %3438  ;;  %v768_v29 = vmul.f32 %v3437_v24, %v766_v21  ;;  %vm773_vm7 = vweird.f32 %v3437_v24  ;;  %900 = vmatpush.msrb.mxu1 %v3010_v0  ;;  %v3008_v1 = vld [vmem:[%s4992_s8 + $0x60] sm:$0xff] }
 0x67a   :  { %v3441_v28 = vpop.eup %3440  ;;  %v755_v30 = vadd.f32 1.0, %v3439_v25  ;;  %vm774_vm14 = vmor %vm772_vm9, %vm773_vm7 }
 0x67b   :  { %v831_v4 = vmul.f32 %v830_v3, %v806_v2  ;;  %v844_v31 = vmul.f32 %v3441_v28, %v842_v23  ;;  %v769_v32 = vsub.f32 1.0, %v768_v29  ;;  %vm849_vm13 = vweird.f32 %v3441_v28  ;;  %v3007_v2 = vld [vmem:[%s4992_s8 + $0x58] sm:$0xff]  ;;  %v3006_v3 = vld [vmem:[%s4992_s8 + $0x50] sm:$0xff] }
 0x67c   :  { %3442 = vlog2.f32 %v755_v30  ;;  %vm850_vm0 = vmor %vm848_vm15, %vm849_vm13 }
 0x67d   :  { %v832_v5 = vsel %vm358_vm8, %v831_v4, 0.0  ;;  %v845_v50 = vsub.f32 1.0, %v844_v31  ;;  %v770_v51 = vmul.f32 %v3437_v24, %v769_v32  ;;  %v3005_v4 = vld [vmem:[%s4992_s8 + $0x48] sm:$0xff]  ;;  %v3013_v32 = vld [vmem:[%s4993_s9 + $0x20] sm:$0xff] }
 0x67e   :  { %833 = vadd.xlane.f32.xlu0 %v832_v5  ;;  %v3004_v5 = vld [vmem:[%s4992_s8 + $0x40] sm:$0xff]  ;;  %v3014_v31 = vld [vmem:[%s4993_s9 + $0x28] sm:$0xff] }
 0x67f   :  { %v846_v34 = vmul.f32 %v3441_v28, %v845_v50  ;;  %v771_v36 = vadd.f32 %v3437_v24, %v770_v51 }
 0x681   :  { %v847_v39 = vadd.f32 %v3441_v28, %v846_v34  ;;  %v775_v43 = vsel %vm774_vm14, %v3437_v24, %v771_v36 }
 0x682   :  { %v3443_v35 = vpop.eup %3442  ;;  %v780_v48 = vsel %vm777_vm2, %v779_v45, %v775_v43 }
 0x683   :  { %v757_v40 = vmul.f32 0.6931472, %v3443_v35  ;;  %v851_v46 = vsel %vm850_vm0, %v3441_v28, %v847_v39  ;;  %v782_v58 = vmul.f32 %v780_v48, %v762_v11  ;;  %v3337_v39 = vld [vmem:[%s4987_s3 + $0x11] ss:$0 sm:$0xff]  ;;  %v3032_v48 = vld [vmem:[%s4994_s10 + $0xe8] sm:$0xff] }
 0x684   :  { %v856_v57 = vsel %vm853_vm3, %v855_v49, %v851_v46  ;;  %v3034_v46 = vld [vmem:[%s4994_s10 + $0xf8] sm:$0xff] }
 0x685   :  { %v758_v47 = vadd.f32 %v757_v40, %v750_v42  ;;  %v858_v27 = vmul.f32 %v856_v57, %v3977_v33  ;;  %v3009_v33 = vld [vmem:[%s4992_s8 + $0x68] sm:$0xff]  ;;  %1037 = vmatpush.msra.mxu0 %v3034_v46  ;;  %v3338_v49 = vld [vmem:[%s4987_s3 + $0x19] ss:$0 sm:$0xff] }
 0x686   :  { %901 = vmatpush.msrb.mxu1 %v3009_v33  ;;  %v3025_v33 = vld [vmem:[%s4994_s10 + $0xb0] sm:$0xff] }
 0x688   :  { %902 = vmatpush.msrb.mxu1 %v3008_v1 }
 0x68a   :  { %903 = vmatpush.msrb.mxu1 %v3007_v2 }
 0x68c   :  { %904 = vmatpush.msrb.mxu1 %v3006_v3  ;;  %v3024_v3 = vld [vmem:[%s4994_s10 + $0xa8] sm:$0xff] }
 0x68e   :  { %905 = vmatpush.msrb.mxu1 %v3005_v4 }
 0x690   :  { %906 = vmatpush.msrb.mxu1 %v3004_v5 }
 0x6f1   :  { %v834_v55 = vpop.xlane.xlu0 %833 }
 0x6f2   :  { %v835_v56 = vmul.f32 %v834_v55, %v758_v47  ;;  %v3033_v47 = vld [vmem:[%s4994_s10 + $0xf0] sm:$0xff]  ;;  %v3030_v55 = vld [vmem:[%s4994_s10 + $0xd8] sm:$0xff] }
 0x6f3   :  { %1038 = vmatpush.msra.mxu0 %v3033_v47 }
 0x6f4   :  { %v837_v26 = vadd.f32 %v836_v54, %v835_v56  ;;  %v3031_v54 = vld [vmem:[%s4994_s10 + $0xe0] sm:$0xff] }
 0x6f5   :  { %1039 = vmatpush.msra.mxu0 %v3032_v48 }
 0x6f6   :  { %v838_v59 = vmul.f32 %v837_v26, %v782_v58  ;;  %v3029_v58 = vld [vmem:[%s4994_s10 + $0xd0] sm:$0xff] }
 0x6f7   :  { %1040 = vmatpush.msra.mxu0 %v3031_v54 }
 0x6f8   :  { %v859_v60 = vmul.f32 %v858_v27, %v838_v59  ;;  %v3028_v27 = vld [vmem:[%s4994_s10 + $0xc8] sm:$0xff] }
 0x6f9   :  { %1041 = vmatpush.msra.mxu0 %v3030_v55 }
 0x6fa   :  { %v860_v61 = vmul.f32 %v859_v60, %v859_v60 }
 0x6fb   :  { %1042 = vmatpush.msra.mxu0 %v3029_v58  ;;  %v3062_v58 = vld [vmem:[%s4990_s6 + $0x58] sm:$0xff] }
 0x6fc   :  { %v861_v62 = vsel %vm388_vm4, %v860_v61, 0.0  ;;  %1177 = vmatpush.msra.mxu2 %v3062_v58 }
 0x6fd   :  { %862 = vadd.xlane.f32.xlu2 %v861_v62  ;;  %1043 = vmatpush.msra.mxu0 %v3028_v27  ;;  %v3026_v62 = vld [vmem:[%s4994_s10 + $0xb8] sm:$0xff]  ;;  %v3056_v27 = vld [vmem:[%s4989_s5 + $0x50] sm:$0xff] }
 0x770   :  { %v863_v6 = vpop.xlane.xlu2 %862 }
 0x771   :  { %v864_v7 = vmul.f32 %v863_v6, %v3801_v10  ;;  %v3023_v6 = vld [vmem:[%s4994_s10 + $0xa0] sm:$0xff] }
 0x773   :  { %v865_v8 = vadd.f32 1e-05, %v864_v7 }
 0x775   :  { %3444 = vrsqrt.f32 %v865_v8  ;;  %vm872_vm6 = vweird.f32 %v865_v8 }
 0x77b   :  { %v3445_v9 = vpop.eup %3444 }
 0x77c   :  { %v867_v11 = vmul.f32 %v3445_v9, %v865_v8  ;;  %vm873_vm5 = vweird.f32 %v3445_v9  ;;  %v3022_v8 = vld [vmem:[%s4994_s10 + $0x98] sm:$0xff] }
 0x77d   :  { %vm874_vm7 = vmor %vm872_vm6, %vm873_vm5 }
 0x77e   :  { %v868_v12 = vmul.f32 %v3445_v9, %v867_v11 }
 0x780   :  { %v869_v13 = vmul.f32 0.5, %v868_v12  ;;  %v3021_v12 = vld [vmem:[%s4994_s10 + $0x90] sm:$0xff] }
 0x782   :  { %v870_v14 = vsub.f32 1.5, %v869_v13 }
 0x784   :  { %v871_v15 = vmul.f32 %v3445_v9, %v870_v14  ;;  %v3020_v14 = vld [vmem:[%s4994_s10 + $0x88] sm:$0xff] }
 0x786   :  { %v875_v17 = vsel %vm874_vm7, %v3445_v9, %v871_v15 }
 0x787   :  { %v876_v18 = vmul.f32 %v875_v17, %v859_v60  ;;  %v3027_v60 = vld [vmem:[%s4994_s10 + $0xc0] sm:$0xff] }
 0x788   :  { %1044 = vmatpush.msra.mxu0 %v3027_v60  ;;  %v3050_v60 = vld [vmem:[%s4988_s4 + $0x48] sm:$0xff] }
 0x789   :  { %v878_v19 = vmul.f32 %v3336_v16, %v876_v18  ;;  %v3019_v16 = vld [vmem:[%s4994_s10 + $0x80] sm:$0xff] }
 0x78a   :  { %1045 = vmatpush.msra.mxu0 %v3026_v62  ;;  %v3060_v62 = vld [vmem:[%s4990_s6 + $0x48] sm:$0xff] }
 0x78b   :  { %3012 = vmatmul.msk.f32.vlgmr.msrb.gmra.mxu1 %vm422_vm12, %v878_v19 }
 0x78c   :  { %1046 = vmatpush.msra.mxu0 %v3025_v33  ;;  %v3059_v33 = vld [vmem:[%s4990_s6 + $0x40] sm:$0xff] }
 0x78e   :  { %1047 = vmatpush.msra.mxu0 %v3024_v3  ;;  %v3065_v3 = vld [vmem:[%s4991_s7 + $0x48] sm:$0xff] }
 0x790   :  { %1048 = vmatpush.msra.mxu0 %v3023_v6 }
 0x792   :  { %1049 = vmatpush.msra.mxu0 %v3022_v8 }
 0x794   :  { %1050 = vmatpush.msra.mxu0 %v3021_v12 }
 0x796   :  { %1051 = vmatpush.msra.mxu0 %v3020_v14 }
 0x798   :  { %1052 = vmatpush.msra.mxu0 %v3019_v16 }
 0x808   :  { %v908_v20 = vpop.f32.mrf.mxu1 }
 0x809   :  { %v912_v21 = vrot.slane %v908_v20, 1  ;;  %v4025_v22 = vadd.f32 %v908_v20, %v3898_v52  ;;  %v3016_v52 = vld [vmem:[%s4993_s9 + $0x38] sm:$0xff] }
 0x80a   :  { %967 = vmatpush.msra.mxu3 %v3016_v52 }
 0x80b   :  { %v4028_v23 = vadd.f32 %v912_v21, %v3901_v53  ;;  %v924_v25 = vmul.f32 %v4025_v22, %v4025_v22  ;;  %v3015_v53 = vld [vmem:[%s4993_s9 + $0x30] sm:$0xff] }
 0x80c   :  { %968 = vmatpush.msra.mxu3 %v3015_v53 }
 0x80d   :  { %v925_v24 = vmul.f32 %v4028_v23, %v4028_v23  ;;  %v920_v36 = vrot.slane %v4028_v23, 7 }
 0x80e   :  { %969 = vmatpush.msra.mxu3 %v3014_v31 }
 0x80f   :  { %v928_v28 = vrot.slane %v925_v24, 7  ;;  %v921_v40 = vsel %vm143_vm11, %v920_v36, %v4025_v22 }
 0x810   :  { %970 = vmatpush.msra.mxu3 %v3013_v32  ;;  %v923_v43 = vmul.f32 %v3337_v39, %v921_v40 }
 0x811   :  { %v929_v29 = vsel %vm143_vm11, %v928_v28, %v924_v25 }
 0x812   :  { %v931_v30 = vsel %vm154_vm10, %v929_v29, 0.0 }
 0x813   :  { %932 = vadd.xlane.f32.xlu1 %v931_v30 }
 0x886   :  { %v933_v50 = vpop.xlane.xlu1 %932 }
 0x887   :  { %v934_v51 = vadd.f32 1e-06, %v933_v50 }
 0x889   :  { %3446 = vrsqrt.f32 %v934_v51  ;;  %vm941_vm13 = vweird.f32 %v934_v51 }
 0x88f   :  { %v3447_v34 = vpop.eup %3446 }
 0x890   :  { %v936_v35 = vmul.f32 %v3447_v34, %v934_v51  ;;  %vm942_vm9 = vweird.f32 %v3447_v34 }
 0x891   :  { %vm943_vm14 = vmor %vm941_vm13, %vm942_vm9 }
 0x892   :  { %v937_v37 = vmul.f32 %v3447_v34, %v936_v35 }
 0x894   :  { %v938_v38 = vmul.f32 0.5, %v937_v37 }
 0x896   :  { %v939_v41 = vsub.f32 1.5, %v938_v38 }
 0x898   :  { %v940_v42 = vmul.f32 %v3447_v34, %v939_v41 }
 0x89a   :  { %v944_v44 = vsel %vm943_vm14, %v3447_v34, %v940_v42 }
 0x89b   :  { %v945_v45 = vmul.f32 %v944_v44, %v923_v43  ;;  %v3339_v43 = vld [vmem:[%s4987_s3 + $0x1a] ss:$0 sm:$0xff] }
 0x89d   :  { %3017 = vmatmul.msk.f32.vlgmr.msra.gmra.mxu3 %vm75_vm1, %v945_v45 }
 0x920   :  { %v972_v56 = vpop.f32.mrf.mxu3 }
 0x921   :  { %v4073_v57 = vadd.f32 %v3338_v49, %v972_v56 }
 0x923   :  { %v976_v26 = vmul.f32 0.70710677, %v4073_v57  ;;  %v975_v40 = vmul.f32 0.5, %v4073_v57 }
 0x925   :  { %v977_v59 = vmul.f32 %v976_v26, %v976_v26 }
 0x927   :  { %v978_v61 = vmin.f32 %v977_v59, 16.0  ;;  %v3061_v59 = vld [vmem:[%s4990_s6 + $0x50] sm:$0xff] }
 0x928   :  { %1178 = vmatpush.msra.mxu2 %v3061_v59 }
 0x929   :  { %v979_v63 = vmul.f32 2.1237322e-06, %v978_v61  ;;  %v990_v0 = vmul.f32 3.8918573e-05, %v978_v61 }
 0x92a   :  { %1179 = vmatpush.msra.mxu2 %v3060_v62 }
 0x92b   :  { %v980_v1 = vadd.f32 0.00028619796, %v979_v63  ;;  %v991_v2 = vadd.f32 0.001143296, %v990_v0  ;;  %v3049_v63 = vld [vmem:[%s4988_s4 + $0x40] sm:$0xff] }
 0x92c   :  { %v3054_v0 = vld [vmem:[%s4989_s5 + $0x40] sm:$0xff]  ;;  %1180 = vmatpush.msra.mxu2 %v3059_v33 }
 0x92d   :  { %v981_v4 = vmul.f32 %v980_v1, %v978_v61  ;;  %v992_v5 = vmul.f32 %v991_v2, %v978_v61  ;;  %v3067_v1 = vld [vmem:[%s4991_s7 + $0x58] sm:$0xff]  ;;  %v3066_v2 = vld [vmem:[%s4991_s7 + $0x50] sm:$0xff] }
 0x92f   :  { %v993_v7 = vadd.f32 0.014752088, %v992_v5  ;;  %v982_v9 = vadd.f32 0.0036580483, %v981_v4  ;;  %v3064_v4 = vld [vmem:[%s4991_s7 + $0x40] sm:$0xff] }
 0x931   :  { %v994_v11 = vmul.f32 %v993_v7, %v978_v61  ;;  %v983_v15 = vmul.f32 %v982_v9, %v978_v61 }
 0x933   :  { %v995_v13 = vadd.f32 0.112945676, %v994_v11  ;;  %v984_v19 = vadd.f32 0.05243302, %v983_v15 }
 0x935   :  { %v996_v17 = vmul.f32 %v995_v13, %v978_v61  ;;  %v985_v24 = vmul.f32 %v984_v19, %v978_v61  ;;  %v3340_v13 = vld [vmem:[%s4987_s3 + $0x20] ss:$0 sm:$0xff] }
 0x937   :  { %v997_v18 = vadd.f32 0.4994258, %v996_v17  ;;  %v986_v25 = vadd.f32 0.18741608, %v985_v24 }
 0x939   :  { %v998_v20 = vmul.f32 %v997_v18, %v978_v61  ;;  %v987_v29 = vmul.f32 %v986_v25, %v978_v61  ;;  %v3055_v61 = vld [vmem:[%s4989_s5 + $0x48] sm:$0xff]  ;;  %v3344_v25 = vld [vmem:[%s4987_s3 + $0x25] ss:$0 sm:$0xff] }
 0x93a   :  { %v3341_v18 = vld [vmem:[%s4987_s3 + $0x2b] ss:$0 sm:$0xff] }
 0x93b   :  { %v999_v21 = vadd.f32 1.0, %v998_v20  ;;  %v988_v31 = vadd.f32 1.1283791, %v987_v29  ;;  %v3345_v29 = vld [vmem:[%s4987_s3 + $0x26] ss:$0 sm:$0xff] }
 0x93d   :  { %3448 = vrcp.f32 %v999_v21  ;;  %v1011_v53 = vand.u32 2147483648, %v999_v21  ;;  %v1009_v50 = vand.u32 2147483647, %v999_v21  ;;  %vm1005_vm0 = vweird.f32 %v999_v21 }
 0x93e   :  { %v989_v35 = vmul.f32 %v988_v31, %v976_v26  ;;  %v3051_v26 = vld [vmem:[%s4988_s4 + $0x50] sm:$0xff]  ;;  %v3346_v31 = vld [vmem:[%s4987_s3 + $0x27] ss:$0 sm:$0xff] }
 0x93f   :  { %v1012_v34 = vor.u32 1.1754944e-38, %v1011_v53  ;;  %vm1010_vm3 = vcmp.eq.f32.partialorder %v1009_v50, 8.507059e+37  ;;  %v3347_v50 = vld [vmem:[%s4987_s3 + $0x28] ss:$0 sm:$0xff] }
 0x943   :  { %v3449_v28 = vpop.eup %3448 }
 0x944   :  { %v1001_v30 = vmul.f32 %v3449_v28, %v999_v21  ;;  %vm1006_vm15 = vweird.f32 %v3449_v28 }
 0x945   :  { %vm1007_vm2 = vmor %vm1005_vm0, %vm1006_vm15 }
 0x946   :  { %v1002_v52 = vsub.f32 1.0, %v1001_v30 }
 0x948   :  { %v1003_v32 = vmul.f32 %v3449_v28, %v1002_v52 }
 0x94a   :  { %v1004_v51 = vadd.f32 %v3449_v28, %v1003_v32 }
 0x94c   :  { %v1008_v36 = vsel %vm1007_vm2, %v3449_v28, %v1004_v51 }
 0x94d   :  { %v1013_v37 = vsel %vm1010_vm3, %v1012_v34, %v1008_v36 }
 0x94e   :  { %v1014_v38 = vmul.f32 %v1013_v37, %v989_v35 }
 0x950   :  { %v3018_v39 = vclamps-f32 %v1014_v38, 1.0 }
 0x952   :  { %v1017_v41 = vadd.f32 1.0, %v3018_v39 }
 0x954   :  { %v1018_v42 = vmul.f32 %v1017_v41, %v975_v40 }
 0x956   :  { %1053 = vmatmul.f32.vlgmr.msra.gmra.mxu0 %v1018_v42 }
 0x9d3   :  { %v1054_v44 = vpop.f32.mrf.mxu0 }
 0x9d4   :  { %v1055_v45 = vadd.f32 %v3339_v43, %v1054_v44 }
 0x9d6   :  { %v1058_v46 = vrot.slane %v1055_v45, 1  ;;  %v4114_v47 = vadd.f32 %v1055_v45, %v4025_v22  ;;  %v3052_v22 = vld [vmem:[%s4988_s4 + $0x58] sm:$0xff] }
 0x9d7   :  { %1127 = vmatpush.msrb.mxu3 %v3052_v22 }
 0x9d8   :  { %v4117_v48 = vadd.f32 %v1058_v46, %v4028_v23  ;;  %v1085_v54 = vmul.f32 %v4114_v47, %v4114_v47  ;;  %v3057_v23 = vld [vmem:[%s4989_s5 + $0x58] sm:$0xff] }
 0x9d9   :  { %1152 = vmatpush.msra.mxu1 %v3057_v23  ;;  %1128 = vmatpush.msrb.mxu3 %v3051_v26 }
 0x9da   :  { %v1086_v49 = vmul.f32 %v4117_v48, %v4117_v48  ;;  %v1081_v9 = vrot.slane %v4117_v48, 7 }
 0x9db   :  { %1153 = vmatpush.msra.mxu1 %v3056_v27  ;;  %1129 = vmatpush.msrb.mxu3 %v3050_v60 }
 0x9dc   :  { %v1089_v55 = vrot.slane %v1086_v49, 7  ;;  %v1082_v14 = vsel %vm143_vm11, %v1081_v9, %v4114_v47 }
 0x9dd   :  { %1154 = vmatpush.msra.mxu1 %v3055_v61  ;;  %1130 = vmatpush.msrb.mxu3 %v3049_v63  ;;  %v1084_v17 = vmul.f32 %v3340_v13, %v1082_v14 }
 0x9de   :  { %v1090_v56 = vsel %vm143_vm11, %v1089_v55, %v1085_v54 }
 0x9df   :  { %v1092_v57 = vsel %vm154_vm10, %v1090_v56, 0.0  ;;  %1155 = vmatpush.msra.mxu1 %v3054_v0  ;;  %1202 = vmatpush.msra.mxu3 %v3067_v1 }
 0x9e0   :  { %1093 = vadd.xlane.f32.xlu2 %v1092_v57 }
 0x9e1   :  { %1203 = vmatpush.msra.mxu3 %v3066_v2  ;;  %v3342_v2 = vld [vmem:[%s4987_s3 + $0x23] ss:$0 sm:$0xff] }
 0x9e3   :  { %1204 = vmatpush.msra.mxu3 %v3065_v3 }
 0x9e5   :  { %1205 = vmatpush.msra.mxu3 %v3064_v4 }
 0xa53   :  { %v1094_v5 = vpop.xlane.xlu2 %1093 }
 0xa54   :  { %v1095_v6 = vadd.f32 1e-06, %v1094_v5  ;;  %v3343_v5 = vld [vmem:[%s4987_s3 + $0x24] ss:$0 sm:$0xff] }
 0xa56   :  { %3450 = vrsqrt.f32 %v1095_v6  ;;  %vm1102_vm6 = vweird.f32 %v1095_v6 }
 0xa5c   :  { %v3451_v7 = vpop.eup %3450 }
 0xa5d   :  { %v1097_v8 = vmul.f32 %v3451_v7, %v1095_v6  ;;  %vm1103_vm5 = vweird.f32 %v3451_v7 }
 0xa5e   :  { %vm1104_vm7 = vmor %vm1102_vm6, %vm1103_vm5 }
 0xa5f   :  { %v1098_v11 = vmul.f32 %v3451_v7, %v1097_v8 }
 0xa61   :  { %v1099_v12 = vmul.f32 0.5, %v1098_v11 }
 0xa63   :  { %v1100_v15 = vsub.f32 1.5, %v1099_v12 }
 0xa65   :  { %v1101_v16 = vmul.f32 %v3451_v7, %v1100_v15 }
 0xa67   :  { %v1105_v19 = vsel %vm1104_vm7, %v3451_v7, %v1101_v16  ;;  %v1215_v7 = vstv %s3047_s15 }
 0xa68   :  { %v1106_v20 = vmul.f32 %v1105_v19, %v1084_v17 }
 0xa6a   :  { %3053 = vmatmul.msk.f32.vlgmr.msrb.gmra.mxu3 %vm75_vm1, %v1106_v20  ;;  %3058 = vmatmul.msk.f32.vlgmr.msra.gmra.mxu1 %vm75_vm1, %v1106_v20  ;;  %v1211_v21 = vmul.f32 %v3341_v18, %v1106_v20 }
 0xa6b   :  { %3063 = vmatmul.msk.f32.vlgmr.msra.gmra.mxu2 %vm75_vm1, %v1106_v20 }
 0xa6c   :  { %v1212_v24 = vsel %vm154_vm10, %v1211_v21, 0.0 }
 0xa6d   :  { %1213 = vadd.xlane.f32.xlu1 %v1212_v24 }
 0xa72   :  { %3068 = vmatmul.msk.f32.vlgmr.msra.gmra.mxu3 %vm75_vm1, %v1106_v20 }
 0xae0   :  { %v1214_v8 = vpop.xlane.xlu1 %1213 }
 0xae1   :  { %v1216_v11 = vadd.f32 %v1215_v7, %v1214_v8 }
 0xae3   :  { %v1218_v13 = vand.u32 2147483647, %v1216_v11 }
 0xae5   :  { %v1219_v15 = vsub.f32 0.0, %v1218_v13 }
 0xae7   :  { %v1157_v3 = vpop.f32.mrf.mxu1  ;;  %v1220_v18 = vmul.f32 1.442695, %v1219_v15 }
 0xae8   :  { %v1227_v4 = vmul.f32 %v3342_v2, %v1157_v3 }
 0xaea   :  { %v1229_v6 = vadd.f32 %v3343_v5, %v1227_v4 }
 0xaec   :  { %v3069_v9 = vmul.f32 -1.442695, %v1229_v6 }
 0xaed   :  { %v4190_v28 = vpop.f32.mrf.mxu3 }
 0xaee   :  { %v1182_v30 = vpop.f32.mrf.mxu2  ;;  %v3072_v12 = vmul.f32 -1.442695, %v4190_v28 }
 0xaef   :  { %v1251_v52 = vmul.f32 %v3344_v25, %v1182_v30 }
 0xaf1   :  { %v1253_v53 = vadd.f32 %v3345_v29, %v1251_v52 }
 0xaf3   :  { %v3070_v32 = vmul.f32 -1.442695, %v1253_v53 }
 0xaf5   :  { %3452 = vpow2.f32 %v3070_v32  ;;  %v1207_v51 = vpop.f32.mrf.mxu3 }
 0xaf6   :  { %v1275_v34 = vmul.f32 %v3346_v31, %v1207_v51 }
 0xaf8   :  { %v1277_v35 = vadd.f32 %v3347_v50, %v1275_v34 }
 0xafa   :  { %v3071_v37 = vmul.f32 -1.442695, %v1277_v35 }
 0xafb   :  { %v3453_v36 = vpop.eup %3452 }
 0xafc   :  { %v1257_v38 = vadd.f32 1.0, %v3453_v36  ;;  %3454 = vpow2.f32 %v3071_v37 }
 0xafe   :  { %3456 = vrcp.f32 %v1257_v38  ;;  %v1269_v54 = vand.u32 2147483648, %v1257_v38  ;;  %vm1263_vm13 = vweird.f32 %v1257_v38  ;;  %v1267_v55 = vand.u32 2147483647, %v1257_v38 }
 0xb00   :  { %v1270_v26 = vor.u32 1.1754944e-38, %v1269_v54  ;;  %vm1268_vm0 = vcmp.eq.f32.partialorder %v1267_v55, 8.507059e+37 }
 0xb02   :  { %v3455_v39 = vpop.eup %3454 }
 0xb03   :  { %v1281_v41 = vadd.f32 1.0, %v3455_v39  ;;  %v1217_v39 = vmax.f32 %v1216_v11, 0.0 }
 0xb04   :  { %v3457_v40 = vpop.eup %3456 }
 0xb05   :  { %v1259_v42 = vmul.f32 %v3457_v40, %v1257_v38  ;;  %3458 = vrcp.f32 %v1281_v41  ;;  %vm1264_vm9 = vweird.f32 %v3457_v40  ;;  %v1293_v57 = vand.u32 2147483648, %v1281_v41 }
 0xb06   :  { %vm1265_vm14 = vmor %vm1263_vm13, %vm1264_vm9  ;;  %v1291_v58 = vand.u32 2147483647, %v1281_v41  ;;  %vm1287_vm2 = vweird.f32 %v1281_v41  ;;  %3460 = vpow2.f32 %v3069_v9 }
 0xb07   :  { %v1260_v43 = vsub.f32 1.0, %v1259_v42  ;;  %v1294_v60 = vor.u32 1.1754944e-38, %v1293_v57  ;;  %3462 = vpow2.f32 %v3072_v12  ;;  %v3348_v12 = vld [vmem:[%s4987_s3 + $0x22] ss:$0 sm:$0xff] }
 0xb08   :  { %vm1292_vm5 = vcmp.eq.f32.partialorder %v1291_v58, 8.507059e+37 }
 0xb09   :  { %v1261_v44 = vmul.f32 %v3457_v40, %v1260_v43 }
 0xb0b   :  { %v3459_v45 = vpop.eup %3458  ;;  %v1262_v46 = vadd.f32 %v3457_v40, %v1261_v44 }
 0xb0c   :  { %v1283_v49 = vmul.f32 %v3459_v45, %v1281_v41  ;;  %vm1288_vm15 = vweird.f32 %v3459_v45  ;;  %v3461_v14 = vpop.eup %3460 }
 0xb0d   :  { %v1266_v22 = vsel %vm1265_vm14, %v3457_v40, %v1262_v46  ;;  %vm1289_vm3 = vmor %vm1287_vm2, %vm1288_vm15  ;;  %v3463_v16 = vpop.eup %3462  ;;  %v1233_v17 = vadd.f32 1.0, %v3461_v14 }
 0xb0e   :  { %v1284_v56 = vsub.f32 1.0, %v1283_v49  ;;  %v1271_v59 = vsel %vm1268_vm0, %v1270_v26, %v1266_v22  ;;  %v1309_v19 = vadd.f32 1.0, %v3463_v16  ;;  %v1303_v49 = vstv %s3048_s18 }
 0xb0f   :  { %v1273_v63 = vmul.f32 %v1271_v59, %v1253_v53  ;;  %3464 = vrcp.f32 %v1233_v17  ;;  %vm1239_vm7 = vweird.f32 %v1233_v17  ;;  %v1245_v34 = vand.u32 2147483648, %v1233_v17 }
 0xb10   :  { %v1285_v23 = vmul.f32 %v3459_v45, %v1284_v56  ;;  %3466 = vpow2.f32 %v1220_v18  ;;  %v1321_v38 = vand.u32 2147483648, %v1309_v19  ;;  %vm1315_vm14 = vweird.f32 %v1309_v19 }
 0xb11   :  { %3468 = vrcp.f32 %v1309_v19  ;;  %v1319_v41 = vand.u32 2147483647, %v1309_v19  ;;  %v1246_v42 = vor.u32 1.1754944e-38, %v1245_v34 }
 0xb12   :  { %v1286_v27 = vadd.f32 %v3459_v45, %v1285_v23  ;;  %v1322_v46 = vor.u32 1.1754944e-38, %v1321_v38 }
 0xb13   :  { %vm1320_vm2 = vcmp.eq.f32.partialorder %v1319_v41, 8.507059e+37 }
 0xb14   :  { %v1290_v61 = vsel %vm1289_vm3, %v3459_v45, %v1286_v27 }
 0xb15   :  { %v1295_v62 = vsel %vm1292_vm5, %v1294_v60, %v1290_v61  ;;  %v3465_v20 = vpop.eup %3464  ;;  %v3080_v60 = vld [vmem:[%s4992_s8 + $0xb8] sm:$0xff]  ;;  %v3079_v61 = vld [vmem:[%s4992_s8 + $0xb0] sm:$0xff] }
 0xb16   :  { %v1297_v0 = vmul.f32 %v1295_v62, %v1277_v35  ;;  %v3467_v21 = vpop.eup %3466  ;;  %v1235_v25 = vmul.f32 %v3465_v20, %v1233_v17  ;;  %vm1240_vm6 = vweird.f32 %v3465_v20  ;;  %v1243_v35 = vand.u32 2147483647, %v1233_v17  ;;  %1366 = vmatpush.msrb.mxu1 %v3080_v60  ;;  %v3077_v62 = vld [vmem:[%s4992_s8 + $0xa0] sm:$0xff] }
 0xb17   :  { %v3469_v24 = vpop.eup %3468  ;;  %v1222_v29 = vadd.f32 1.0, %v3467_v21  ;;  %vm1241_vm13 = vmor %vm1239_vm7, %vm1240_vm6 }
 0xb18   :  { %v1298_v33 = vmul.f32 %v1297_v0, %v1273_v63  ;;  %v1311_v30 = vmul.f32 %v3469_v24, %v1309_v19  ;;  %v1236_v52 = vsub.f32 1.0, %v1235_v25  ;;  %vm1316_vm9 = vweird.f32 %v3469_v24  ;;  %1367 = vmatpush.msrb.mxu1 %v3079_v61  ;;  %v3076_v63 = vld [vmem:[%s4992_s8 + $0x98] sm:$0xff]  ;;  %v3075_v0 = vld [vmem:[%s4992_s8 + $0x90] sm:$0xff] }
 0xb19   :  { %3470 = vlog2.f32 %v1222_v29  ;;  %vm1317_vm15 = vmor %vm1315_vm14, %vm1316_vm9  ;;  %vm1244_vm0 = vcmp.eq.f32.partialorder %v1243_v35, 8.507059e+37 }
 0xb1a   :  { %v1299_v1 = vsel %vm358_vm8, %v1298_v33, 0.0  ;;  %v1312_v53 = vsub.f32 1.0, %v1311_v30  ;;  %v1237_v31 = vmul.f32 %v3465_v20, %v1236_v52  ;;  %v3074_v33 = vld [vmem:[%s4992_s8 + $0x88] sm:$0xff]  ;;  %v3082_v52 = vld [vmem:[%s4993_s9 + $0x40] sm:$0xff] }
 0xb1b   :  { %1300 = vadd.xlane.f32.xlu2 %v1299_v1  ;;  %v3073_v1 = vld [vmem:[%s4992_s8 + $0x80] sm:$0xff]  ;;  %v3083_v30 = vld [vmem:[%s4993_s9 + $0x48] sm:$0xff] }
 0xb1c   :  { %v1313_v32 = vmul.f32 %v3469_v24, %v1312_v53  ;;  %v1238_v51 = vadd.f32 %v3465_v20, %v1237_v31 }
 0xb1e   :  { %v1314_v36 = vadd.f32 %v3469_v24, %v1313_v32  ;;  %v1242_v40 = vsel %vm1241_vm13, %v3465_v20, %v1238_v51 }
 0xb1f   :  { %v3471_v50 = vpop.eup %3470  ;;  %v1247_v45 = vsel %vm1244_vm0, %v1246_v42, %v1242_v40 }
 0xb20   :  { %v1224_v37 = vmul.f32 0.6931472, %v3471_v50  ;;  %v1318_v43 = vsel %vm1317_vm15, %v3469_v24, %v1314_v36  ;;  %v1249_v57 = vmul.f32 %v1247_v45, %v1229_v6  ;;  %v3349_v36 = vld [vmem:[%s4987_s3 + $0x21] ss:$0 sm:$0xff]  ;;  %v3101_v45 = vld [vmem:[%s4994_s10 + $0x168] sm:$0xff] }
 0xb21   :  { %v1323_v56 = vsel %vm1320_vm2, %v1322_v46, %v1318_v43  ;;  %v3103_v43 = vld [vmem:[%s4994_s10 + $0x178] sm:$0xff]  ;;  %v3350_v46 = vld [vmem:[%s4987_s3 + $0x29] ss:$0 sm:$0xff] }
 0xb22   :  { %v1225_v44 = vadd.f32 %v1224_v37, %v1217_v39  ;;  %v1325_v23 = vmul.f32 %v1323_v56, %v4190_v28  ;;  %v3078_v28 = vld [vmem:[%s4992_s8 + $0xa8] sm:$0xff]  ;;  %1504 = vmatpush.msrb.mxu3 %v3103_v43 }
 0xb23   :  { %1368 = vmatpush.msrb.mxu1 %v3078_v28  ;;  %v3094_v28 = vld [vmem:[%s4994_s10 + $0x130] sm:$0xff] }
 0xb25   :  { %1369 = vmatpush.msrb.mxu1 %v3077_v62 }
 0xb27   :  { %1370 = vmatpush.msrb.mxu1 %v3076_v63 }
 0xb29   :  { %1371 = vmatpush.msrb.mxu1 %v3075_v0  ;;  %v3093_v0 = vld [vmem:[%s4994_s10 + $0x128] sm:$0xff] }
 0xb2b   :  { %1372 = vmatpush.msrb.mxu1 %v3074_v33 }
 0xb2d   :  { %1373 = vmatpush.msrb.mxu1 %v3073_v1 }
 0xb8e   :  { %v1301_v54 = vpop.xlane.xlu2 %1300 }
 0xb8f   :  { %v1302_v55 = vmul.f32 %v1301_v54, %v1225_v44  ;;  %v3102_v44 = vld [vmem:[%s4994_s10 + $0x170] sm:$0xff]  ;;  %v3099_v54 = vld [vmem:[%s4994_s10 + $0x158] sm:$0xff] }
 0xb90   :  { %1505 = vmatpush.msrb.mxu3 %v3102_v44 }
 0xb91   :  { %v1304_v22 = vadd.f32 %v1303_v49, %v1302_v55  ;;  %v3100_v49 = vld [vmem:[%s4994_s10 + $0x160] sm:$0xff] }
 0xb92   :  { %1506 = vmatpush.msrb.mxu3 %v3101_v45 }
 0xb93   :  { %v1305_v58 = vmul.f32 %v1304_v22, %v1249_v57  ;;  %v3098_v57 = vld [vmem:[%s4994_s10 + $0x150] sm:$0xff] }
 0xb94   :  { %1507 = vmatpush.msrb.mxu3 %v3100_v49 }
 0xb95   :  { %v1326_v26 = vmul.f32 %v1325_v23, %v1305_v58  ;;  %v3097_v23 = vld [vmem:[%s4994_s10 + $0x148] sm:$0xff] }
 0xb96   :  { %1508 = vmatpush.msrb.mxu3 %v3099_v54 }
 0xb97   :  { %v1327_v27 = vmul.f32 %v1326_v26, %v1326_v26 }
 0xb98   :  { %1509 = vmatpush.msrb.mxu3 %v3098_v57  ;;  %v3131_v57 = vld [vmem:[%s4990_s6 + $0x78] sm:$0xff] }
 0xb99   :  { %v1328_v59 = vsel %vm388_vm4, %v1327_v27, 0.0  ;;  %1644 = vmatpush.msra.mxu1 %v3131_v57 }
 0xb9a   :  { %1329 = vadd.xlane.f32.xlu1 %v1328_v59  ;;  %1510 = vmatpush.msrb.mxu3 %v3097_v23  ;;  %v3095_v59 = vld [vmem:[%s4994_s10 + $0x138] sm:$0xff]  ;;  %v3125_v23 = vld [vmem:[%s4989_s5 + $0x70] sm:$0xff] }
 0xc0d   :  { %v1330_v2 = vpop.xlane.xlu1 %1329 }
 0xc0e   :  { %v1331_v3 = vmul.f32 %v1330_v2, %v3801_v10  ;;  %v3092_v2 = vld [vmem:[%s4994_s10 + $0x120] sm:$0xff] }
 0xc10   :  { %v1332_v4 = vadd.f32 1e-05, %v1331_v3 }
 0xc12   :  { %3472 = vrsqrt.f32 %v1332_v4  ;;  %vm1339_vm5 = vweird.f32 %v1332_v4 }
 0xc18   :  { %v3473_v5 = vpop.eup %3472 }
 0xc19   :  { %v1334_v6 = vmul.f32 %v3473_v5, %v1332_v4  ;;  %vm1340_vm3 = vweird.f32 %v3473_v5  ;;  %v3091_v4 = vld [vmem:[%s4994_s10 + $0x118] sm:$0xff] }
 0xc1a   :  { %vm1341_vm6 = vmor %vm1339_vm5, %vm1340_vm3 }
 0xc1b   :  { %v1335_v7 = vmul.f32 %v3473_v5, %v1334_v6 }
 0xc1d   :  { %v1336_v8 = vmul.f32 0.5, %v1335_v7  ;;  %v3090_v7 = vld [vmem:[%s4994_s10 + $0x110] sm:$0xff] }
 0xc1f   :  { %v1337_v9 = vsub.f32 1.5, %v1336_v8 }
 0xc21   :  { %v1338_v11 = vmul.f32 %v3473_v5, %v1337_v9  ;;  %v3089_v9 = vld [vmem:[%s4994_s10 + $0x108] sm:$0xff] }
 0xc23   :  { %v1342_v13 = vsel %vm1341_vm6, %v3473_v5, %v1338_v11 }
 0xc24   :  { %v1343_v14 = vmul.f32 %v1342_v13, %v1326_v26  ;;  %v3096_v26 = vld [vmem:[%s4994_s10 + $0x140] sm:$0xff] }
 0xc25   :  { %1511 = vmatpush.msrb.mxu3 %v3096_v26  ;;  %v3119_v26 = vld [vmem:[%s4988_s4 + $0x68] sm:$0xff] }
 0xc26   :  { %v1345_v15 = vmul.f32 %v3348_v12, %v1343_v14  ;;  %v3088_v12 = vld [vmem:[%s4994_s10 + $0x100] sm:$0xff] }
 0xc27   :  { %1512 = vmatpush.msrb.mxu3 %v3095_v59  ;;  %v3129_v59 = vld [vmem:[%s4990_s6 + $0x68] sm:$0xff] }
 0xc28   :  { %3081 = vmatmul.msk.f32.vlgmr.msrb.gmra.mxu1 %vm422_vm12, %v1345_v15 }
 0xc29   :  { %1513 = vmatpush.msrb.mxu3 %v3094_v28  ;;  %v3128_v28 = vld [vmem:[%s4990_s6 + $0x60] sm:$0xff] }
 0xc2b   :  { %1514 = vmatpush.msrb.mxu3 %v3093_v0  ;;  %v3134_v0 = vld [vmem:[%s4991_s7 + $0x68] sm:$0xff] }
 0xc2d   :  { %1515 = vmatpush.msrb.mxu3 %v3092_v2 }
 0xc2f   :  { %1516 = vmatpush.msrb.mxu3 %v3091_v4 }
 0xc31   :  { %1517 = vmatpush.msrb.mxu3 %v3090_v7 }
 0xc33   :  { %1518 = vmatpush.msrb.mxu3 %v3089_v9 }
 0xc35   :  { %1519 = vmatpush.msrb.mxu3 %v3088_v12 }
 0xca5   :  { %v1375_v16 = vpop.f32.mrf.mxu1 }
 0xca6   :  { %v1379_v17 = vrot.slane %v1375_v16, 1  ;;  %v4241_v18 = vadd.f32 %v1375_v16, %v4114_v47  ;;  %v3085_v47 = vld [vmem:[%s4993_s9 + $0x58] sm:$0xff] }
 0xca7   :  { %1434 = vmatpush.msrb.mxu2 %v3085_v47 }
 0xca8   :  { %v4244_v19 = vadd.f32 %v1379_v17, %v4117_v48  ;;  %v1391_v21 = vmul.f32 %v4241_v18, %v4241_v18  ;;  %v3084_v48 = vld [vmem:[%s4993_s9 + $0x50] sm:$0xff] }
 0xca9   :  { %1435 = vmatpush.msrb.mxu2 %v3084_v48 }
 0xcaa   :  { %v1392_v20 = vmul.f32 %v4244_v19, %v4244_v19  ;;  %v1387_v51 = vrot.slane %v4244_v19, 7 }
 0xcab   :  { %1436 = vmatpush.msrb.mxu2 %v3083_v30 }
 0xcac   :  { %v1395_v24 = vrot.slane %v1392_v20, 7  ;;  %v1388_v37 = vsel %vm143_vm11, %v1387_v51, %v4241_v18 }
 0xcad   :  { %1437 = vmatpush.msrb.mxu2 %v3082_v52  ;;  %v1390_v40 = vmul.f32 %v3349_v36, %v1388_v37 }
 0xcae   :  { %v1396_v25 = vsel %vm143_vm11, %v1395_v24, %v1391_v21 }
 0xcaf   :  { %v1398_v29 = vsel %vm154_vm10, %v1396_v25, 0.0 }
 0xcb0   :  { %1399 = vadd.xlane.f32.xlu2 %v1398_v29 }
 0xd23   :  { %v1400_v53 = vpop.xlane.xlu2 %1399 }
 0xd24   :  { %v1401_v31 = vadd.f32 1e-06, %v1400_v53 }
 0xd26   :  { %3474 = vrsqrt.f32 %v1401_v31  ;;  %vm1408_vm9 = vweird.f32 %v1401_v31 }
 0xd2c   :  { %v3475_v32 = vpop.eup %3474 }
 0xd2d   :  { %v1403_v50 = vmul.f32 %v3475_v32, %v1401_v31  ;;  %vm1409_vm7 = vweird.f32 %v3475_v32 }
 0xd2e   :  { %vm1410_vm13 = vmor %vm1408_vm9, %vm1409_vm7 }
 0xd2f   :  { %v1404_v34 = vmul.f32 %v3475_v32, %v1403_v50 }
 0xd31   :  { %v1405_v35 = vmul.f32 0.5, %v1404_v34 }
 0xd33   :  { %v1406_v38 = vsub.f32 1.5, %v1405_v35 }
 0xd35   :  { %v1407_v39 = vmul.f32 %v3475_v32, %v1406_v38 }
 0xd37   :  { %v1411_v41 = vsel %vm1410_vm13, %v3475_v32, %v1407_v39 }
 0xd38   :  { %v1412_v42 = vmul.f32 %v1411_v41, %v1390_v40  ;;  %v3351_v40 = vld [vmem:[%s4987_s3 + $0x2a] ss:$0 sm:$0xff] }
 0xd3a   :  { %3086 = vmatmul.msk.f32.vlgmr.msrb.gmra.mxu2 %vm75_vm1, %v1412_v42 }
 0xdbd   :  { %v1439_v55 = vpop.f32.mrf.mxu2 }
 0xdbe   :  { %v4289_v56 = vadd.f32 %v3350_v46, %v1439_v55 }
 0xdc0   :  { %v1443_v22 = vmul.f32 0.70710677, %v4289_v56  ;;  %v1442_v37 = vmul.f32 0.5, %v4289_v56 }
 0xdc2   :  { %v1444_v58 = vmul.f32 %v1443_v22, %v1443_v22 }
 0xdc4   :  { %v1445_v27 = vmin.f32 %v1444_v58, 16.0  ;;  %v3130_v58 = vld [vmem:[%s4990_s6 + $0x70] sm:$0xff] }
 0xdc5   :  { %1645 = vmatpush.msra.mxu1 %v3130_v58 }
 0xdc6   :  { %v1446_v60 = vmul.f32 2.1237322e-06, %v1445_v27  ;;  %v1457_v61 = vmul.f32 3.8918573e-05, %v1445_v27 }
 0xdc7   :  { %1646 = vmatpush.msra.mxu1 %v3129_v59 }
 0xdc8   :  { %v1447_v62 = vadd.f32 0.00028619796, %v1446_v60  ;;  %v1458_v63 = vadd.f32 0.001143296, %v1457_v61  ;;  %v3118_v60 = vld [vmem:[%s4988_s4 + $0x60] sm:$0xff] }
 0xdc9   :  { %v3123_v61 = vld [vmem:[%s4989_s5 + $0x60] sm:$0xff]  ;;  %1647 = vmatpush.msra.mxu1 %v3128_v28 }
 0xdca   :  { %v1448_v33 = vmul.f32 %v1447_v62, %v1445_v27  ;;  %v1459_v1 = vmul.f32 %v1458_v63, %v1445_v27  ;;  %v3136_v62 = vld [vmem:[%s4991_s7 + $0x78] sm:$0xff]  ;;  %v3135_v63 = vld [vmem:[%s4991_s7 + $0x70] sm:$0xff] }
 0xdcc   :  { %v1460_v3 = vadd.f32 0.014752088, %v1459_v1  ;;  %v1449_v5 = vadd.f32 0.0036580483, %v1448_v33  ;;  %v3133_v33 = vld [vmem:[%s4991_s7 + $0x60] sm:$0xff] }
 0xdce   :  { %v1461_v6 = vmul.f32 %v1460_v3, %v1445_v27  ;;  %v1450_v11 = vmul.f32 %v1449_v5, %v1445_v27 }
 0xdd0   :  { %v1462_v8 = vadd.f32 0.112945676, %v1461_v6  ;;  %v1451_v15 = vadd.f32 0.05243302, %v1450_v11 }
 0xdd2   :  { %v1463_v13 = vmul.f32 %v1462_v8, %v1445_v27  ;;  %v1452_v20 = vmul.f32 %v1451_v15, %v1445_v27  ;;  %v3352_v8 = vld [vmem:[%s4987_s3 + $0x30] ss:$0 sm:$0xff] }
 0xdd4   :  { %v1464_v14 = vadd.f32 0.4994258, %v1463_v13  ;;  %v1453_v21 = vadd.f32 0.18741608, %v1452_v20 }
 0xdd6   :  { %v1465_v16 = vmul.f32 %v1464_v14, %v1445_v27  ;;  %v1454_v25 = vmul.f32 %v1453_v21, %v1445_v27  ;;  %v3124_v27 = vld [vmem:[%s4989_s5 + $0x68] sm:$0xff]  ;;  %v3353_v14 = vld [vmem:[%s4987_s3 + $0x3b] ss:$0 sm:$0xff]  ;;  %v3356_v21 = vld [vmem:[%s4987_s3 + $0x35] ss:$0 sm:$0xff] }
 0xdd8   :  { %v1466_v17 = vadd.f32 1.0, %v1465_v16  ;;  %v1455_v30 = vadd.f32 1.1283791, %v1454_v25 }
 0xdda   :  { %3476 = vrcp.f32 %v1466_v17  ;;  %v1478_v48 = vand.u32 2147483648, %v1466_v17  ;;  %v1476_v53 = vand.u32 2147483647, %v1466_v17  ;;  %vm1472_vm15 = vweird.f32 %v1466_v17 }
 0xddb   :  { %v1456_v50 = vmul.f32 %v1455_v30, %v1443_v22  ;;  %v3120_v22 = vld [vmem:[%s4988_s4 + $0x70] sm:$0xff] }
 0xddc   :  { %v1479_v32 = vor.u32 1.1754944e-38, %v1478_v48  ;;  %vm1477_vm2 = vcmp.eq.f32.partialorder %v1476_v53, 8.507059e+37  ;;  %v3359_v53 = vld [vmem:[%s4987_s3 + $0x38] ss:$0 sm:$0xff] }
 0xde0   :  { %v3477_v24 = vpop.eup %3476 }
 0xde1   :  { %v1468_v29 = vmul.f32 %v3477_v24, %v1466_v17  ;;  %vm1473_vm14 = vweird.f32 %v3477_v24 }
 0xde2   :  { %vm1474_vm0 = vmor %vm1472_vm15, %vm1473_vm14 }
 0xde3   :  { %v1469_v47 = vsub.f32 1.0, %v1468_v29 }
 0xde5   :  { %v1470_v52 = vmul.f32 %v3477_v24, %v1469_v47 }
 0xde7   :  { %v1471_v31 = vadd.f32 %v3477_v24, %v1470_v52  ;;  %v3358_v52 = vld [vmem:[%s4987_s3 + $0x37] ss:$0 sm:$0xff] }
 0xde9   :  { %v1475_v51 = vsel %vm1474_vm0, %v3477_v24, %v1471_v31  ;;  %v3357_v24 = vld [vmem:[%s4987_s3 + $0x36] ss:$0 sm:$0xff] }
 0xdea   :  { %v1480_v34 = vsel %vm1477_vm2, %v1479_v32, %v1475_v51 }
 0xdeb   :  { %v1481_v35 = vmul.f32 %v1480_v34, %v1456_v50 }
 0xded   :  { %v3087_v36 = vclamps-f32 %v1481_v35, 1.0 }
 0xdef   :  { %v1484_v38 = vadd.f32 1.0, %v3087_v36 }
 0xdf1   :  { %v1485_v39 = vmul.f32 %v1484_v38, %v1442_v37 }
 0xdf3   :  { %1520 = vmatmul.f32.vlgmr.msrb.gmra.mxu3 %v1485_v39 }
 0xe76   :  { %v1521_v41 = vpop.f32.mrf.mxu3 }
 0xe77   :  { %v1522_v42 = vadd.f32 %v3351_v40, %v1521_v41 }
 0xe79   :  { %v1525_v43 = vrot.slane %v1522_v42, 1  ;;  %v4330_v44 = vadd.f32 %v1522_v42, %v4241_v18  ;;  %v3121_v18 = vld [vmem:[%s4988_s4 + $0x78] sm:$0xff] }
 0xe7a   :  { %1594 = vmatpush.msra.mxu2 %v3121_v18 }
 0xe7b   :  { %v4333_v45 = vadd.f32 %v1525_v43, %v4244_v19  ;;  %v1552_v49 = vmul.f32 %v4330_v44, %v4330_v44  ;;  %v3126_v19 = vld [vmem:[%s4989_s5 + $0x78] sm:$0xff] }
 0xe7c   :  { %1619 = vmatpush.msrb.mxu0 %v3126_v19  ;;  %1595 = vmatpush.msra.mxu2 %v3120_v22 }
 0xe7d   :  { %v1553_v46 = vmul.f32 %v4333_v45, %v4333_v45  ;;  %v1548_v5 = vrot.slane %v4333_v45, 7 }
 0xe7e   :  { %1620 = vmatpush.msrb.mxu0 %v3125_v23  ;;  %1596 = vmatpush.msra.mxu2 %v3119_v26 }
 0xe7f   :  { %v1556_v54 = vrot.slane %v1553_v46, 7  ;;  %v1549_v9 = vsel %vm143_vm11, %v1548_v5, %v4330_v44 }
 0xe80   :  { %1621 = vmatpush.msrb.mxu0 %v3124_v27  ;;  %1597 = vmatpush.msra.mxu2 %v3118_v60  ;;  %v1551_v13 = vmul.f32 %v3352_v8, %v1549_v9 }
 0xe81   :  { %v1557_v55 = vsel %vm143_vm11, %v1556_v54, %v1552_v49 }
 0xe82   :  { %v1559_v56 = vsel %vm154_vm10, %v1557_v55, 0.0  ;;  %1622 = vmatpush.msrb.mxu0 %v3123_v61  ;;  %1669 = vmatpush.msrb.mxu2 %v3136_v62 }
 0xe83   :  { %1560 = vadd.xlane.f32.xlu1 %v1559_v56 }
 0xe84   :  { %1670 = vmatpush.msrb.mxu2 %v3135_v63  ;;  %v3354_v63 = vld [vmem:[%s4987_s3 + $0x33] ss:$0 sm:$0xff] }
 0xe86   :  { %1671 = vmatpush.msrb.mxu2 %v3134_v0 }
 0xe88   :  { %1672 = vmatpush.msrb.mxu2 %v3133_v33 }
 0xef6   :  { %v1561_v1 = vpop.xlane.xlu1 %1560 }
 0xef7   :  { %v1562_v2 = vadd.f32 1e-06, %v1561_v1  ;;  %v3355_v1 = vld [vmem:[%s4987_s3 + $0x34] ss:$0 sm:$0xff] }
 0xef9   :  { %3478 = vrsqrt.f32 %v1562_v2  ;;  %vm1569_vm5 = vweird.f32 %v1562_v2 }
 0xeff   :  { %v3479_v3 = vpop.eup %3478 }
 0xf00   :  { %v1564_v4 = vmul.f32 %v3479_v3, %v1562_v2  ;;  %vm1570_vm3 = vweird.f32 %v3479_v3 }
 0xf01   :  { %vm1571_vm6 = vmor %vm1569_vm5, %vm1570_vm3 }
 0xf02   :  { %v1565_v6 = vmul.f32 %v3479_v3, %v1564_v4 }
 0xf04   :  { %v1566_v7 = vmul.f32 0.5, %v1565_v6 }
 0xf06   :  { %v1567_v11 = vsub.f32 1.5, %v1566_v7 }
 0xf08   :  { %v1568_v12 = vmul.f32 %v3479_v3, %v1567_v11 }
 0xf0a   :  { %v1572_v15 = vsel %vm1571_vm6, %v3479_v3, %v1568_v12  ;;  %v1682_v3 = vstv %s3116_s19 }
 0xf0b   :  { %v1573_v16 = vmul.f32 %v1572_v15, %v1551_v13 }
 0xf0d   :  { %3122 = vmatmul.msk.f32.vlgmr.msra.gmra.mxu2 %vm75_vm1, %v1573_v16  ;;  %3127 = vmatmul.msk.f32.vlgmr.msrb.gmra.mxu0 %vm75_vm1, %v1573_v16  ;;  %v1678_v17 = vmul.f32 %v3353_v14, %v1573_v16 }
 0xf0e   :  { %3132 = vmatmul.msk.f32.vlgmr.msra.gmra.mxu1 %vm75_vm1, %v1573_v16 }
 0xf0f   :  { %v1679_v20 = vsel %vm154_vm10, %v1678_v17, 0.0 }
 0xf10   :  { %1680 = vadd.xlane.f32.xlu2 %v1679_v20 }
 0xf15   :  { %3137 = vmatmul.msk.f32.vlgmr.msrb.gmra.mxu2 %vm75_vm1, %v1573_v16 }
 0xf83   :  { %v1681_v4 = vpop.xlane.xlu2 %1680 }
 0xf84   :  { %v1683_v6 = vadd.f32 %v1682_v3, %v1681_v4 }
 0xf86   :  { %v1685_v8 = vand.u32 2147483647, %v1683_v6 }
 0xf88   :  { %v1686_v11 = vsub.f32 0.0, %v1685_v8 }
 0xf8a   :  { %v1624_v0 = vpop.f32.mrf.mxu0  ;;  %v1687_v14 = vmul.f32 1.442695, %v1686_v11 }
 0xf8b   :  { %v1649_v25 = vpop.f32.mrf.mxu1  ;;  %v1694_v33 = vmul.f32 %v3354_v63, %v1624_v0 }
 0xf8c   :  { %v1718_v29 = vmul.f32 %v3356_v21, %v1649_v25 }
 0xf8d   :  { %v1696_v2 = vadd.f32 %v3355_v1, %v1694_v33 }
 0xf8e   :  { %v1720_v47 = vadd.f32 %v3357_v24, %v1718_v29 }
 0xf8f   :  { %v3138_v5 = vmul.f32 -1.442695, %v1696_v2 }
 0xf90   :  { %v3139_v48 = vmul.f32 -1.442695, %v1720_v47  ;;  %v4409_v30 = vpop.f32.mrf.mxu2 }
 0xf91   :  { %v3141_v7 = vmul.f32 -1.442695, %v4409_v30 }
 0xf92   :  { %3480 = vpow2.f32 %v3139_v48 }
 0xf98   :  { %v3481_v31 = vpop.eup %3480  ;;  %v1674_v32 = vpop.f32.mrf.mxu2 }
 0xf99   :  { %v1724_v50 = vadd.f32 1.0, %v3481_v31  ;;  %v1742_v51 = vmul.f32 %v3358_v52, %v1674_v32 }
 0xf9b   :  { %3482 = vrcp.f32 %v1724_v50  ;;  %v1744_v34 = vadd.f32 %v3359_v53, %v1742_v51  ;;  %v1736_v49 = vand.u32 2147483648, %v1724_v50  ;;  %vm1730_vm9 = vweird.f32 %v1724_v50 }
 0xf9c   :  { %v1734_v54 = vand.u32 2147483647, %v1724_v50 }
 0xf9d   :  { %v3140_v35 = vmul.f32 -1.442695, %v1744_v34  ;;  %v1737_v22 = vor.u32 1.1754944e-38, %v1736_v49 }
 0xf9e   :  { %vm1735_vm15 = vcmp.eq.f32.partialorder %v1734_v54, 8.507059e+37 }
 0xf9f   :  { %3484 = vpow2.f32 %v3140_v35 }
 0xfa1   :  { %v3483_v36 = vpop.eup %3482 }
 0xfa2   :  { %v1726_v37 = vmul.f32 %v3483_v36, %v1724_v50  ;;  %vm1731_vm7 = vweird.f32 %v3483_v36 }
 0xfa3   :  { %vm1732_vm13 = vmor %vm1730_vm9, %vm1731_vm7 }
 0xfa4   :  { %v1727_v40 = vsub.f32 1.0, %v1726_v37 }
 0xfa5   :  { %v3485_v38 = vpop.eup %3484 }
 0xfa6   :  { %v1748_v39 = vadd.f32 1.0, %v3485_v38  ;;  %v1728_v41 = vmul.f32 %v3483_v36, %v1727_v40 }
 0xfa8   :  { %3486 = vrcp.f32 %v1748_v39  ;;  %v1729_v43 = vadd.f32 %v3483_v36, %v1728_v41  ;;  %v1760_v56 = vand.u32 2147483648, %v1748_v39  ;;  %v1758_v57 = vand.u32 2147483647, %v1748_v39 }
 0xfa9   :  { %vm1754_vm0 = vweird.f32 %v1748_v39  ;;  %3488 = vpow2.f32 %v3138_v5 }
 0xfaa   :  { %v1733_v18 = vsel %vm1732_vm13, %v3483_v36, %v1729_v43  ;;  %v1761_v26 = vor.u32 1.1754944e-38, %v1760_v56  ;;  %vm1759_vm3 = vcmp.eq.f32.partialorder %v1758_v57, 8.507059e+37  ;;  %3490 = vpow2.f32 %v3141_v7  ;;  %v3360_v7 = vld [vmem:[%s4987_s3 + $0x32] ss:$0 sm:$0xff] }
 0xfab   :  { %v1738_v58 = vsel %vm1735_vm15, %v1737_v22, %v1733_v18  ;;  %v1684_v36 = vmax.f32 %v1683_v6, 0.0 }
 0xfac   :  { %v1740_v60 = vmul.f32 %v1738_v58, %v1720_v47 }
 0xfae   :  { %v3487_v42 = vpop.eup %3486 }
 0xfaf   :  { %v1750_v46 = vmul.f32 %v3487_v42, %v1748_v39  ;;  %vm1755_vm14 = vweird.f32 %v3487_v42  ;;  %v3489_v9 = vpop.eup %3488 }
 0xfb0   :  { %vm1756_vm2 = vmor %vm1754_vm0, %vm1755_vm14  ;;  %v3491_v12 = vpop.eup %3490  ;;  %v1700_v13 = vadd.f32 1.0, %v3489_v9 }
 0xfb1   :  { %v1751_v55 = vsub.f32 1.0, %v1750_v46  ;;  %v1776_v15 = vadd.f32 1.0, %v3491_v12  ;;  %v1770_v46 = vstv %s3117_s22 }
 0xfb2   :  { %3492 = vrcp.f32 %v1700_v13  ;;  %vm1706_vm6 = vweird.f32 %v1700_v13  ;;  %v1712_v32 = vand.u32 2147483648, %v1700_v13  ;;  %v1710_v50 = vand.u32 2147483647, %v1700_v13 }
 0xfb3   :  { %v1752_v19 = vmul.f32 %v3487_v42, %v1751_v55  ;;  %3494 = vpow2.f32 %v1687_v14  ;;  %v1788_v35 = vand.u32 2147483648, %v1776_v15  ;;  %vm1782_vm13 = vweird.f32 %v1776_v15 }
 0xfb4   :  { %3496 = vrcp.f32 %v1776_v15  ;;  %v1786_v38 = vand.u32 2147483647, %v1776_v15  ;;  %v1713_v39 = vor.u32 1.1754944e-38, %v1712_v32  ;;  %vm1711_vm15 = vcmp.eq.f32.partialorder %v1710_v50, 8.507059e+37 }
 0xfb5   :  { %v1753_v23 = vadd.f32 %v3487_v42, %v1752_v19  ;;  %v1789_v43 = vor.u32 1.1754944e-38, %v1788_v35 }
 0xfb6   :  { %vm1787_vm0 = vcmp.eq.f32.partialorder %v1786_v38, 8.507059e+37 }
 0xfb7   :  { %v1757_v27 = vsel %vm1756_vm2, %v3487_v42, %v1753_v23 }
 0xfb8   :  { %v1762_v59 = vsel %vm1759_vm3, %v1761_v26, %v1757_v27  ;;  %v3493_v16 = vpop.eup %3492  ;;  %v3149_v26 = vld [vmem:[%s4992_s8 + $0xf8] sm:$0xff]  ;;  %v3148_v27 = vld [vmem:[%s4992_s8 + $0xf0] sm:$0xff] }
 0xfb9   :  { %v1764_v61 = vmul.f32 %v1762_v59, %v1744_v34  ;;  %v3495_v17 = vpop.eup %3494  ;;  %v1702_v21 = vmul.f32 %v3493_v16, %v1700_v13  ;;  %vm1707_vm5 = vweird.f32 %v3493_v16  ;;  %1833 = vmatpush.msra.mxu0 %v3149_v26  ;;  %v3146_v59 = vld [vmem:[%s4992_s8 + $0xe0] sm:$0xff] }
 0xfba   :  { %v3497_v20 = vpop.eup %3496  ;;  %v1689_v24 = vadd.f32 1.0, %v3495_v17  ;;  %vm1708_vm9 = vmor %vm1706_vm6, %vm1707_vm5 }
 0xfbb   :  { %v1765_v28 = vmul.f32 %v1764_v61, %v1740_v60  ;;  %v1778_v25 = vmul.f32 %v3497_v20, %v1776_v15  ;;  %v1703_v29 = vsub.f32 1.0, %v1702_v21  ;;  %vm1783_vm7 = vweird.f32 %v3497_v20  ;;  %1834 = vmatpush.msra.mxu0 %v3148_v27  ;;  %v3145_v60 = vld [vmem:[%s4992_s8 + $0xd8] sm:$0xff]  ;;  %v3144_v61 = vld [vmem:[%s4992_s8 + $0xd0] sm:$0xff] }
 0xfbc   :  { %3498 = vlog2.f32 %v1689_v24  ;;  %vm1784_vm14 = vmor %vm1782_vm13, %vm1783_vm7 }
 0xfbd   :  { %v1766_v62 = vsel %vm358_vm8, %v1765_v28, 0.0  ;;  %v1779_v47 = vsub.f32 1.0, %v1778_v25  ;;  %v1704_v48 = vmul.f32 %v3493_v16, %v1703_v29  ;;  %v3143_v28 = vld [vmem:[%s4992_s8 + $0xc8] sm:$0xff]  ;;  %v3151_v29 = vld [vmem:[%s4993_s9 + $0x60] sm:$0xff] }
 0xfbe   :  { %1767 = vadd.xlane.f32.xlu1 %v1766_v62  ;;  %v3142_v62 = vld [vmem:[%s4992_s8 + $0xc0] sm:$0xff]  ;;  %v3152_v25 = vld [vmem:[%s4993_s9 + $0x68] sm:$0xff] }
 0xfbf   :  { %v1780_v52 = vmul.f32 %v3497_v20, %v1779_v47  ;;  %v1705_v31 = vadd.f32 %v3493_v16, %v1704_v48 }
 0xfc1   :  { %v1781_v51 = vadd.f32 %v3497_v20, %v1780_v52  ;;  %v1709_v37 = vsel %vm1708_vm9, %v3493_v16, %v1705_v31 }
 0xfc2   :  { %v3499_v53 = vpop.eup %3498  ;;  %v1714_v42 = vsel %vm1711_vm15, %v1713_v39, %v1709_v37 }
 0xfc3   :  { %v1691_v34 = vmul.f32 0.6931472, %v3499_v53  ;;  %v1785_v40 = vsel %vm1784_vm14, %v3497_v20, %v1781_v51  ;;  %v1716_v56 = vmul.f32 %v1714_v42, %v1696_v2  ;;  %v3361_v51 = vld [vmem:[%s4987_s3 + $0x31] ss:$0 sm:$0xff]  ;;  %v3170_v42 = vld [vmem:[%s4994_s10 + $0x1e8] sm:$0xff] }
 0xfc4   :  { %v1790_v55 = vsel %vm1787_vm0, %v1789_v43, %v1785_v40  ;;  %v3172_v40 = vld [vmem:[%s4994_s10 + $0x1f8] sm:$0xff] }
 0xfc5   :  { %v1692_v41 = vadd.f32 %v1691_v34, %v1684_v36  ;;  %v1792_v19 = vmul.f32 %v1790_v55, %v4409_v30  ;;  %v3147_v30 = vld [vmem:[%s4992_s8 + $0xe8] sm:$0xff]  ;;  %1971 = vmatpush.msra.mxu2 %v3172_v40  ;;  %v3362_v43 = vld [vmem:[%s4987_s3 + $0x39] ss:$0 sm:$0xff] }
 0xfc6   :  { %1835 = vmatpush.msra.mxu0 %v3147_v30  ;;  %v3163_v30 = vld [vmem:[%s4994_s10 + $0x1b0] sm:$0xff] }
 0xfc8   :  { %1836 = vmatpush.msra.mxu0 %v3146_v59 }
 0xfca   :  { %1837 = vmatpush.msra.mxu0 %v3145_v60 }
 0xfcc   :  { %1838 = vmatpush.msra.mxu0 %v3144_v61  ;;  %v3162_v61 = vld [vmem:[%s4994_s10 + $0x1a8] sm:$0xff] }
 0xfce   :  { %1839 = vmatpush.msra.mxu0 %v3143_v28 }
 0xfd0   :  { %1840 = vmatpush.msra.mxu0 %v3142_v62 }
0x1031   :  { %v1768_v49 = vpop.xlane.xlu1 %1767 }
0x1032   :  { %v1769_v54 = vmul.f32 %v1768_v49, %v1692_v41  ;;  %v3171_v41 = vld [vmem:[%s4994_s10 + $0x1f0] sm:$0xff]  ;;  %v3168_v49 = vld [vmem:[%s4994_s10 + $0x1d8] sm:$0xff] }
0x1033   :  { %1972 = vmatpush.msra.mxu2 %v3171_v41 }
0x1034   :  { %v1771_v18 = vadd.f32 %v1770_v46, %v1769_v54  ;;  %v3169_v46 = vld [vmem:[%s4994_s10 + $0x1e0] sm:$0xff] }
0x1035   :  { %1973 = vmatpush.msra.mxu2 %v3170_v42 }
0x1036   :  { %v1772_v57 = vmul.f32 %v1771_v18, %v1716_v56  ;;  %v3167_v56 = vld [vmem:[%s4994_s10 + $0x1d0] sm:$0xff] }
0x1037   :  { %1974 = vmatpush.msra.mxu2 %v3169_v46 }
0x1038   :  { %v1793_v22 = vmul.f32 %v1792_v19, %v1772_v57  ;;  %v3166_v19 = vld [vmem:[%s4994_s10 + $0x1c8] sm:$0xff] }
0x1039   :  { %1975 = vmatpush.msra.mxu2 %v3168_v49 }
0x103a   :  { %v1794_v23 = vmul.f32 %v1793_v22, %v1793_v22 }
0x103b   :  { %1976 = vmatpush.msra.mxu2 %v3167_v56  ;;  %v3200_v56 = vld [vmem:[%s4990_s6 + $0x98] sm:$0xff] }
0x103c   :  { %v1795_v58 = vsel %vm388_vm4, %v1794_v23, 0.0  ;;  %2111 = vmatpush.msrb.mxu0 %v3200_v56 }
0x103d   :  { %1796 = vadd.xlane.f32.xlu2 %v1795_v58  ;;  %1977 = vmatpush.msra.mxu2 %v3166_v19  ;;  %v3164_v58 = vld [vmem:[%s4994_s10 + $0x1b8] sm:$0xff]  ;;  %v3194_v19 = vld [vmem:[%s4989_s5 + $0x90] sm:$0xff] }
0x10b0   :  { %v1797_v63 = vpop.xlane.xlu2 %1796 }
0x10b1   :  { %v1798_v0 = vmul.f32 %v1797_v63, %v3801_v10  ;;  %v3161_v63 = vld [vmem:[%s4994_s10 + $0x1a0] sm:$0xff] }
0x10b3   :  { %v1799_v33 = vadd.f32 1e-05, %v1798_v0 }
0x10b5   :  { %3500 = vrsqrt.f32 %v1799_v33  ;;  %vm1806_vm3 = vweird.f32 %v1799_v33 }
0x10bb   :  { %v3501_v1 = vpop.eup %3500 }
0x10bc   :  { %v1801_v2 = vmul.f32 %v3501_v1, %v1799_v33  ;;  %vm1807_vm2 = vweird.f32 %v3501_v1  ;;  %v3160_v33 = vld [vmem:[%s4994_s10 + $0x198] sm:$0xff] }
0x10bd   :  { %vm1808_vm5 = vmor %vm1806_vm3, %vm1807_vm2 }
0x10be   :  { %v1802_v3 = vmul.f32 %v3501_v1, %v1801_v2 }
0x10c0   :  { %v1803_v4 = vmul.f32 0.5, %v1802_v3  ;;  %v3159_v3 = vld [vmem:[%s4994_s10 + $0x190] sm:$0xff] }
0x10c2   :  { %v1804_v5 = vsub.f32 1.5, %v1803_v4 }
0x10c4   :  { %v1805_v6 = vmul.f32 %v3501_v1, %v1804_v5  ;;  %v3158_v5 = vld [vmem:[%s4994_s10 + $0x188] sm:$0xff] }
0x10c6   :  { %v1809_v8 = vsel %vm1808_vm5, %v3501_v1, %v1805_v6 }
0x10c7   :  { %v1810_v9 = vmul.f32 %v1809_v8, %v1793_v22  ;;  %v3165_v22 = vld [vmem:[%s4994_s10 + $0x1c0] sm:$0xff] }
0x10c8   :  { %1978 = vmatpush.msra.mxu2 %v3165_v22  ;;  %v3188_v22 = vld [vmem:[%s4988_s4 + $0x88] sm:$0xff] }
0x10c9   :  { %v1812_v11 = vmul.f32 %v3360_v7, %v1810_v9  ;;  %v3157_v7 = vld [vmem:[%s4994_s10 + $0x180] sm:$0xff] }
0x10ca   :  { %1979 = vmatpush.msra.mxu2 %v3164_v58  ;;  %v3198_v58 = vld [vmem:[%s4990_s6 + $0x88] sm:$0xff] }
0x10cb   :  { %3150 = vmatmul.msk.f32.vlgmr.msra.gmra.mxu0 %vm422_vm12, %v1812_v11 }
0x10cc   :  { %1980 = vmatpush.msra.mxu2 %v3163_v30  ;;  %v3197_v30 = vld [vmem:[%s4990_s6 + $0x80] sm:$0xff] }
0x10ce   :  { %1981 = vmatpush.msra.mxu2 %v3162_v61  ;;  %v3203_v61 = vld [vmem:[%s4991_s7 + $0x88] sm:$0xff] }
0x10d0   :  { %1982 = vmatpush.msra.mxu2 %v3161_v63 }
0x10d2   :  { %1983 = vmatpush.msra.mxu2 %v3160_v33 }
0x10d4   :  { %1984 = vmatpush.msra.mxu2 %v3159_v3 }
0x10d6   :  { %1985 = vmatpush.msra.mxu2 %v3158_v5 }
0x10d8   :  { %1986 = vmatpush.msra.mxu2 %v3157_v7 }
0x1148   :  { %v1842_v12 = vpop.f32.mrf.mxu0 }
0x1149   :  { %v1846_v13 = vrot.slane %v1842_v12, 1  ;;  %v4457_v14 = vadd.f32 %v1842_v12, %v4330_v44  ;;  %v3154_v44 = vld [vmem:[%s4993_s9 + $0x78] sm:$0xff] }
0x114a   :  { %1901 = vmatpush.msrb.mxu1 %v3154_v44 }
0x114b   :  { %v4460_v15 = vadd.f32 %v1846_v13, %v4333_v45  ;;  %v1858_v17 = vmul.f32 %v4457_v14, %v4457_v14  ;;  %v3153_v45 = vld [vmem:[%s4993_s9 + $0x70] sm:$0xff] }
0x114c   :  { %1902 = vmatpush.msrb.mxu1 %v3153_v45 }
0x114d   :  { %v1859_v16 = vmul.f32 %v4460_v15, %v4460_v15  ;;  %v1854_v31 = vrot.slane %v4460_v15, 7 }
0x114e   :  { %1903 = vmatpush.msrb.mxu1 %v3152_v25 }
0x114f   :  { %v1862_v20 = vrot.slane %v1859_v16, 7  ;;  %v1855_v34 = vsel %vm143_vm11, %v1854_v31, %v4457_v14 }
0x1150   :  { %1904 = vmatpush.msrb.mxu1 %v3151_v29  ;;  %v1857_v37 = vmul.f32 %v3361_v51, %v1855_v34 }
0x1151   :  { %v1863_v21 = vsel %vm143_vm11, %v1862_v20, %v1858_v17 }
0x1152   :  { %v1865_v24 = vsel %vm154_vm10, %v1863_v21, 0.0 }
0x1153   :  { %1866 = vadd.xlane.f32.xlu0 %v1865_v24 }
0x11c6   :  { %v1867_v47 = vpop.xlane.xlu0 %1866 }
0x11c7   :  { %v1868_v48 = vadd.f32 1e-06, %v1867_v47 }
0x11c9   :  { %3502 = vrsqrt.f32 %v1868_v48  ;;  %vm1875_vm7 = vweird.f32 %v1868_v48 }
0x11cf   :  { %v3503_v52 = vpop.eup %3502 }
0x11d0   :  { %v1870_v53 = vmul.f32 %v3503_v52, %v1868_v48  ;;  %vm1876_vm6 = vweird.f32 %v3503_v52 }
0x11d1   :  { %vm1877_vm9 = vmor %vm1875_vm7, %vm1876_vm6 }
0x11d2   :  { %v1871_v32 = vmul.f32 %v3503_v52, %v1870_v53 }
0x11d4   :  { %v1872_v50 = vmul.f32 0.5, %v1871_v32 }
0x11d6   :  { %v1873_v35 = vsub.f32 1.5, %v1872_v50 }
0x11d8   :  { %v1874_v36 = vmul.f32 %v3503_v52, %v1873_v35 }
0x11da   :  { %v1878_v38 = vsel %vm1877_vm9, %v3503_v52, %v1874_v36 }
0x11db   :  { %v1879_v39 = vmul.f32 %v1878_v38, %v1857_v37  ;;  %v3363_v37 = vld [vmem:[%s4987_s3 + $0x3a] ss:$0 sm:$0xff] }
0x11dd   :  { %3155 = vmatmul.msk.f32.vlgmr.msrb.gmra.mxu1 %vm75_vm1, %v1879_v39 }
0x125a   :  { %v1906_v54 = vpop.f32.mrf.mxu1 }
0x125b   :  { %v4505_v55 = vadd.f32 %v3362_v43, %v1906_v54 }
0x125d   :  { %v1910_v18 = vmul.f32 0.70710677, %v4505_v55  ;;  %v1909_v34 = vmul.f32 0.5, %v4505_v55 }
0x125f   :  { %v1911_v57 = vmul.f32 %v1910_v18, %v1910_v18 }
0x1261   :  { %v1912_v23 = vmin.f32 %v1911_v57, 16.0  ;;  %v3199_v57 = vld [vmem:[%s4990_s6 + $0x90] sm:$0xff] }
0x1262   :  { %2112 = vmatpush.msrb.mxu0 %v3199_v57 }
0x1263   :  { %v1913_v26 = vmul.f32 2.1237322e-06, %v1912_v23  ;;  %v1924_v27 = vmul.f32 3.8918573e-05, %v1912_v23 }
0x1264   :  { %2113 = vmatpush.msrb.mxu0 %v3198_v58 }
0x1265   :  { %v1914_v59 = vadd.f32 0.00028619796, %v1913_v26  ;;  %v1925_v60 = vadd.f32 0.001143296, %v1924_v27  ;;  %v3187_v26 = vld [vmem:[%s4988_s4 + $0x80] sm:$0xff] }
0x1266   :  { %v3192_v27 = vld [vmem:[%s4989_s5 + $0x80] sm:$0xff]  ;;  %2114 = vmatpush.msrb.mxu0 %v3197_v30 }
0x1267   :  { %v1915_v28 = vmul.f32 %v1914_v59, %v1912_v23  ;;  %v1926_v62 = vmul.f32 %v1925_v60, %v1912_v23  ;;  %v3205_v59 = vld [vmem:[%s4991_s7 + $0x98] sm:$0xff]  ;;  %v3204_v60 = vld [vmem:[%s4991_s7 + $0x90] sm:$0xff] }
0x1269   :  { %v1927_v0 = vadd.f32 0.014752088, %v1926_v62  ;;  %v1916_v1 = vadd.f32 0.0036580483, %v1915_v28  ;;  %v3202_v28 = vld [vmem:[%s4991_s7 + $0x80] sm:$0xff] }
0x126b   :  { %v1928_v2 = vmul.f32 %v1927_v0, %v1912_v23  ;;  %v1917_v6 = vmul.f32 %v1916_v1, %v1912_v23 }
0x126d   :  { %v1929_v4 = vadd.f32 0.112945676, %v1928_v2  ;;  %v1918_v11 = vadd.f32 0.05243302, %v1917_v6 }
0x126f   :  { %v1930_v8 = vmul.f32 %v1929_v4, %v1912_v23  ;;  %v1919_v16 = vmul.f32 %v1918_v11, %v1912_v23  ;;  %v3364_v4 = vld [vmem:[%s4987_s3 + $0x40] ss:$0 sm:$0xff] }
0x1271   :  { %v1931_v9 = vadd.f32 0.4994258, %v1930_v8  ;;  %v1920_v17 = vadd.f32 0.18741608, %v1919_v16 }
0x1273   :  { %v1932_v12 = vmul.f32 %v1931_v9, %v1912_v23  ;;  %v1921_v21 = vmul.f32 %v1920_v17, %v1912_v23  ;;  %v3193_v23 = vld [vmem:[%s4989_s5 + $0x88] sm:$0xff]  ;;  %v3366_v17 = vld [vmem:[%s4987_s3 + $0x45] ss:$0 sm:$0xff] }
0x1274   :  { %v3365_v9 = vld [vmem:[%s4987_s3 + $0x4b] ss:$0 sm:$0xff] }
0x1275   :  { %v1933_v13 = vadd.f32 1.0, %v1932_v12  ;;  %v1922_v25 = vadd.f32 1.1283791, %v1921_v21  ;;  %v3367_v21 = vld [vmem:[%s4987_s3 + $0x46] ss:$0 sm:$0xff] }
0x1277   :  { %3504 = vrcp.f32 %v1933_v13  ;;  %v1945_v45 = vand.u32 2147483648, %v1933_v13  ;;  %v1943_v47 = vand.u32 2147483647, %v1933_v13  ;;  %vm1939_vm14 = vweird.f32 %v1933_v13 }
0x1278   :  { %v1923_v53 = vmul.f32 %v1922_v25, %v1910_v18  ;;  %v3189_v18 = vld [vmem:[%s4988_s4 + $0x90] sm:$0xff]  ;;  %v3370_v25 = vld [vmem:[%s4987_s3 + $0x47] ss:$0 sm:$0xff] }
0x1279   :  { %v1946_v52 = vor.u32 1.1754944e-38, %v1945_v45  ;;  %vm1944_vm0 = vcmp.eq.f32.partialorder %v1943_v47, 8.507059e+37  ;;  %v3371_v47 = vld [vmem:[%s4987_s3 + $0x48] ss:$0 sm:$0xff] }
0x127d   :  { %v3505_v20 = vpop.eup %3504 }
0x127e   :  { %v1935_v24 = vmul.f32 %v3505_v20, %v1933_v13  ;;  %vm1940_vm13 = vweird.f32 %v3505_v20 }
0x127f   :  { %vm1941_vm15 = vmor %vm1939_vm14, %vm1940_vm13 }
0x1280   :  { %v1936_v44 = vsub.f32 1.0, %v1935_v24 }
0x1282   :  { %v1937_v29 = vmul.f32 %v3505_v20, %v1936_v44 }
0x1284   :  { %v1938_v48 = vadd.f32 %v3505_v20, %v1937_v29 }
0x1286   :  { %v1942_v31 = vsel %vm1941_vm15, %v3505_v20, %v1938_v48 }
0x1287   :  { %v1947_v32 = vsel %vm1944_vm0, %v1946_v52, %v1942_v31 }
0x1288   :  { %v1948_v50 = vmul.f32 %v1947_v32, %v1923_v53 }
0x128a   :  { %v3156_v51 = vclamps-f32 %v1948_v50, 1.0 }
0x128c   :  { %v1951_v35 = vadd.f32 1.0, %v3156_v51 }
0x128e   :  { %v1952_v36 = vmul.f32 %v1951_v35, %v1909_v34 }
0x1290   :  { %1987 = vmatmul.f32.vlgmr.msra.gmra.mxu2 %v1952_v36 }
0x1313   :  { %v1988_v38 = vpop.f32.mrf.mxu2 }
0x1314   :  { %v1989_v39 = vadd.f32 %v3363_v37, %v1988_v38 }
0x1316   :  { %v1992_v40 = vrot.slane %v1989_v39, 1  ;;  %v4546_v41 = vadd.f32 %v1989_v39, %v4457_v14  ;;  %v3190_v14 = vld [vmem:[%s4988_s4 + $0x98] sm:$0xff] }
0x1317   :  { %2061 = vmatpush.msra.mxu1 %v3190_v14 }
0x1318   :  { %v4549_v42 = vadd.f32 %v1992_v40, %v4460_v15  ;;  %v2019_v46 = vmul.f32 %v4546_v41, %v4546_v41  ;;  %v3195_v15 = vld [vmem:[%s4989_s5 + $0x98] sm:$0xff] }
0x1319   :  { %2086 = vmatpush.msra.mxu3 %v3195_v15  ;;  %2062 = vmatpush.msra.mxu1 %v3189_v18 }
0x131a   :  { %v2020_v43 = vmul.f32 %v4549_v42, %v4549_v42  ;;  %v2015_v1 = vrot.slane %v4549_v42, 7 }
0x131b   :  { %2087 = vmatpush.msra.mxu3 %v3194_v19  ;;  %2063 = vmatpush.msra.mxu1 %v3188_v22 }
0x131c   :  { %v2023_v49 = vrot.slane %v2020_v43, 7  ;;  %v2016_v5 = vsel %vm143_vm11, %v2015_v1, %v4546_v41 }
0x131d   :  { %2088 = vmatpush.msra.mxu3 %v3193_v23  ;;  %2064 = vmatpush.msra.mxu1 %v3187_v26  ;;  %v2018_v8 = vmul.f32 %v3364_v4, %v2016_v5 }
0x131e   :  { %v2024_v54 = vsel %vm143_vm11, %v2023_v49, %v2019_v46 }
0x131f   :  { %v2026_v55 = vsel %vm154_vm10, %v2024_v54, 0.0  ;;  %2089 = vmatpush.msra.mxu3 %v3192_v27  ;;  %2136 = vmatpush.msrb.mxu1 %v3205_v59 }
0x1320   :  { %2027 = vadd.xlane.f32.xlu1 %v2026_v55 }
0x1321   :  { %2137 = vmatpush.msrb.mxu1 %v3204_v60  ;;  %v3368_v60 = vld [vmem:[%s4987_s3 + $0x43] ss:$0 sm:$0xff] }
0x1323   :  { %2138 = vmatpush.msrb.mxu1 %v3203_v61 }
0x1325   :  { %2139 = vmatpush.msrb.mxu1 %v3202_v28 }
0x1393   :  { %v2028_v62 = vpop.xlane.xlu1 %2027 }
0x1394   :  { %v2029_v63 = vadd.f32 1e-06, %v2028_v62  ;;  %v3369_v62 = vld [vmem:[%s4987_s3 + $0x44] ss:$0 sm:$0xff] }
0x1396   :  { %3506 = vrsqrt.f32 %v2029_v63  ;;  %vm2036_vm3 = vweird.f32 %v2029_v63 }
0x139c   :  { %v3507_v0 = vpop.eup %3506 }
0x139d   :  { %v2031_v33 = vmul.f32 %v3507_v0, %v2029_v63  ;;  %vm2037_vm2 = vweird.f32 %v3507_v0 }
0x139e   :  { %vm2038_vm5 = vmor %vm2036_vm3, %vm2037_vm2 }
0x139f   :  { %v2032_v2 = vmul.f32 %v3507_v0, %v2031_v33 }
0x13a1   :  { %v2033_v3 = vmul.f32 0.5, %v2032_v2 }
0x13a3   :  { %v2034_v6 = vsub.f32 1.5, %v2033_v3 }
0x13a5   :  { %v2035_v7 = vmul.f32 %v3507_v0, %v2034_v6 }
0x13a7   :  { %v2039_v11 = vsel %vm2038_vm5, %v3507_v0, %v2035_v7  ;;  %v2149_v0 = vstv %s3185_s2  ;;  %s3254_s2 = sld [smem:[#allocation2 + $0x280]] }
0x13a8   :  { %v2040_v12 = vmul.f32 %v2039_v11, %v2018_v8 }
0x13aa   :  { %3191 = vmatmul.msk.f32.vlgmr.msra.gmra.mxu1 %vm75_vm1, %v2040_v12  ;;  %3196 = vmatmul.msk.f32.vlgmr.msra.gmra.mxu3 %vm75_vm1, %v2040_v12  ;;  %v2145_v13 = vmul.f32 %v3365_v9, %v2040_v12 }
0x13ab   :  { %3201 = vmatmul.msk.f32.vlgmr.msrb.gmra.mxu0 %vm75_vm1, %v2040_v12 }
0x13ac   :  { %v2146_v16 = vsel %vm154_vm10, %v2145_v13, 0.0 }
0x13ad   :  { %2147 = vadd.xlane.f32.xlu2 %v2146_v16 }
0x13b2   :  { %3206 = vmatmul.msk.f32.vlgmr.msrb.gmra.mxu1 %vm75_vm1, %v2040_v12 }
0x1420   :  { %v2148_v33 = vpop.xlane.xlu2 %2147 }
0x1421   :  { %v2150_v1 = vadd.f32 %v2149_v0, %v2148_v33 }
0x1423   :  { %v2152_v4 = vand.u32 2147483647, %v2150_v1 }
0x1425   :  { %v2153_v5 = vsub.f32 0.0, %v2152_v4 }
0x1427   :  { %v4622_v20 = vpop.f32.mrf.mxu1  ;;  %v2154_v8 = vmul.f32 1.442695, %v2153_v5 }
0x1428   :  { %v2116_v24 = vpop.f32.mrf.mxu0  ;;  %v3210_v3 = vmul.f32 -1.442695, %v4622_v20 }
0x1429   :  { %v2185_v44 = vmul.f32 %v3366_v17, %v2116_v24 }
0x142b   :  { %v2187_v45 = vadd.f32 %v3367_v21, %v2185_v44 }
0x142d   :  { %v3208_v29 = vmul.f32 -1.442695, %v2187_v45  ;;  %v2091_v61 = vpop.f32.mrf.mxu3 }
0x142e   :  { %v2161_v28 = vmul.f32 %v3368_v60, %v2091_v61 }
0x142f   :  { %3508 = vpow2.f32 %v3208_v29  ;;  %v2141_v48 = vpop.f32.mrf.mxu1 }
0x1430   :  { %v2209_v52 = vmul.f32 %v3370_v25, %v2141_v48  ;;  %v2163_v63 = vadd.f32 %v3369_v62, %v2161_v28 }
0x1432   :  { %v2211_v53 = vadd.f32 %v3371_v47, %v2209_v52  ;;  %v3207_v2 = vmul.f32 -1.442695, %v2163_v63 }
0x1434   :  { %v3209_v31 = vmul.f32 -1.442695, %v2211_v53 }
0x1435   :  { %v3509_v32 = vpop.eup %3508 }
0x1436   :  { %v2191_v50 = vadd.f32 1.0, %v3509_v32  ;;  %3510 = vpow2.f32 %v3209_v31 }
0x1438   :  { %3512 = vrcp.f32 %v2191_v50  ;;  %v2203_v46 = vand.u32 2147483648, %v2191_v50  ;;  %vm2197_vm7 = vweird.f32 %v2191_v50  ;;  %v2201_v49 = vand.u32 2147483647, %v2191_v50 }
0x143a   :  { %v2204_v18 = vor.u32 1.1754944e-38, %v2203_v46  ;;  %vm2202_vm14 = vcmp.eq.f32.partialorder %v2201_v49, 8.507059e+37 }
0x143c   :  { %v3511_v51 = vpop.eup %3510 }
0x143d   :  { %v2215_v35 = vadd.f32 1.0, %v3511_v51  ;;  %v2151_v51 = vmax.f32 %v2150_v1, 0.0 }
0x143e   :  { %v3513_v34 = vpop.eup %3512 }
0x143f   :  { %v2193_v36 = vmul.f32 %v3513_v34, %v2191_v50  ;;  %3514 = vrcp.f32 %v2215_v35  ;;  %vm2198_vm6 = vweird.f32 %v3513_v34  ;;  %v2227_v55 = vand.u32 2147483648, %v2215_v35 }
0x1440   :  { %vm2199_vm9 = vmor %vm2197_vm7, %vm2198_vm6  ;;  %v2225_v56 = vand.u32 2147483647, %v2215_v35  ;;  %vm2221_vm15 = vweird.f32 %v2215_v35  ;;  %3516 = vpow2.f32 %v3207_v2 }
0x1441   :  { %v2194_v37 = vsub.f32 1.0, %v2193_v36  ;;  %v2228_v22 = vor.u32 1.1754944e-38, %v2227_v55  ;;  %3518 = vpow2.f32 %v3210_v3  ;;  %v3372_v3 = vld [vmem:[%s4987_s3 + $0x42] ss:$0 sm:$0xff] }
0x1442   :  { %vm2226_vm2 = vcmp.eq.f32.partialorder %v2225_v56, 8.507059e+37  ;;  %3520 = vpow2.f32 %v2154_v8 }
0x1443   :  { %v2195_v38 = vmul.f32 %v3513_v34, %v2194_v37 }
0x1445   :  { %v3515_v39 = vpop.eup %3514  ;;  %v2196_v40 = vadd.f32 %v3513_v34, %v2195_v38 }
0x1446   :  { %v2217_v43 = vmul.f32 %v3515_v39, %v2215_v35  ;;  %vm2222_vm13 = vweird.f32 %v3515_v39  ;;  %v3517_v6 = vpop.eup %3516 }
0x1447   :  { %v2200_v14 = vsel %vm2199_vm9, %v3513_v34, %v2196_v40  ;;  %vm2223_vm0 = vmor %vm2221_vm15, %vm2222_vm13  ;;  %v3519_v7 = vpop.eup %3518  ;;  %v2167_v9 = vadd.f32 1.0, %v3517_v6 }
0x1448   :  { %v2218_v54 = vsub.f32 1.0, %v2217_v43  ;;  %v2205_v57 = vsel %vm2202_vm14, %v2204_v18, %v2200_v14  ;;  %v2243_v11 = vadd.f32 1.0, %v3519_v7  ;;  %v3521_v12 = vpop.eup %3520  ;;  %v2237_v43 = vstv %s3186_s24  ;;  %s3255_s24 = sld [smem:[#allocation2 + $0x281]] }
0x1449   :  { %v2207_v26 = vmul.f32 %v2205_v57, %v2187_v45  ;;  %3522 = vrcp.f32 %v2167_v9  ;;  %v2156_v17 = vadd.f32 1.0, %v3521_v12  ;;  %v2179_v52 = vand.u32 2147483648, %v2167_v9 }
0x144a   :  { %v2219_v15 = vmul.f32 %v3515_v39, %v2218_v54  ;;  %3524 = vrcp.f32 %v2243_v11  ;;  %vm2173_vm6 = vweird.f32 %v2167_v9  ;;  %v2177_v32 = vand.u32 2147483647, %v2167_v9 }
0x144b   :  { %3526 = vlog2.f32 %v2156_v17  ;;  %v2255_v50 = vand.u32 2147483648, %v2243_v11  ;;  %vm2249_vm9 = vweird.f32 %v2243_v11  ;;  %v2253_v34 = vand.u32 2147483647, %v2243_v11 }
0x144c   :  { %v2220_v19 = vadd.f32 %v3515_v39, %v2219_v15  ;;  %v2180_v36 = vor.u32 1.1754944e-38, %v2179_v52  ;;  %vm2178_vm14 = vcmp.eq.f32.partialorder %v2177_v32, 8.507059e+37 }
0x144d   :  { %vm2254_vm15 = vcmp.eq.f32.partialorder %v2253_v34, 8.507059e+37 }
0x144e   :  { %v2224_v23 = vsel %vm2223_vm0, %v3515_v39, %v2220_v19  ;;  %v2256_v39 = vor.u32 1.1754944e-38, %v2255_v50 }
0x144f   :  { %v2229_v58 = vsel %vm2226_vm2, %v2228_v22, %v2224_v23  ;;  %v3523_v13 = vpop.eup %3522  ;;  %v3218_v22 = vld [vmem:[%s4992_s8 + $0x138] sm:$0xff]  ;;  %v3217_v23 = vld [vmem:[%s4992_s8 + $0x130] sm:$0xff] }
0x1450   :  { %v2231_v27 = vmul.f32 %v2229_v58, %v2211_v53  ;;  %v3525_v16 = vpop.eup %3524  ;;  %v2169_v21 = vmul.f32 %v3523_v13, %v2167_v9  ;;  %vm2174_vm3 = vweird.f32 %v3523_v13  ;;  %2300 = vmatpush.msrb.mxu3 %v3218_v22  ;;  %v3215_v58 = vld [vmem:[%s4992_s8 + $0x120] sm:$0xff] }
0x1451   :  { %v2245_v24 = vmul.f32 %v3525_v16, %v2243_v11  ;;  %v3527_v29 = vpop.eup %3526  ;;  %vm2250_vm5 = vweird.f32 %v3525_v16  ;;  %vm2175_vm7 = vmor %vm2173_vm6, %vm2174_vm3 }
0x1452   :  { %v2232_v30 = vmul.f32 %v2231_v27, %v2207_v26  ;;  %v2170_v44 = vsub.f32 1.0, %v2169_v21  ;;  %v2158_v53 = vmul.f32 0.6931472, %v3527_v29  ;;  %vm2251_vm13 = vmor %vm2249_vm9, %vm2250_vm5  ;;  %2301 = vmatpush.msrb.mxu3 %v3217_v23  ;;  %v3214_v26 = vld [vmem:[%s4992_s8 + $0x118] sm:$0xff]  ;;  %v3213_v27 = vld [vmem:[%s4992_s8 + $0x110] sm:$0xff] }
0x1453   :  { %v2246_v45 = vsub.f32 1.0, %v2245_v24  ;;  %v3221_v24 = vld [vmem:[%s4993_s9 + $0x88] sm:$0xff] }
0x1454   :  { %v2233_v59 = vsel %vm358_vm8, %v2232_v30, 0.0  ;;  %v2171_v25 = vmul.f32 %v3523_v13, %v2170_v44  ;;  %v2159_v38 = vadd.f32 %v2158_v53, %v2151_v51  ;;  %v3212_v30 = vld [vmem:[%s4992_s8 + $0x108] sm:$0xff]  ;;  %v3220_v44 = vld [vmem:[%s4993_s9 + $0x80] sm:$0xff] }
0x1455   :  { %2234 = vadd.xlane.f32.xlu0 %v2233_v59  ;;  %v2247_v47 = vmul.f32 %v3525_v16, %v2246_v45  ;;  %v3211_v59 = vld [vmem:[%s4992_s8 + $0x100] sm:$0xff] }
0x1456   :  { %v2172_v48 = vadd.f32 %v3523_v13, %v2171_v25 }
0x1457   :  { %v2248_v31 = vadd.f32 %v3525_v16, %v2247_v47 }
0x1458   :  { %v2176_v35 = vsel %vm2175_vm7, %v3523_v13, %v2172_v48 }
0x1459   :  { %v2252_v37 = vsel %vm2251_vm13, %v3525_v16, %v2248_v31  ;;  %v2181_v40 = vsel %vm2178_vm14, %v2180_v36, %v2176_v35  ;;  %v3373_v31 = vld [vmem:[%s4987_s3 + $0x41] ss:$0 sm:$0xff] }
0x145a   :  { %v2257_v54 = vsel %vm2254_vm15, %v2256_v39, %v2252_v37  ;;  %v2183_v55 = vmul.f32 %v2181_v40, %v2163_v63  ;;  %v3241_v37 = vld [vmem:[%s4994_s10 + $0x278] sm:$0xff]  ;;  %v3239_v39 = vld [vmem:[%s4994_s10 + $0x268] sm:$0xff] }
0x145b   :  { %v2259_v15 = vmul.f32 %v2257_v54, %v4622_v20  ;;  %v3216_v20 = vld [vmem:[%s4992_s8 + $0x128] sm:$0xff]  ;;  %2438 = vmatpush.msra.mxu1 %v3241_v37 }
0x145c   :  { %2302 = vmatpush.msrb.mxu3 %v3216_v20  ;;  %v3374_v40 = vld [vmem:[%s4987_s3 + $0x49] ss:$0 sm:$0xff]  ;;  %v3232_v20 = vld [vmem:[%s4994_s10 + $0x230] sm:$0xff] }
0x145e   :  { %2303 = vmatpush.msrb.mxu3 %v3215_v58 }
0x1460   :  { %2304 = vmatpush.msrb.mxu3 %v3214_v26 }
0x1462   :  { %2305 = vmatpush.msrb.mxu3 %v3213_v27  ;;  %v3231_v27 = vld [vmem:[%s4994_s10 + $0x228] sm:$0xff] }
0x1464   :  { %2306 = vmatpush.msrb.mxu3 %v3212_v30 }
0x1466   :  { %2307 = vmatpush.msrb.mxu3 %v3211_v59 }
0x14c8   :  { %v2235_v46 = vpop.xlane.xlu0 %2234 }
0x14c9   :  { %v2236_v49 = vmul.f32 %v2235_v46, %v2159_v38  ;;  %v3240_v38 = vld [vmem:[%s4994_s10 + $0x270] sm:$0xff]  ;;  %v3237_v46 = vld [vmem:[%s4994_s10 + $0x258] sm:$0xff] }
0x14ca   :  { %2439 = vmatpush.msra.mxu1 %v3240_v38 }
0x14cb   :  { %v2238_v14 = vadd.f32 %v2237_v43, %v2236_v49  ;;  %v3238_v43 = vld [vmem:[%s4994_s10 + $0x260] sm:$0xff] }
0x14cc   :  { %2440 = vmatpush.msra.mxu1 %v3239_v39 }
0x14cd   :  { %v2239_v56 = vmul.f32 %v2238_v14, %v2183_v55  ;;  %v3236_v55 = vld [vmem:[%s4994_s10 + $0x250] sm:$0xff] }
0x14ce   :  { %2441 = vmatpush.msra.mxu1 %v3238_v43 }
0x14cf   :  { %v2260_v18 = vmul.f32 %v2259_v15, %v2239_v56  ;;  %v3235_v15 = vld [vmem:[%s4994_s10 + $0x248] sm:$0xff] }
0x14d0   :  { %2442 = vmatpush.msra.mxu1 %v3237_v46 }
0x14d1   :  { %v2261_v19 = vmul.f32 %v2260_v18, %v2260_v18 }
0x14d2   :  { %2443 = vmatpush.msra.mxu1 %v3236_v55  ;;  %v3269_v55 = vld [vmem:[%s4990_s6 + $0xb8] sm:$0xff] }
0x14d3   :  { %v2262_v57 = vsel %vm388_vm4, %v2261_v19, 0.0  ;;  %2578 = vmatpush.msra.mxu3 %v3269_v55 }
0x14d4   :  { %2263 = vadd.xlane.f32.xlu1 %v2262_v57  ;;  %2444 = vmatpush.msra.mxu1 %v3235_v15  ;;  %v3233_v57 = vld [vmem:[%s4994_s10 + $0x238] sm:$0xff]  ;;  %v3263_v15 = vld [vmem:[%s4989_s5 + $0xb0] sm:$0xff] }
0x1547   :  { %v2264_v60 = vpop.xlane.xlu1 %2263 }
0x1548   :  { %v2265_v61 = vmul.f32 %v2264_v60, %v3801_v10  ;;  %v3230_v60 = vld [vmem:[%s4994_s10 + $0x220] sm:$0xff] }
0x154a   :  { %v2266_v28 = vadd.f32 1e-05, %v2265_v61 }
0x154c   :  { %3528 = vrsqrt.f32 %v2266_v28  ;;  %vm2273_vm2 = vweird.f32 %v2266_v28 }
0x1552   :  { %v3529_v62 = vpop.eup %3528 }
0x1553   :  { %v2268_v63 = vmul.f32 %v3529_v62, %v2266_v28  ;;  %vm2274_vm0 = vweird.f32 %v3529_v62  ;;  %v3229_v28 = vld [vmem:[%s4994_s10 + $0x218] sm:$0xff] }
0x1554   :  { %vm2275_vm3 = vmor %vm2273_vm2, %vm2274_vm0 }
0x1555   :  { %v2269_v0 = vmul.f32 %v3529_v62, %v2268_v63 }
0x1557   :  { %v2270_v33 = vmul.f32 0.5, %v2269_v0  ;;  %v3228_v0 = vld [vmem:[%s4994_s10 + $0x210] sm:$0xff] }
0x1559   :  { %v2271_v1 = vsub.f32 1.5, %v2270_v33 }
0x155b   :  { %v2272_v2 = vmul.f32 %v3529_v62, %v2271_v1  ;;  %v3227_v1 = vld [vmem:[%s4994_s10 + $0x208] sm:$0xff] }
0x155d   :  { %v2276_v4 = vsel %vm2275_vm3, %v3529_v62, %v2272_v2 }
0x155e   :  { %v2277_v5 = vmul.f32 %v2276_v4, %v2260_v18  ;;  %v3234_v18 = vld [vmem:[%s4994_s10 + $0x240] sm:$0xff] }
0x155f   :  { %2445 = vmatpush.msra.mxu1 %v3234_v18  ;;  %v3257_v18 = vld [vmem:[%s4988_s4 + $0xa8] sm:$0xff] }
0x1560   :  { %v2279_v6 = vmul.f32 %v3372_v3, %v2277_v5  ;;  %v3226_v3 = vld [vmem:[%s4994_s10 + $0x200] sm:$0xff] }
0x1561   :  { %2446 = vmatpush.msra.mxu1 %v3233_v57  ;;  %v3267_v57 = vld [vmem:[%s4990_s6 + $0xa8] sm:$0xff] }
0x1562   :  { %3219 = vmatmul.msk.f32.vlgmr.msrb.gmra.mxu3 %vm422_vm12, %v2279_v6 }
0x1563   :  { %2447 = vmatpush.msra.mxu1 %v3232_v20  ;;  %v3266_v20 = vld [vmem:[%s4990_s6 + $0xa0] sm:$0xff] }
0x1565   :  { %2448 = vmatpush.msra.mxu1 %v3231_v27  ;;  %v3272_v27 = vld [vmem:[%s4991_s7 + $0xa8] sm:$0xff] }
0x1567   :  { %2449 = vmatpush.msra.mxu1 %v3230_v60 }
0x1569   :  { %2450 = vmatpush.msra.mxu1 %v3229_v28 }
0x156b   :  { %2451 = vmatpush.msra.mxu1 %v3228_v0 }
0x156d   :  { %2452 = vmatpush.msra.mxu1 %v3227_v1 }
0x156f   :  { %2453 = vmatpush.msra.mxu1 %v3226_v3 }
0x15e5   :  { %v2309_v7 = vpop.f32.mrf.mxu3 }
0x15e6   :  { %v2313_v8 = vrot.slane %v2309_v7, 1  ;;  %v4673_v9 = vadd.f32 %v2309_v7, %v4546_v41  ;;  %v3223_v41 = vld [vmem:[%s4993_s9 + $0x98] sm:$0xff] }
0x15e7   :  { %2368 = vmatpush.msra.mxu0 %v3223_v41 }
0x15e8   :  { %v4676_v11 = vadd.f32 %v2313_v8, %v4549_v42  ;;  %v2325_v13 = vmul.f32 %v4673_v9, %v4673_v9  ;;  %v3222_v42 = vld [vmem:[%s4993_s9 + $0x90] sm:$0xff] }
0x15e9   :  { %2369 = vmatpush.msra.mxu0 %v3222_v42 }
0x15ea   :  { %v2326_v12 = vmul.f32 %v4676_v11, %v4676_v11  ;;  %v2321_v48 = vrot.slane %v4676_v11, 7 }
0x15eb   :  { %2370 = vmatpush.msra.mxu0 %v3221_v24 }
0x15ec   :  { %v2329_v16 = vrot.slane %v2326_v12, 7  ;;  %v2322_v32 = vsel %vm143_vm11, %v2321_v48, %v4673_v9 }
0x15ed   :  { %2371 = vmatpush.msra.mxu0 %v3220_v44  ;;  %v2324_v34 = vmul.f32 %v3373_v31, %v2322_v32 }
0x15ee   :  { %v2330_v17 = vsel %vm143_vm11, %v2329_v16, %v2325_v13 }
0x15ef   :  { %v2332_v21 = vsel %vm154_vm10, %v2330_v17, 0.0 }
0x15f0   :  { %2333 = vadd.xlane.f32.xlu2 %v2332_v21 }
0x1663   :  { %v2334_v45 = vpop.xlane.xlu2 %2333 }
0x1664   :  { %v2335_v25 = vadd.f32 1e-06, %v2334_v45 }
0x1666   :  { %3530 = vrsqrt.f32 %v2335_v25  ;;  %vm2342_vm6 = vweird.f32 %v2335_v25 }
0x166c   :  { %v3531_v29 = vpop.eup %3530 }
0x166d   :  { %v2337_v47 = vmul.f32 %v3531_v29, %v2335_v25  ;;  %vm2343_vm5 = vweird.f32 %v3531_v29 }
0x166e   :  { %vm2344_vm7 = vmor %vm2342_vm6, %vm2343_vm5 }
0x166f   :  { %v2338_v52 = vmul.f32 %v3531_v29, %v2337_v47 }
0x1671   :  { %v2339_v53 = vmul.f32 0.5, %v2338_v52 }
0x1673   :  { %v2340_v50 = vsub.f32 1.5, %v2339_v53 }
0x1675   :  { %v2341_v51 = vmul.f32 %v3531_v29, %v2340_v50 }
0x1677   :  { %v2345_v35 = vsel %vm2344_vm7, %v3531_v29, %v2341_v51 }
0x1678   :  { %v2346_v36 = vmul.f32 %v2345_v35, %v2324_v34  ;;  %v3375_v34 = vld [vmem:[%s4987_s3 + $0x4a] ss:$0 sm:$0xff] }
0x167a   :  { %3224 = vmatmul.msk.f32.vlgmr.msra.gmra.mxu0 %vm75_vm1, %v2346_v36 }
0x16f7   :  { %v2373_v49 = vpop.f32.mrf.mxu0 }
0x16f8   :  { %v4721_v54 = vadd.f32 %v3374_v40, %v2373_v49 }
0x16fa   :  { %v2377_v14 = vmul.f32 0.70710677, %v4721_v54  ;;  %v2376_v32 = vmul.f32 0.5, %v4721_v54 }
0x16fc   :  { %v2378_v56 = vmul.f32 %v2377_v14, %v2377_v14 }
0x16fe   :  { %v2379_v19 = vmin.f32 %v2378_v56, 16.0  ;;  %v3268_v56 = vld [vmem:[%s4990_s6 + $0xb0] sm:$0xff]  ;;  %s3604_s6 = smov [#allocation5]  }
0x16ff   :  { %2579 = vmatpush.msra.mxu3 %v3268_v56  ;;  %s2942_s29 = sshll.u32 %s3604_s6, 4  ;;  %s2943_s29 = int_to_ptr.vmem [resolvable:$true] %s2942_s29 }
0x1700   :  { %v2380_v22 = vmul.f32 2.1237322e-06, %v2379_v19  ;;  %v2391_v23 = vmul.f32 3.8918573e-05, %v2379_v19 }
0x1701   :  { %2580 = vmatpush.msra.mxu3 %v3267_v57 }
0x1702   :  { %v2381_v58 = vadd.f32 0.00028619796, %v2380_v22  ;;  %v2392_v26 = vadd.f32 0.001143296, %v2391_v23  ;;  %v3256_v22 = vld [vmem:[%s4988_s4 + $0xa0] sm:$0xff] }
0x1703   :  { %v3261_v23 = vld [vmem:[%s4989_s5 + $0xa0] sm:$0xff]  ;;  %2581 = vmatpush.msra.mxu3 %v3266_v20 }
0x1704   :  { %v2382_v30 = vmul.f32 %v2381_v58, %v2379_v19  ;;  %v2393_v59 = vmul.f32 %v2392_v26, %v2379_v19  ;;  %v3274_v58 = vld [vmem:[%s4991_s7 + $0xb8] sm:$0xff]  ;;  %v3273_v26 = vld [vmem:[%s4991_s7 + $0xb0] sm:$0xff] }
0x1706   :  { %v2394_v61 = vadd.f32 0.014752088, %v2393_v59  ;;  %v2383_v62 = vadd.f32 0.0036580483, %v2382_v30  ;;  %v3271_v30 = vld [vmem:[%s4991_s7 + $0xa0] sm:$0xff] }
0x1708   :  { %v2395_v63 = vmul.f32 %v2394_v61, %v2379_v19  ;;  %v2384_v2 = vmul.f32 %v2383_v62, %v2379_v19 }
0x170a   :  { %v2396_v33 = vadd.f32 0.112945676, %v2395_v63  ;;  %v2385_v6 = vadd.f32 0.05243302, %v2384_v2 }
0x170c   :  { %v2397_v4 = vmul.f32 %v2396_v33, %v2379_v19  ;;  %v2386_v12 = vmul.f32 %v2385_v6, %v2379_v19  ;;  %v3376_v33 = vld [vmem:[%s4987_s3 + $0x50] ss:$0 sm:$0xff] }
0x170e   :  { %v2398_v5 = vadd.f32 0.4994258, %v2397_v4  ;;  %v2387_v13 = vadd.f32 0.18741608, %v2386_v12 }
0x1710   :  { %v2399_v7 = vmul.f32 %v2398_v5, %v2379_v19  ;;  %v2388_v17 = vmul.f32 %v2387_v13, %v2379_v19  ;;  %v3262_v19 = vld [vmem:[%s4989_s5 + $0xa8] sm:$0xff]  ;;  %v3377_v5 = vld [vmem:[%s4987_s3 + $0x5b] ss:$0 sm:$0xff] }
0x1712   :  { %v2400_v8 = vadd.f32 1.0, %v2399_v7  ;;  %v2389_v24 = vadd.f32 1.1283791, %v2388_v17  ;;  %v3382_v17 = vld [vmem:[%s4987_s3 + $0x57] ss:$0 sm:$0xff] }
0x1714   :  { %3532 = vrcp.f32 %v2400_v8  ;;  %v2412_v42 = vand.u32 2147483648, %v2400_v8  ;;  %v2410_v45 = vand.u32 2147483647, %v2400_v8  ;;  %vm2406_vm13 = vweird.f32 %v2400_v8 }
0x1715   :  { %v2390_v47 = vmul.f32 %v2389_v24, %v2377_v14  ;;  %v3258_v14 = vld [vmem:[%s4988_s4 + $0xb0] sm:$0xff] }
0x1716   :  { %v2413_v29 = vor.u32 1.1754944e-38, %v2412_v42  ;;  %vm2411_vm15 = vcmp.eq.f32.partialorder %v2410_v45, 8.507059e+37  ;;  %v3383_v42 = vld [vmem:[%s4987_s3 + $0x58] ss:$0 sm:$0xff] }
0x171a   :  { %v3533_v16 = vpop.eup %3532 }
0x171b   :  { %v2402_v21 = vmul.f32 %v3533_v16, %v2400_v8  ;;  %vm2407_vm9 = vweird.f32 %v3533_v16 }
0x171c   :  { %vm2408_vm14 = vmor %vm2406_vm13, %vm2407_vm9 }
0x171d   :  { %v2403_v41 = vsub.f32 1.0, %v2402_v21  ;;  %v3381_v21 = vld [vmem:[%s4987_s3 + $0x56] ss:$0 sm:$0xff] }
0x171f   :  { %v2404_v44 = vmul.f32 %v3533_v16, %v2403_v41 }
0x1721   :  { %v2405_v25 = vadd.f32 %v3533_v16, %v2404_v44 }
0x1723   :  { %v2409_v48 = vsel %vm2408_vm14, %v3533_v16, %v2405_v25  ;;  %v3380_v16 = vld [vmem:[%s4987_s3 + $0x55] ss:$0 sm:$0xff] }
0x1724   :  { %v2414_v52 = vsel %vm2411_vm15, %v2413_v29, %v2409_v48 }
0x1725   :  { %v2415_v53 = vmul.f32 %v2414_v52, %v2390_v47 }
0x1727   :  { %v3225_v31 = vclamps-f32 %v2415_v53, 1.0 }
0x1729   :  { %v2418_v50 = vadd.f32 1.0, %v3225_v31 }
0x172b   :  { %v2419_v51 = vmul.f32 %v2418_v50, %v2376_v32 }
0x172d   :  { %2454 = vmatmul.f32.vlgmr.msra.gmra.mxu1 %v2419_v51 }
0x17aa   :  { %v2455_v35 = vpop.f32.mrf.mxu1 }
0x17ab   :  { %v2456_v36 = vadd.f32 %v3375_v34, %v2455_v35 }
0x17ad   :  { %v2459_v37 = vrot.slane %v2456_v36, 1  ;;  %v4762_v38 = vadd.f32 %v2456_v36, %v4673_v9  ;;  %v3259_v9 = vld [vmem:[%s4988_s4 + $0xb8] sm:$0xff] }
0x17ae   :  { %2528 = vmatpush.msrb.mxu0 %v3259_v9 }
0x17af   :  { %v4765_v39 = vadd.f32 %v2459_v37, %v4676_v11  ;;  %v2486_v43 = vmul.f32 %v4762_v38, %v4762_v38  ;;  %v3264_v11 = vld [vmem:[%s4989_s5 + $0xb8] sm:$0xff] }
0x17b0   :  { %2553 = vmatpush.msrb.mxu2 %v3264_v11  ;;  %2529 = vmatpush.msrb.mxu0 %v3258_v14 }
0x17b1   :  { %v2487_v40 = vmul.f32 %v4765_v39, %v4765_v39  ;;  %v2482_v62 = vrot.slane %v4765_v39, 7 }
0x17b2   :  { %2554 = vmatpush.msrb.mxu2 %v3263_v15  ;;  %2530 = vmatpush.msrb.mxu0 %v3257_v18 }
0x17b3   :  { %v2490_v46 = vrot.slane %v2487_v40, 7  ;;  %v2483_v1 = vsel %vm143_vm11, %v2482_v62, %v4762_v38 }
0x17b4   :  { %2555 = vmatpush.msrb.mxu2 %v3262_v19  ;;  %2531 = vmatpush.msrb.mxu0 %v3256_v22  ;;  %v2485_v4 = vmul.f32 %v3376_v33, %v2483_v1 }
0x17b5   :  { %v2491_v49 = vsel %vm143_vm11, %v2490_v46, %v2486_v43 }
0x17b6   :  { %v2493_v54 = vsel %vm154_vm10, %v2491_v49, 0.0  ;;  %2556 = vmatpush.msrb.mxu2 %v3261_v23  ;;  %2603 = vmatpush.msra.mxu0 %v3274_v58 }
0x17b7   :  { %2494 = vadd.xlane.f32.xlu0 %v2493_v54 }
0x17b8   :  { %2604 = vmatpush.msra.mxu0 %v3273_v26  ;;  %v3378_v26 = vld [vmem:[%s4987_s3 + $0x53] ss:$0 sm:$0xff] }
0x17ba   :  { %2605 = vmatpush.msra.mxu0 %v3272_v27 }
0x17bc   :  { %2606 = vmatpush.msra.mxu0 %v3271_v30 }
0x182a   :  { %v2495_v59 = vpop.xlane.xlu0 %2494 }
0x182b   :  { %v2496_v60 = vadd.f32 1e-06, %v2495_v59  ;;  %v3379_v59 = vld [vmem:[%s4987_s3 + $0x54] ss:$0 sm:$0xff] }
0x182d   :  { %3534 = vrsqrt.f32 %v2496_v60  ;;  %vm2503_vm2 = vweird.f32 %v2496_v60 }
0x1833   :  { %v3535_v61 = vpop.eup %3534 }
0x1834   :  { %v2498_v28 = vmul.f32 %v3535_v61, %v2496_v60  ;;  %vm2504_vm0 = vweird.f32 %v3535_v61 }
0x1835   :  { %vm2505_vm3 = vmor %vm2503_vm2, %vm2504_vm0 }
0x1836   :  { %v2499_v63 = vmul.f32 %v3535_v61, %v2498_v28 }
0x1838   :  { %v2500_v0 = vmul.f32 0.5, %v2499_v63 }
0x183a   :  { %v2501_v2 = vsub.f32 1.5, %v2500_v0 }
0x183c   :  { %v2502_v3 = vmul.f32 %v3535_v61, %v2501_v2 }
0x183e   :  { %v2506_v6 = vsel %vm2505_vm3, %v3535_v61, %v2502_v3  ;;  %v2616_v61 = vstv %s3254_s2 }
0x183f   :  { %v2507_v7 = vmul.f32 %v2506_v6, %v2485_v4 }
0x1841   :  { %3260 = vmatmul.msk.f32.vlgmr.msrb.gmra.mxu0 %vm75_vm1, %v2507_v7  ;;  %3265 = vmatmul.msk.f32.vlgmr.msrb.gmra.mxu2 %vm75_vm1, %v2507_v7  ;;  %v2612_v8 = vmul.f32 %v3377_v5, %v2507_v7 }
0x1842   :  { %3270 = vmatmul.msk.f32.vlgmr.msra.gmra.mxu3 %vm75_vm1, %v2507_v7 }
0x1843   :  { %v2613_v12 = vsel %vm154_vm10, %v2612_v8, 0.0 }
0x1844   :  { %2614 = vadd.xlane.f32.xlu1 %v2613_v12 }
0x1849   :  { %3275 = vmatmul.msk.f32.vlgmr.msra.gmra.mxu0 %vm75_vm1, %v2507_v7 }
0x18b7   :  { %v2615_v28 = vpop.xlane.xlu1 %2614 }
0x18b8   :  { %v2617_v62 = vadd.f32 %v2616_v61, %v2615_v28 }
0x18ba   :  { %v2619_v33 = vand.u32 2147483647, %v2617_v62 }
0x18bc   :  { %v2620_v1 = vsub.f32 0.0, %v2619_v33 }
0x18be   :  { %v4835_v13 = vpop.f32.mrf.mxu0  ;;  %v2621_v4 = vmul.f32 1.442695, %v2620_v1 }
0x18bf   :  { %v3279_v0 = vmul.f32 -1.442695, %v4835_v13 }
0x18c4   :  { %v2558_v27 = vpop.f32.mrf.mxu2 }
0x18c5   :  { %v2583_v41 = vpop.f32.mrf.mxu3  ;;  %v2628_v30 = vmul.f32 %v3378_v26, %v2558_v27 }
0x18c6   :  { %v2652_v24 = vmul.f32 %v3380_v16, %v2583_v41  ;;  %v2608_v44 = vpop.f32.mrf.mxu0 }
0x18c7   :  { %v2676_v45 = vmul.f32 %v3382_v17, %v2608_v44  ;;  %v2630_v60 = vadd.f32 %v3379_v59, %v2628_v30 }
0x18c8   :  { %v2654_v25 = vadd.f32 %v3381_v21, %v2652_v24 }
0x18c9   :  { %v2678_v29 = vadd.f32 %v3383_v42, %v2676_v45  ;;  %v3276_v63 = vmul.f32 -1.442695, %v2630_v60 }
0x18ca   :  { %v3277_v47 = vmul.f32 -1.442695, %v2654_v25 }
0x18cb   :  { %v3278_v48 = vmul.f32 -1.442695, %v2678_v29 }
0x18cc   :  { %3536 = vpow2.f32 %v3277_v47 }
0x18cd   :  { %3538 = vpow2.f32 %v3278_v48 }
0x18d2   :  { %v3537_v52 = vpop.eup %3536 }
0x18d3   :  { %v3539_v53 = vpop.eup %3538  ;;  %v2658_v31 = vadd.f32 1.0, %v3537_v52 }
0x18d4   :  { %v2682_v32 = vadd.f32 1.0, %v3539_v53 }
0x18d5   :  { %3540 = vrcp.f32 %v2658_v31  ;;  %v2670_v37 = vand.u32 2147483648, %v2658_v31  ;;  %v2668_v46 = vand.u32 2147483647, %v2658_v31  ;;  %vm2664_vm7 = vweird.f32 %v2658_v31 }
0x18d6   :  { %3542 = vrcp.f32 %v2682_v32  ;;  %v2694_v49 = vand.u32 2147483648, %v2682_v32  ;;  %v2692_v9 = vand.u32 2147483647, %v2682_v32  ;;  %vm2688_vm13 = vweird.f32 %v2682_v32 }
0x18d7   :  { %v2671_v55 = vor.u32 1.1754944e-38, %v2670_v37  ;;  %vm2669_vm14 = vcmp.eq.f32.partialorder %v2668_v46, 8.507059e+37  ;;  %3544 = vpow2.f32 %v3276_v63 }
0x18d8   :  { %v2695_v56 = vor.u32 1.1754944e-38, %v2694_v49  ;;  %vm2693_vm0 = vcmp.eq.f32.partialorder %v2692_v9, 8.507059e+37  ;;  %3546 = vpow2.f32 %v3279_v0  ;;  %v3384_v0 = vld [vmem:[%s4987_s3 + $0x52] ss:$0 sm:$0xff] }
0x18d9   :  { %3548 = vpow2.f32 %v2621_v4 }
0x18db   :  { %v3541_v50 = vpop.eup %3540 }
0x18dc   :  { %v3543_v51 = vpop.eup %3542  ;;  %v2660_v34 = vmul.f32 %v3541_v50, %v2658_v31  ;;  %vm2665_vm5 = vweird.f32 %v3541_v50  ;;  %v2618_v31 = vmax.f32 %v2617_v62, 0.0 }
0x18dd   :  { %v2684_v35 = vmul.f32 %v3543_v51, %v2682_v32  ;;  %vm2689_vm6 = vweird.f32 %v3543_v51  ;;  %vm2666_vm9 = vmor %vm2664_vm7, %vm2665_vm5  ;;  %v3545_v2 = vpop.eup %3544 }
0x18de   :  { %v2661_v36 = vsub.f32 1.0, %v2660_v34  ;;  %vm2690_vm15 = vmor %vm2688_vm13, %vm2689_vm6  ;;  %v3547_v3 = vpop.eup %3546  ;;  %v2634_v5 = vadd.f32 1.0, %v3545_v2 }
0x18df   :  { %v2685_v40 = vsub.f32 1.0, %v2684_v35  ;;  %v2710_v6 = vadd.f32 1.0, %v3547_v3  ;;  %v3549_v7 = vpop.eup %3548 }
0x18e0   :  { %v2662_v43 = vmul.f32 %v3541_v50, %v2661_v36  ;;  %3550 = vrcp.f32 %v2634_v5  ;;  %v2623_v16 = vadd.f32 1.0, %v3549_v7  ;;  %vm2640_vm3 = vweird.f32 %v2634_v5 }
0x18e1   :  { %v2686_v54 = vmul.f32 %v3543_v51, %v2685_v40  ;;  %3552 = vrcp.f32 %v2710_v6  ;;  %v2644_v52 = vand.u32 2147483647, %v2634_v5  ;;  %v2722_v53 = vand.u32 2147483648, %v2710_v6 }
0x18e2   :  { %v2663_v11 = vadd.f32 %v3541_v50, %v2662_v43  ;;  %3554 = vlog2.f32 %v2623_v16  ;;  %vm2716_vm6 = vweird.f32 %v2710_v6  ;;  %v2720_v32 = vand.u32 2147483647, %v2710_v6 }
0x18e3   :  { %v2687_v14 = vadd.f32 %v3543_v51, %v2686_v54  ;;  %v2723_v36 = vor.u32 1.1754944e-38, %v2722_v53  ;;  %v2704_v40 = vstv %s3255_s24 }
0x18e4   :  { %v2667_v15 = vsel %vm2666_vm9, %v3541_v50, %v2663_v11  ;;  %vm2645_vm9 = vcmp.eq.f32.partialorder %v2644_v52, 8.507059e+37  ;;  %vm2721_vm13 = vcmp.eq.f32.partialorder %v2720_v32, 8.507059e+37 }
0x18e5   :  { %v2672_v18 = vsel %vm2669_vm14, %v2671_v55, %v2667_v15  ;;  %v2691_v19 = vsel %vm2690_vm15, %v3543_v51, %v2687_v14 }
0x18e6   :  { %v2696_v57 = vsel %vm2693_vm0, %v2695_v56, %v2691_v19  ;;  %v2674_v22 = vmul.f32 %v2672_v18, %v2654_v25  ;;  %v3551_v8 = vpop.eup %3550  ;;  %v3287_v18 = vld [vmem:[%s4992_s8 + $0x178] sm:$0xff]  ;;  %v3286_v19 = vld [vmem:[%s4992_s8 + $0x170] sm:$0xff] }
0x18e7   :  { %v2698_v23 = vmul.f32 %v2696_v57, %v2678_v29  ;;  %v3553_v12 = vpop.eup %3552  ;;  %v2636_v17 = vmul.f32 %v3551_v8, %v2634_v5  ;;  %v2646_v29 = vand.u32 2147483648, %v2634_v5  ;;  %2767 = vmatpush.msra.mxu2 %v3287_v18  ;;  %v3284_v57 = vld [vmem:[%s4992_s8 + $0x160] sm:$0xff] }
0x18e8   :  { %v2712_v21 = vmul.f32 %v3553_v12, %v2710_v6  ;;  %v3555_v44 = vpop.eup %3554  ;;  %vm2717_vm2 = vweird.f32 %v3553_v12 }
0x18e9   :  { %v2699_v20 = vmul.f32 %v2698_v23, %v2674_v22  ;;  %v2637_v41 = vsub.f32 1.0, %v2636_v17  ;;  %v2625_v47 = vmul.f32 0.6931472, %v3555_v44  ;;  %vm2718_vm7 = vmor %vm2716_vm6, %vm2717_vm2  ;;  %v2647_v51 = vor.u32 1.1754944e-38, %v2646_v29  ;;  %2768 = vmatpush.msra.mxu2 %v3286_v19  ;;  %v3283_v22 = vld [vmem:[%s4992_s8 + $0x158] sm:$0xff]  ;;  %v3282_v23 = vld [vmem:[%s4992_s8 + $0x150] sm:$0xff] }
0x18ea   :  { %v2713_v42 = vsub.f32 1.0, %v2712_v21  ;;  %v3290_v17 = vld [vmem:[%s4993_s9 + $0xa8] sm:$0xff]  ;;  %v3289_v21 = vld [vmem:[%s4993_s9 + $0xa0] sm:$0xff]  ;;  %v3301_v19 = vld [vmem:[%s4994_s10 + $0x2b0] sm:$0xff] }
0x18eb   :  { %v2700_v58 = vsel %vm358_vm8, %v2699_v20, 0.0  ;;  %v2638_v24 = vmul.f32 %v3551_v8, %v2637_v41  ;;  %vm2641_vm8 = vweird.f32 %v3551_v8  ;;  %v2626_v35 = vadd.f32 %v2625_v47, %v2618_v31  ;;  %v3281_v20 = vld [vmem:[%s4992_s8 + $0x148] sm:$0xff]  ;;  %v3385_v47 = vld [vmem:[%s4987_s3 + $0x51] ss:$0 sm:$0xff] }
0x18ec   :  { %2701 = vadd.xlane.f32.xlu2 %v2700_v58  ;;  %v2714_v45 = vmul.f32 %v3553_v12, %v2713_v42  ;;  %vm2642_vm5 = vmor %vm2640_vm3, %vm2641_vm8  ;;  %v3280_v58 = vld [vmem:[%s4992_s8 + $0x140] sm:$0xff] }
0x18ed   :  { %v2639_v25 = vadd.f32 %v3551_v8, %v2638_v24 }
0x18ee   :  { %v2715_v48 = vadd.f32 %v3553_v12, %v2714_v45 }
0x18ef   :  { %v2643_v50 = vsel %vm2642_vm5, %v3551_v8, %v2639_v25 }
0x18f0   :  { %v2719_v34 = vsel %vm2718_vm7, %v3553_v12, %v2715_v48  ;;  %v2648_v37 = vsel %vm2645_vm9, %v2647_v51, %v2643_v50  ;;  %v3310_v51 = vld [vmem:[%s4994_s10 + $0x2f8] sm:$0xff] }
0x18f1   :  { %v2724_v49 = vsel %vm2721_vm13, %v2723_v36, %v2719_v34  ;;  %v2650_v54 = vmul.f32 %v2648_v37, %v2630_v60  ;;  %2905 = vmatpush.msrb.mxu0 %v3310_v51  ;;  %v3309_v34 = vld [vmem:[%s4994_s10 + $0x2f0] sm:$0xff]  ;;  %v3386_v36 = vld [vmem:[%s4987_s3 + $0x59] ss:$0 sm:$0xff]  ;;  %v3307_v37 = vld [vmem:[%s4994_s10 + $0x2e0] sm:$0xff] }
0x18f2   :  { %v2726_v11 = vmul.f32 %v2724_v49, %v4835_v13  ;;  %v3285_v13 = vld [vmem:[%s4992_s8 + $0x168] sm:$0xff]  ;;  %v3305_v49 = vld [vmem:[%s4994_s10 + $0x2d0] sm:$0xff] }
0x18f3   :  { %2769 = vmatpush.msra.mxu2 %v3285_v13  ;;  %2906 = vmatpush.msrb.mxu0 %v3309_v34 }
0x18f5   :  { %2770 = vmatpush.msra.mxu2 %v3284_v57 }
0x18f7   :  { %2771 = vmatpush.msra.mxu2 %v3283_v22  ;;  %v3300_v22 = vld [vmem:[%s4994_s10 + $0x2a8] sm:$0xff] }
0x18f9   :  { %2772 = vmatpush.msra.mxu2 %v3282_v23 }
0x18fb   :  { %2773 = vmatpush.msra.mxu2 %v3281_v20 }
0x18fd   :  { %2774 = vmatpush.msra.mxu2 %v3280_v58  ;;  %v3299_v58 = vld [vmem:[%s4994_s10 + $0x2a0] sm:$0xff] }
0x195f   :  { %v2702_v43 = vpop.xlane.xlu2 %2701 }
0x1960   :  { %v2703_v46 = vmul.f32 %v2702_v43, %v2626_v35  ;;  %v3308_v35 = vld [vmem:[%s4994_s10 + $0x2e8] sm:$0xff]  ;;  %v3306_v43 = vld [vmem:[%s4994_s10 + $0x2d8] sm:$0xff] }
0x1961   :  { %2907 = vmatpush.msrb.mxu0 %v3308_v35 }
0x1962   :  { %v2705_v9 = vadd.f32 %v2704_v40, %v2703_v46 }
0x1963   :  { %2908 = vmatpush.msrb.mxu0 %v3307_v37 }
0x1964   :  { %v2706_v55 = vmul.f32 %v2705_v9, %v2650_v54  ;;  %v3304_v9 = vld [vmem:[%s4994_s10 + $0x2c8] sm:$0xff] }
0x1965   :  { %2909 = vmatpush.msrb.mxu0 %v3306_v43 }
0x1966   :  { %v2727_v14 = vmul.f32 %v2726_v11, %v2706_v55  ;;  %v3303_v55 = vld [vmem:[%s4994_s10 + $0x2c0] sm:$0xff] }
0x1967   :  { %2910 = vmatpush.msrb.mxu0 %v3305_v49 }
0x1968   :  { %v2728_v15 = vmul.f32 %v2727_v14, %v2727_v14 }
0x1969   :  { %2911 = vmatpush.msrb.mxu0 %v3304_v9 }
0x196a   :  { %v2729_v56 = vsel %vm388_vm4, %v2728_v15, 0.0  ;;  %v3302_v15 = vld [vmem:[%s4994_s10 + $0x2b8] sm:$0xff] }
0x196b   :  { %2730 = vadd.xlane.f32.xlu0 %v2729_v56  ;;  %2912 = vmatpush.msrb.mxu0 %v3303_v55 }
0x196d   :  { %2913 = vmatpush.msrb.mxu0 %v3302_v15 }
0x196f   :  { %2914 = vmatpush.msrb.mxu0 %v3301_v19 }
0x1971   :  { %2915 = vmatpush.msrb.mxu0 %v3300_v22 }
0x1973   :  { %2916 = vmatpush.msrb.mxu0 %v3299_v58 }
0x19de   :  { %v2731_v26 = vpop.xlane.xlu0 %2730 }
0x19df   :  { %v2732_v27 = vmul.f32 %v2731_v26, %v3801_v10 }
0x19e1   :  { %v2733_v30 = vadd.f32 1e-05, %v2732_v27 }
0x19e3   :  { %3556 = vrsqrt.f32 %v2733_v30  ;;  %vm2740_vm14 = vweird.f32 %v2733_v30 }
0x19e9   :  { %v3557_v59 = vpop.eup %3556 }
0x19ea   :  { %v2735_v60 = vmul.f32 %v3557_v59, %v2733_v30  ;;  %vm2741_vm4 = vweird.f32 %v3557_v59  ;;  %v3298_v30 = vld [vmem:[%s4994_s10 + $0x298] sm:$0xff] }
0x19eb   :  { %vm2742_vm15 = vmor %vm2740_vm14, %vm2741_vm4  ;;  %2917 = vmatpush.msrb.mxu0 %v3298_v30 }
0x19ec   :  { %v2736_v61 = vmul.f32 %v3557_v59, %v2735_v60  ;;  %v3297_v60 = vld [vmem:[%s4994_s10 + $0x290] sm:$0xff] }
0x19ed   :  { %2918 = vmatpush.msrb.mxu0 %v3297_v60 }
0x19ee   :  { %v2737_v28 = vmul.f32 0.5, %v2736_v61 }
0x19f0   :  { %v2738_v62 = vsub.f32 1.5, %v2737_v28 }
0x19f2   :  { %v2739_v63 = vmul.f32 %v3557_v59, %v2738_v62  ;;  %v3296_v62 = vld [vmem:[%s4994_s10 + $0x288] sm:$0xff] }
0x19f3   :  { %2919 = vmatpush.msrb.mxu0 %v3296_v62 }
0x19f4   :  { %v2743_v33 = vsel %vm2742_vm15, %v3557_v59, %v2739_v63  ;;  %v3295_v63 = vld [vmem:[%s4994_s10 + $0x280] sm:$0xff] }
0x19f5   :  { %v2744_v1 = vmul.f32 %v2743_v33, %v2727_v14  ;;  %2920 = vmatpush.msrb.mxu0 %v3295_v63 }
0x19f7   :  { %v2746_v2 = vmul.f32 %v3384_v0, %v2744_v1 }
0x19f9   :  { %3288 = vmatmul.msk.f32.vlgmr.msra.gmra.mxu2 %vm422_vm12, %v2746_v2 }
0x1a7c   :  { %v2776_v10 = vpop.f32.mrf.mxu2 }
0x1a7d   :  { %v2780_v3 = vrot.slane %v2776_v10, 1  ;;  %v4889_v4 = vadd.f32 %v2776_v10, %v4762_v38  ;;  %v3292_v38 = vld [vmem:[%s4993_s9 + $0xb8] sm:$0xff] }
0x1a7e   :  { %2835 = vmatpush.msrb.mxu3 %v3292_v38 }
0x1a7f   :  { %v4892_v5 = vadd.f32 %v2780_v3, %v4765_v39  ;;  %v2792_v7 = vmul.f32 %v4889_v4, %v4889_v4  ;;  %v3291_v39 = vld [vmem:[%s4993_s9 + $0xb0] sm:$0xff] }
0x1a80   :  { %2836 = vmatpush.msrb.mxu3 %v3291_v39 }
0x1a81   :  { %v2793_v6 = vmul.f32 %v4892_v5, %v4892_v5  ;;  %v2788_v45 = vrot.slane %v4892_v5, 7 }
0x1a82   :  { %2837 = vmatpush.msrb.mxu3 %v3290_v17 }
0x1a83   :  { %v2796_v8 = vrot.slane %v2793_v6, 7  ;;  %v2789_v48 = vsel %vm143_vm11, %v2788_v45, %v4889_v4 }
0x1a84   :  { %2838 = vmatpush.msrb.mxu3 %v3289_v21  ;;  %v2791_v31 = vmul.f32 %v3385_v47, %v2789_v48 }
0x1a85   :  { %v2797_v12 = vsel %vm143_vm11, %v2796_v8, %v2792_v7 }
0x1a86   :  { %v2799_v16 = vsel %vm154_vm10, %v2797_v12, 0.0 }
0x1a87   :  { %2800 = vadd.xlane.f32.xlu1 %v2799_v16 }
0x1afa   :  { %v2801_v41 = vpop.xlane.xlu1 %2800 }
0x1afb   :  { %v2802_v42 = vadd.f32 1e-06, %v2801_v41 }
0x1afd   :  { %3558 = vrsqrt.f32 %v2802_v42  ;;  %vm2809_vm0 = vweird.f32 %v2802_v42 }
0x1b03   :  { %v3559_v24 = vpop.eup %3558 }
0x1b04   :  { %v2804_v44 = vmul.f32 %v3559_v24, %v2802_v42  ;;  %vm2810_vm12 = vweird.f32 %v3559_v24 }
0x1b05   :  { %vm2811_vm8 = vmor %vm2809_vm0, %vm2810_vm12 }
0x1b06   :  { %v2805_v25 = vmul.f32 %v3559_v24, %v2804_v44 }
0x1b08   :  { %v2806_v29 = vmul.f32 0.5, %v2805_v25 }
0x1b0a   :  { %v2807_v52 = vsub.f32 1.5, %v2806_v29 }
0x1b0c   :  { %v2808_v53 = vmul.f32 %v3559_v24, %v2807_v52 }
0x1b0e   :  { %v2812_v32 = vsel %vm2811_vm8, %v3559_v24, %v2808_v53  ;;  %v3387_v53 = vld [vmem:[%s4987_s3 + $0x5a] ss:$0 sm:$0xff] }
0x1b0f   :  { %v2813_v50 = vmul.f32 %v2812_v32, %v2791_v31 }
0x1b11   :  { %3293 = vmatmul.msk.f32.vlgmr.msrb.gmra.mxu3 %vm75_vm1, %v2813_v50 }
0x1b94   :  { %v2840_v40 = vpop.f32.mrf.mxu3 }
0x1b95   :  { %v4937_v46 = vadd.f32 %v3386_v36, %v2840_v40 }
0x1b97   :  { %v2844_v54 = vmul.f32 0.70710677, %v4937_v46  ;;  %v2843_v47 = vmul.f32 0.5, %v4937_v46 }
0x1b99   :  { %v2845_v11 = vmul.f32 %v2844_v54, %v2844_v54 }
0x1b9b   :  { %v2846_v14 = vmin.f32 %v2845_v11, 16.0 }
0x1b9d   :  { %v2847_v56 = vmul.f32 2.1237322e-06, %v2846_v14  ;;  %v2858_v18 = vmul.f32 3.8918573e-05, %v2846_v14 }
0x1b9f   :  { %v2848_v13 = vadd.f32 0.00028619796, %v2847_v56  ;;  %v2859_v57 = vadd.f32 0.001143296, %v2858_v18 }
0x1ba1   :  { %v2849_v23 = vmul.f32 %v2848_v13, %v2846_v14  ;;  %v2860_v20 = vmul.f32 %v2859_v57, %v2846_v14 }
0x1ba3   :  { %v2861_v26 = vadd.f32 0.014752088, %v2860_v20  ;;  %v2850_v27 = vadd.f32 0.0036580483, %v2849_v23 }
0x1ba5   :  { %v2862_v59 = vmul.f32 %v2861_v26, %v2846_v14  ;;  %v2851_v28 = vmul.f32 %v2850_v27, %v2846_v14 }
0x1ba7   :  { %v2863_v61 = vadd.f32 0.112945676, %v2862_v59  ;;  %v2852_v1 = vadd.f32 0.05243302, %v2851_v28 }
0x1ba9   :  { %v2864_v0 = vmul.f32 %v2863_v61, %v2846_v14  ;;  %v2853_v3 = vmul.f32 %v2852_v1, %v2846_v14 }
0x1bab   :  { %v2865_v33 = vadd.f32 0.4994258, %v2864_v0  ;;  %v2854_v6 = vadd.f32 0.18741608, %v2853_v3 }
0x1bad   :  { %v2866_v2 = vmul.f32 %v2865_v33, %v2846_v14  ;;  %v2855_v8 = vmul.f32 %v2854_v6, %v2846_v14 }
0x1baf   :  { %v2867_v10 = vadd.f32 1.0, %v2866_v2  ;;  %v2856_v39 = vadd.f32 1.1283791, %v2855_v8 }
0x1bb1   :  { %3560 = vrcp.f32 %v2867_v10  ;;  %v2879_v38 = vand.u32 2147483648, %v2867_v10  ;;  %v2877_v21 = vand.u32 2147483647, %v2867_v10  ;;  %vm2873_vm2 = vweird.f32 %v2867_v10 }
0x1bb2   :  { %v2857_v24 = vmul.f32 %v2856_v39, %v2844_v54 }
0x1bb3   :  { %v2880_v42 = vor.u32 1.1754944e-38, %v2879_v38  ;;  %vm2878_vm5 = vcmp.eq.f32.partialorder %v2877_v21, 8.507059e+37 }
0x1bb7   :  { %v3561_v7 = vpop.eup %3560 }
0x1bb8   :  { %v2869_v12 = vmul.f32 %v3561_v7, %v2867_v10  ;;  %vm2874_vm1 = vweird.f32 %v3561_v7 }
0x1bb9   :  { %vm2875_vm3 = vmor %vm2873_vm2, %vm2874_vm1 }
0x1bba   :  { %v2870_v16 = vsub.f32 1.0, %v2869_v12 }
0x1bbc   :  { %v2871_v17 = vmul.f32 %v3561_v7, %v2870_v16 }
0x1bbe   :  { %v2872_v41 = vadd.f32 %v3561_v7, %v2871_v17 }
0x1bc0   :  { %v2876_v44 = vsel %vm2875_vm3, %v3561_v7, %v2872_v41 }
0x1bc1   :  { %v2881_v45 = vsel %vm2878_vm5, %v2880_v42, %v2876_v44 }
0x1bc2   :  { %v2882_v25 = vmul.f32 %v2881_v45, %v2857_v24 }
0x1bc4   :  { %v3294_v29 = vclamps-f32 %v2882_v25, 1.0 }
0x1bc6   :  { %v2885_v48 = vadd.f32 1.0, %v3294_v29 }
0x1bc8   :  { %v2886_v52 = vmul.f32 %v2885_v48, %v2843_v47 }
0x1bca   :  { %2921 = vmatmul.f32.vlgmr.msrb.gmra.mxu0 %v2886_v52 }
0x1c47   :  { %v2922_v31 = vpop.f32.mrf.mxu0 }
0x1c48   :  { %v2923_v32 = vadd.f32 %v3387_v53, %v2922_v31 }
0x1c4a   :  { %v2926_v50 = vrot.slane %v2923_v32, 1  ;;  %v2929_v34 = vadd.f32 %v2923_v32, %v4889_v4 }
0x1c4c   :  { %v2930_v51 = vadd.f32 %v2926_v50, %v4892_v5 }
0x1c4e   :  { %v2933_v35 = vrot.slane %v2930_v51, 7 }
0x1c50   :  { %v2934_v36 = vsel %vm143_vm11, %v2933_v35, %v2929_v34 }
0x1c51   :  { %2936 = vst.msk [vmem:[#allocation5] sm:$0x3] %vm154_vm10, %v2934_v36 }
0x1c52   :  { %2947 = dma.vmem_to_hbm [thread:$0]  %s2943_s29, 32, %s2945_s12, [#allocation3]  }
0x1c53   :  { %3600 = dma.done.wait [#allocation3], 32  }
0x1c54   :  { %3601 = vsyncadd [#allocation3], 4294967264 }
0x1c55   :  { %2952 = vsyncpa [#allocation3], 1 }
0x1c56   :  { %2953 = vsyncpa [#allocation4], 1 }

</bundles_post_ra>
